<compile_context>
chip_gen: v5e
topology: v5e:2x2
jax: 0.10.0
libtpu: 0.0.40
codegen_flags: <defaults>
</compile_context>

<pallas_src>
import functools

import jax
import jax.numpy as jnp
from jax import lax
from jax.experimental import pallas as pl
from jax.experimental.pallas import tpu as pltpu

P = 128  # lane-aligned padded width of every per-edge-type Dout block


def _make_fused_encode_kernel(num_edge_types, n_layers):
    """Kernel refs: x_ref (N,P), adj_ref (E,N,N), w_ref (L,P,2*E*P),
    b_ref (L,1,2*E*P), o_ref (N,P)."""
    E = num_edge_types

    def kernel(x_ref, adj_ref, w_ref, b_ref, o_ref):
        z = x_ref[...]                                           # (N, P) padded
        for li in range(n_layers):                               # static unroll
            w = w_ref[li]                                        # (P, 2*E*P)
            b = b_ref[li]                                        # (1, 2*E*P)
            # One wide MXU pass: msg+self transforms for all edge types at once.
            slab = jnp.dot(z, w, preferred_element_type=jnp.float32) + b
            acc = None
            for e in range(E):                                   # static unroll
                a = adj_ref[e]                                   # (N, N) dst x src
                m = slab[:, e * P:(e + 1) * P]                   # msg   (lane-aligned view)
                s = slab[:, (E + e) * P:(E + e + 1) * P]         # self  (lane-aligned view)
                # sum-aggregate incoming messages + self transform
                h = jnp.dot(a, m, preferred_element_type=jnp.float32) + s
                # F.normalize(p=2, dim=-1): x / max(||x||, 1e-12)
                #   == x * rsqrt(max(||x||^2, 1e-24))  (EUP path).
                # Padded lanes of h are exactly zero -> norm unaffected.
                n2 = jnp.sum(h * h, axis=-1, keepdims=True)
                hn = h * lax.rsqrt(jnp.maximum(n2, 1e-24))
                acc = hn if acc is None else acc + hn            # HeteroConv sum
            z = acc
            if li < n_layers - 1:
                z = jnp.maximum(z, 0.0)                          # ReLU
            # F.dropout(training=False) -> identity (eval mode)
        o_ref[...] = z                                           # lane-dense store

    return kernel


def prepare_weight_slabs(params):
    """Hoisted out of the call path: build zero-padded, lane-aligned slabs once.

    params: list (per layer) of dicts with stacked per-edge-type weights:
            w_msg/w_self: (E, Din, Dout), b_msg/b_self: (E, 1, Dout)
    returns w_all (L, P, 2*E*P), b_all (L, 1, 2*E*P), douts (list of true Dout).
    """
    E = params[0]["w_msg"].shape[0]
    w_all, b_all, douts = [], [], []
    for p in params:
        Ew, din, dout = p["w_msg"].shape
        assert Ew == E and din <= P and dout <= P
        douts.append(int(dout))
        w_layer = jnp.zeros((P, 2 * E * P), jnp.float32)
        b_layer = jnp.zeros((1, 2 * E * P), jnp.float32)
        for e in range(E):
            w_layer = w_layer.at[:din, e * P:e * P + dout].set(p["w_msg"][e])
            b_layer = b_layer.at[:, e * P:e * P + dout].set(p["b_msg"][e])
            w_layer = w_layer.at[:din, (E + e) * P:(E + e) * P + dout].set(p["w_self"][e])
            b_layer = b_layer.at[:, (E + e) * P:(E + e) * P + dout].set(p["b_self"][e])
        w_all.append(w_layer)
        b_all.append(b_layer)
    return jnp.stack(w_all), jnp.stack(b_all), douts


@functools.partial(jax.jit, static_argnames=("dout_last",))
def hetero_gae_encode(x, adj, w_all, b_all, dout_last):
    """Full encode() in a single fused Pallas call (single dispatch under jit).

    x:     (N, Din) float32 node features
    adj:   (E, N, N) float32 dense adjacency, adj[e, i, j] = 1 if edge j -> i
    w_all: (L, P, 2*E*P) padded weight slabs, b_all: (L, 1, 2*E*P) bias slabs
    returns (N, dout_last) float32
    """
    N, din = x.shape
    E = adj.shape[0]
    L = w_all.shape[0]
    # Pad node features to the lane-aligned P-wide slab carried through the kernel.
    x_pad = jnp.zeros((N, P), jnp.float32).at[:, :din].set(x)

    vmem_spec = pl.BlockSpec(memory_space=pltpu.MemorySpace.VMEM)
    out_pad = pl.pallas_call(
        _make_fused_encode_kernel(E, L),
        out_shape=jax.ShapeDtypeStruct((N, P), jnp.float32),
        in_specs=[vmem_spec] * 4,
        out_specs=vmem_spec,
    )(x_pad, adj, w_all, b_all)
    return out_pad[:, :dout_last]


def combine_basis(basis_wt, basis_bias, lin_comb):
    """basis_wt: (Din, Dout, B), basis_bias: (Dout, B), lin_comb: (1, B).
    Matches torch.matmul(basis, lin_comb.t()).squeeze()."""
    w = jnp.matmul(basis_wt, lin_comb.T).squeeze(-1)     # (Din, Dout)
    b = jnp.matmul(basis_bias, lin_comb.T).squeeze(-1)   # (Dout,)
    return w, b


def reference_encode(x, adj, params):
    """Plain-JAX reference of the same semantics (for a silent sanity check)."""
    z = x
    n_layers = len(params)
    for idx, p in enumerate(params):
        acc = jnp.zeros((z.shape[0], p["w_msg"].shape[2]), jnp.float32)
        for e in range(adj.shape[0]):
            msg = z @ p["w_msg"][e] + p["b_msg"][e]
            agg = adj[e] @ msg
            slf = z @ p["w_self"][e] + p["b_self"][e]
            h = agg + slf
            norm = jnp.sqrt(jnp.sum(h * h, axis=-1, keepdims=True))
            acc = acc + h / jnp.maximum(norm, 1e-12)
        z = acc
        if idx < n_layers - 1:
            z = jnp.maximum(z, 0.0)
    return z


if __name__ == "__main__":
    key = jax.random.PRNGKey(0)

    # Small synthetic hetero graph: only 'drug' nodes, 3 drug-drug relations.
    N = 128             # number of drug nodes (lane-dense adjacency)
    input_dim = 32      # input_dim['drug']
    hidden_dims = [32, 16]
    num_bases = 2
    edge_types = [("drug", f"rel{r}", "drug") for r in range(3)]
    E = len(edge_types)

    dims = [input_dim] + hidden_dims
    keys = jax.random.split(key, 64)
    ki = iter(range(64))

    def xavier(k, shape):
        fan_in = shape[0]
        fan_out = shape[1] if len(shape) > 1 else shape[0]
        bound = (6.0 / (fan_in + fan_out)) ** 0.5
        return jax.random.uniform(k, shape, jnp.float32, -bound, bound)

    params = []
    for layer in range(len(hidden_dims)):
        din, dout = dims[layer], dims[layer + 1]
        basis_msg_wt = xavier(keys[next(ki)], (din, dout, num_bases))
        basis_msg_b = xavier(keys[next(ki)], (dout, num_bases))
        basis_self_wt = xavier(keys[next(ki)], (din, dout, num_bases))
        basis_self_b = xavier(keys[next(ki)], (dout, num_bases))
        w_msg, b_msg, w_self, b_self = [], [], [], []
        for _ in edge_types:
            lin_comb = xavier(keys[next(ki)], (1, num_bases))
            wm, bm = combine_basis(basis_msg_wt, basis_msg_b, lin_comb)
            ws, bs = combine_basis(basis_self_wt, basis_self_b, lin_comb)
            w_msg.append(wm); b_msg.append(bm[None, :])
            w_self.append(ws); b_self.append(bs[None, :])
        params.append({
            "w_msg": jnp.stack(w_msg),          # (E, Din, Dout)
            "b_msg": jnp.stack(b_msg),          # (E, 1, Dout)
            "w_self": jnp.stack(w_self),        # (E, Din, Dout)
            "b_self": jnp.stack(b_self),        # (E, 1, Dout)
        })

    # Node features and random sparse-ish adjacency per edge type (dense mask).
    x = jax.random.normal(keys[next(ki)], (N, input_dim), jnp.float32)
    adj = (jax.random.uniform(keys[next(ki)], (E, N, N)) < 0.1).astype(jnp.float32)

    # Precompute lane-aligned, msg|self-fused weight slabs once (out of hot path).
    w_all, b_all, douts = prepare_weight_slabs(params)

    z = hetero_gae_encode(x, adj, w_all, b_all, douts[-1])
    z = jax.block_until_ready(z)

    # silent correctness check against plain-JAX reference
    z_ref = reference_encode(x, adj, params)
    assert z.shape == (N, hidden_dims[-1])
    assert jnp.allclose(z, z_ref, rtol=1e-3, atol=1e-4)

    # TODO(synk): decode_all_relation uses BilinearDecoder / DEDICOM, whose
    # definitions are not provided in the module source; not implemented.

    print("KERNEL_OK")
</pallas_src>

<mosaic_0001>
module attributes {stable_mosaic.version = 11 : i64} {
  func.func @kernel(%arg0: memref<128x128xf32, #tpu.memory_space<vmem>>, %arg1: memref<3x128x128xf32, #tpu.memory_space<vmem>>, %arg2: memref<2x128x768xf32, #tpu.memory_space<vmem>>, %arg3: memref<2x1x768xf32, #tpu.memory_space<vmem>>, %arg4: memref<128x128xf32, #tpu.memory_space<vmem>>) attributes {dimension_semantics = [], scalar_prefetch = 0 : i64, scratch_operands = 0 : i64, tpu.core_type = #tpu.core_type<tc>} {
    %c0 = arith.constant 0 : index
    %c0_0 = arith.constant 0 : index
    %0 = vector.load %arg0[%c0, %c0_0] : memref<128x128xf32, #tpu.memory_space<vmem>>, vector<128x128xf32>
    %c0_1 = arith.constant 0 : index
    %c0_2 = arith.constant 0 : index
    %c0_3 = arith.constant 0 : index
    %1 = vector.load %arg2[%c0_1, %c0_2, %c0_3] : memref<2x128x768xf32, #tpu.memory_space<vmem>>, vector<1x128x768xf32>
    %2 = vector.shape_cast %1 : vector<1x128x768xf32> to vector<128x768xf32>
    %c0_4 = arith.constant 0 : index
    %c0_5 = arith.constant 0 : index
    %c0_6 = arith.constant 0 : index
    %3 = vector.load %arg3[%c0_4, %c0_5, %c0_6] : memref<2x1x768xf32, #tpu.memory_space<vmem>>, vector<1x1x768xf32>
    %4 = vector.shape_cast %3 : vector<1x1x768xf32> to vector<1x768xf32>
    %cst = arith.constant dense<0.000000e+00> : vector<128x768xf32>
    %5 = tpu.matmul %0, %2, %cst {dimension_numbers = #tpu.dot_dimension_numbers<[1], [0], [0], [1], [0, 0, 1, 1], [], []>} : vector<128x128xf32>, vector<128x768xf32>, vector<128x768xf32> -> vector<128x768xf32>
    %6 = vector.broadcast %4 : vector<1x768xf32> to vector<128x768xf32>
    %7 = arith.addf %5, %6 : vector<128x768xf32>
    %c0_7 = arith.constant 0 : index
    %c0_8 = arith.constant 0 : index
    %c0_9 = arith.constant 0 : index
    %8 = vector.load %arg1[%c0_7, %c0_8, %c0_9] : memref<3x128x128xf32, #tpu.memory_space<vmem>>, vector<1x128x128xf32>
    %9 = vector.shape_cast %8 : vector<1x128x128xf32> to vector<128x128xf32>
    %10 = vector.extract_strided_slice %7 {offsets = [0, 0], sizes = [128, 128], strides = [1, 1]} : vector<128x768xf32> to vector<128x128xf32>
    %11 = vector.extract_strided_slice %7 {offsets = [0, 384], sizes = [128, 128], strides = [1, 1]} : vector<128x768xf32> to vector<128x128xf32>
    %cst_10 = arith.constant dense<0.000000e+00> : vector<128x128xf32>
    %12 = tpu.matmul %9, %10, %cst_10 {dimension_numbers = #tpu.dot_dimension_numbers<[1], [0], [0], [1], [0, 0, 1, 1], [], []>} : vector<128x128xf32>, vector<128x128xf32>, vector<128x128xf32> -> vector<128x128xf32>
    %13 = arith.addf %12, %11 : vector<128x128xf32>
    %14 = arith.mulf %13, %13 : vector<128x128xf32>
    %cst_11 = arith.constant dense<0.000000e+00> : vector<128xf32>
    %15 = vector.multi_reduction <add>, %14, %cst_11 [1] : vector<128x128xf32> to vector<128xf32>
    %16 = vector.shape_cast %15 : vector<128xf32> to vector<128x1xf32>
    %cst_12 = arith.constant 1.000000e-24 : f32
    %17 = vector.broadcast %cst_12 : f32 to vector<128x1xf32>
    %18 = arith.maximumf %16, %17 : vector<128x1xf32>
    %19 = math.rsqrt %18 : vector<128x1xf32>
    %20 = vector.broadcast %19 : vector<128x1xf32> to vector<128x128xf32>
    %21 = arith.mulf %13, %20 : vector<128x128xf32>
    %c1 = arith.constant 1 : index
    %c0_13 = arith.constant 0 : index
    %c0_14 = arith.constant 0 : index
    %22 = vector.load %arg1[%c1, %c0_13, %c0_14] : memref<3x128x128xf32, #tpu.memory_space<vmem>>, vector<1x128x128xf32>
    %23 = vector.shape_cast %22 : vector<1x128x128xf32> to vector<128x128xf32>
    %24 = vector.extract_strided_slice %7 {offsets = [0, 128], sizes = [128, 128], strides = [1, 1]} : vector<128x768xf32> to vector<128x128xf32>
    %25 = vector.extract_strided_slice %7 {offsets = [0, 512], sizes = [128, 128], strides = [1, 1]} : vector<128x768xf32> to vector<128x128xf32>
    %cst_15 = arith.constant dense<0.000000e+00> : vector<128x128xf32>
    %26 = tpu.matmul %23, %24, %cst_15 {dimension_numbers = #tpu.dot_dimension_numbers<[1], [0], [0], [1], [0, 0, 1, 1], [], []>} : vector<128x128xf32>, vector<128x128xf32>, vector<128x128xf32> -> vector<128x128xf32>
    %27 = arith.addf %26, %25 : vector<128x128xf32>
    %28 = arith.mulf %27, %27 : vector<128x128xf32>
    %cst_16 = arith.constant dense<0.000000e+00> : vector<128xf32>
    %29 = vector.multi_reduction <add>, %28, %cst_16 [1] : vector<128x128xf32> to vector<128xf32>
    %30 = vector.shape_cast %29 : vector<128xf32> to vector<128x1xf32>
    %cst_17 = arith.constant 1.000000e-24 : f32
    %31 = vector.broadcast %cst_17 : f32 to vector<128x1xf32>
    %32 = arith.maximumf %30, %31 : vector<128x1xf32>
    %33 = math.rsqrt %32 : vector<128x1xf32>
    %34 = vector.broadcast %33 : vector<128x1xf32> to vector<128x128xf32>
    %35 = arith.mulf %27, %34 : vector<128x128xf32>
    %36 = arith.addf %21, %35 : vector<128x128xf32>
    %c2 = arith.constant 2 : index
    %c0_18 = arith.constant 0 : index
    %c0_19 = arith.constant 0 : index
    %37 = vector.load %arg1[%c2, %c0_18, %c0_19] : memref<3x128x128xf32, #tpu.memory_space<vmem>>, vector<1x128x128xf32>
    %38 = vector.shape_cast %37 : vector<1x128x128xf32> to vector<128x128xf32>
    %39 = vector.extract_strided_slice %7 {offsets = [0, 256], sizes = [128, 128], strides = [1, 1]} : vector<128x768xf32> to vector<128x128xf32>
    %40 = vector.extract_strided_slice %7 {offsets = [0, 640], sizes = [128, 128], strides = [1, 1]} : vector<128x768xf32> to vector<128x128xf32>
    %cst_20 = arith.constant dense<0.000000e+00> : vector<128x128xf32>
    %41 = tpu.matmul %38, %39, %cst_20 {dimension_numbers = #tpu.dot_dimension_numbers<[1], [0], [0], [1], [0, 0, 1, 1], [], []>} : vector<128x128xf32>, vector<128x128xf32>, vector<128x128xf32> -> vector<128x128xf32>
    %42 = arith.addf %41, %40 : vector<128x128xf32>
    %43 = arith.mulf %42, %42 : vector<128x128xf32>
    %cst_21 = arith.constant dense<0.000000e+00> : vector<128xf32>
    %44 = vector.multi_reduction <add>, %43, %cst_21 [1] : vector<128x128xf32> to vector<128xf32>
    %45 = vector.shape_cast %44 : vector<128xf32> to vector<128x1xf32>
    %cst_22 = arith.constant 1.000000e-24 : f32
    %46 = vector.broadcast %cst_22 : f32 to vector<128x1xf32>
    %47 = arith.maximumf %45, %46 : vector<128x1xf32>
    %48 = math.rsqrt %47 : vector<128x1xf32>
    %49 = vector.broadcast %48 : vector<128x1xf32> to vector<128x128xf32>
    %50 = arith.mulf %42, %49 : vector<128x128xf32>
    %51 = arith.addf %36, %50 : vector<128x128xf32>
    %cst_23 = arith.constant 0.000000e+00 : f32
    %52 = vector.broadcast %cst_23 : f32 to vector<128x128xf32>
    %53 = arith.maximumf %51, %52 : vector<128x128xf32>
    %c1_24 = arith.constant 1 : index
    %c0_25 = arith.constant 0 : index
    %c0_26 = arith.constant 0 : index
    %54 = vector.load %arg2[%c1_24, %c0_25, %c0_26] : memref<2x128x768xf32, #tpu.memory_space<vmem>>, vector<1x128x768xf32>
    %55 = vector.shape_cast %54 : vector<1x128x768xf32> to vector<128x768xf32>
    %c1_27 = arith.constant 1 : index
    %c0_28 = arith.constant 0 : index
    %c0_29 = arith.constant 0 : index
    %56 = vector.load %arg3[%c1_27, %c0_28, %c0_29] : memref<2x1x768xf32, #tpu.memory_space<vmem>>, vector<1x1x768xf32>
    %57 = vector.shape_cast %56 : vector<1x1x768xf32> to vector<1x768xf32>
    %cst_30 = arith.constant dense<0.000000e+00> : vector<128x768xf32>
    %58 = tpu.matmul %53, %55, %cst_30 {dimension_numbers = #tpu.dot_dimension_numbers<[1], [0], [0], [1], [0, 0, 1, 1], [], []>} : vector<128x128xf32>, vector<128x768xf32>, vector<128x768xf32> -> vector<128x768xf32>
    %59 = vector.broadcast %57 : vector<1x768xf32> to vector<128x768xf32>
    %60 = arith.addf %58, %59 : vector<128x768xf32>
    %c0_31 = arith.constant 0 : index
    %c0_32 = arith.constant 0 : index
    %c0_33 = arith.constant 0 : index
    %61 = vector.load %arg1[%c0_31, %c0_32, %c0_33] : memref<3x128x128xf32, #tpu.memory_space<vmem>>, vector<1x128x128xf32>
    %62 = vector.shape_cast %61 : vector<1x128x128xf32> to vector<128x128xf32>
    %63 = vector.extract_strided_slice %60 {offsets = [0, 0], sizes = [128, 128], strides = [1, 1]} : vector<128x768xf32> to vector<128x128xf32>
    %64 = vector.extract_strided_slice %60 {offsets = [0, 384], sizes = [128, 128], strides = [1, 1]} : vector<128x768xf32> to vector<128x128xf32>
    %cst_34 = arith.constant dense<0.000000e+00> : vector<128x128xf32>
    %65 = tpu.matmul %62, %63, %cst_34 {dimension_numbers = #tpu.dot_dimension_numbers<[1], [0], [0], [1], [0, 0, 1, 1], [], []>} : vector<128x128xf32>, vector<128x128xf32>, vector<128x128xf32> -> vector<128x128xf32>
    %66 = arith.addf %65, %64 : vector<128x128xf32>
    %67 = arith.mulf %66, %66 : vector<128x128xf32>
    %cst_35 = arith.constant dense<0.000000e+00> : vector<128xf32>
    %68 = vector.multi_reduction <add>, %67, %cst_35 [1] : vector<128x128xf32> to vector<128xf32>
    %69 = vector.shape_cast %68 : vector<128xf32> to vector<128x1xf32>
    %cst_36 = arith.constant 1.000000e-24 : f32
    %70 = vector.broadcast %cst_36 : f32 to vector<128x1xf32>
    %71 = arith.maximumf %69, %70 : vector<128x1xf32>
    %72 = math.rsqrt %71 : vector<128x1xf32>
    %73 = vector.broadcast %72 : vector<128x1xf32> to vector<128x128xf32>
    %74 = arith.mulf %66, %73 : vector<128x128xf32>
    %c1_37 = arith.constant 1 : index
    %c0_38 = arith.constant 0 : index
    %c0_39 = arith.constant 0 : index
    %75 = vector.load %arg1[%c1_37, %c0_38, %c0_39] : memref<3x128x128xf32, #tpu.memory_space<vmem>>, vector<1x128x128xf32>
    %76 = vector.shape_cast %75 : vector<1x128x128xf32> to vector<128x128xf32>
    %77 = vector.extract_strided_slice %60 {offsets = [0, 128], sizes = [128, 128], strides = [1, 1]} : vector<128x768xf32> to vector<128x128xf32>
    %78 = vector.extract_strided_slice %60 {offsets = [0, 512], sizes = [128, 128], strides = [1, 1]} : vector<128x768xf32> to vector<128x128xf32>
    %cst_40 = arith.constant dense<0.000000e+00> : vector<128x128xf32>
    %79 = tpu.matmul %76, %77, %cst_40 {dimension_numbers = #tpu.dot_dimension_numbers<[1], [0], [0], [1], [0, 0, 1, 1], [], []>} : vector<128x128xf32>, vector<128x128xf32>, vector<128x128xf32> -> vector<128x128xf32>
    %80 = arith.addf %79, %78 : vector<128x128xf32>
    %81 = arith.mulf %80, %80 : vector<128x128xf32>
    %cst_41 = arith.constant dense<0.000000e+00> : vector<128xf32>
    %82 = vector.multi_reduction <add>, %81, %cst_41 [1] : vector<128x128xf32> to vector<128xf32>
    %83 = vector.shape_cast %82 : vector<128xf32> to vector<128x1xf32>
    %cst_42 = arith.constant 1.000000e-24 : f32
    %84 = vector.broadcast %cst_42 : f32 to vector<128x1xf32>
    %85 = arith.maximumf %83, %84 : vector<128x1xf32>
    %86 = math.rsqrt %85 : vector<128x1xf32>
    %87 = vector.broadcast %86 : vector<128x1xf32> to vector<128x128xf32>
    %88 = arith.mulf %80, %87 : vector<128x128xf32>
    %89 = arith.addf %74, %88 : vector<128x128xf32>
    %c2_43 = arith.constant 2 : index
    %c0_44 = arith.constant 0 : index
    %c0_45 = arith.constant 0 : index
    %90 = vector.load %arg1[%c2_43, %c0_44, %c0_45] : memref<3x128x128xf32, #tpu.memory_space<vmem>>, vector<1x128x128xf32>
    %91 = vector.shape_cast %90 : vector<1x128x128xf32> to vector<128x128xf32>
    %92 = vector.extract_strided_slice %60 {offsets = [0, 256], sizes = [128, 128], strides = [1, 1]} : vector<128x768xf32> to vector<128x128xf32>
    %93 = vector.extract_strided_slice %60 {offsets = [0, 640], sizes = [128, 128], strides = [1, 1]} : vector<128x768xf32> to vector<128x128xf32>
    %cst_46 = arith.constant dense<0.000000e+00> : vector<128x128xf32>
    %94 = tpu.matmul %91, %92, %cst_46 {dimension_numbers = #tpu.dot_dimension_numbers<[1], [0], [0], [1], [0, 0, 1, 1], [], []>} : vector<128x128xf32>, vector<128x128xf32>, vector<128x128xf32> -> vector<128x128xf32>
    %95 = arith.addf %94, %93 : vector<128x128xf32>
    %96 = arith.mulf %95, %95 : vector<128x128xf32>
    %cst_47 = arith.constant dense<0.000000e+00> : vector<128xf32>
    %97 = vector.multi_reduction <add>, %96, %cst_47 [1] : vector<128x128xf32> to vector<128xf32>
    %98 = vector.shape_cast %97 : vector<128xf32> to vector<128x1xf32>
    %cst_48 = arith.constant 1.000000e-24 : f32
    %99 = vector.broadcast %cst_48 : f32 to vector<128x1xf32>
    %100 = arith.maximumf %98, %99 : vector<128x1xf32>
    %101 = math.rsqrt %100 : vector<128x1xf32>
    %102 = vector.broadcast %101 : vector<128x1xf32> to vector<128x128xf32>
    %103 = arith.mulf %95, %102 : vector<128x128xf32>
    %104 = arith.addf %89, %103 : vector<128x128xf32>
    %c0_49 = arith.constant 0 : index
    %c0_50 = arith.constant 0 : index
    %105 = vector.load %arg4[%c0_49, %c0_50] : memref<128x128xf32, #tpu.memory_space<vmem>>, vector<128x128xf32>
    tpu.vector_store %arg4[%c0_49, %c0_50], %104 {strides = array<i32>} : memref<128x128xf32, #tpu.memory_space<vmem>>, vector<128x128xf32>,
    return
  }
}

</mosaic_0001>

<bundles_post_ra>
// kernel: hetero_gae_encode.1
= control target key start
LH: loop header
LB: loop body
LE: loop exit
PB: predicated region body
PF: predicated region fallthrough
CT: control target
= control target key end

     0   :  { %9 = vsyncpa [#allocation3], 0  ;;  %s3366_s18 = smov [#allocation2]   ;;  %s3367_s20 = smov 768   ;;  %s6800_s0 = inlined_call_operand.vmem [shape: f32[128,128], index: 0, kind: input, shape index: {}]   ;;  %s6801_s1 = inlined_call_operand.vmem [shape: f32[3,128,128], index: 1, kind: input, shape index: {}]   ;;  %s6802_s2 = inlined_call_operand.hbm [shape: f32[2,128,768], index: 2, kind: input, shape index: {}]   ;;  %s6803_s3 = inlined_call_operand.vmem [shape: f32[2,1,768], index: 3, kind: input, shape index: {}]   ;;  %s6804_s4 = inlined_call_operand.vmem [shape: f32[128,128], index: 4, kind: output, shape index: {}]  }
   0x1   :  { %s18_s17 = sshll.u32 %s6802_s2, 4  ;;  %s20_s19 = sshll.u32 %s3366_s18, 4  ;;  %s19_s17 = int_to_ptr.hbm [resolvable:$true] %s18_s17  ;;  %s21_s19 = int_to_ptr.vmem [resolvable:$true] %s20_s19 }
   0x2   :  { %s3368_s21 = smov 48  }
   0x3   :  { %26 = dma.hbm_to_vmem [thread:$0]  %s19_s17, 24576, %s21_s19, [#allocation3], %s3367_s20, %s3367_s20, %s3368_s21  }
   0x4   :  { %3364 = dma.done.wait [#allocation3], 24576  }
   0x5   :  { %3365 = vsyncadd [#allocation3], 4294942720  ;;  %v139_v0 = vld [vmem:[#allocation2 + $0x2d0] sm:$0xff]  ;;  %v140_v1 = vld [vmem:[#allocation2 + $0x2d8] sm:$0xff] }
   0x6   :  { %v133_v2 = vld [vmem:[#allocation2 + $0x2a0] sm:$0xff]  ;;  %3065 = vmatpush.msra.mxu2 %v139_v0  ;;  %3081 = vmatpush.msra.mxu3 %v140_v1  ;;  %v134_v3 = vld [vmem:[#allocation2 + $0x2a8] sm:$0xff]  ;;  %v127_v4 = vld [vmem:[#allocation2 + $0x270] sm:$0xff] }
   0x7   :  { %v128_v5 = vld [vmem:[#allocation2 + $0x278] sm:$0xff]  ;;  %159 = vmatpush.msra.mxu0 %v139_v0  ;;  %224 = vmatpush.msra.mxu1 %v140_v1  ;;  %v121_v6 = vld [vmem:[#allocation2 + $0x240] sm:$0xff]  ;;  %v122_v7 = vld [vmem:[#allocation2 + $0x248] sm:$0xff] }
   0x8   :  { %3066 = vmatpush.msra.mxu2 %v133_v2  ;;  %3082 = vmatpush.msra.mxu3 %v134_v3  ;;  %v115_v8 = vld [vmem:[#allocation2 + $0x210] sm:$0xff]  ;;  %v116_v9 = vld [vmem:[#allocation2 + $0x218] sm:$0xff]  ;;  %v109_v10 = vld [vmem:[#allocation2 + $0x1e0] sm:$0xff] }
   0x9   :  { %160 = vmatpush.msra.mxu0 %v133_v2  ;;  %225 = vmatpush.msra.mxu1 %v134_v3  ;;  %v110_v11 = vld [vmem:[#allocation2 + $0x1e8] sm:$0xff]  ;;  %v103_v12 = vld [vmem:[#allocation2 + $0x1b0] sm:$0xff]  ;;  %v104_v13 = vld [vmem:[#allocation2 + $0x1b8] sm:$0xff] }
   0xa   :  { %3067 = vmatpush.msra.mxu2 %v127_v4  ;;  %3083 = vmatpush.msra.mxu3 %v128_v5  ;;  %v97_v14 = vld [vmem:[#allocation2 + $0x180] sm:$0xff]  ;;  %v98_v15 = vld [vmem:[#allocation2 + $0x188] sm:$0xff]  ;;  %v91_v16 = vld [vmem:[#allocation2 + $0x150] sm:$0xff] }
   0xb   :  { %161 = vmatpush.msra.mxu0 %v127_v4  ;;  %226 = vmatpush.msra.mxu1 %v128_v5  ;;  %v92_v17 = vld [vmem:[#allocation2 + $0x158] sm:$0xff]  ;;  %v85_v18 = vld [vmem:[#allocation2 + $0x120] sm:$0xff]  ;;  %v86_v19 = vld [vmem:[#allocation2 + $0x128] sm:$0xff] }
   0xc   :  { %3068 = vmatpush.msra.mxu2 %v121_v6  ;;  %3084 = vmatpush.msra.mxu3 %v122_v7  ;;  %v79_v20 = vld [vmem:[#allocation2 + $0xf0] sm:$0xff]  ;;  %v80_v21 = vld [vmem:[#allocation2 + $0xf8] sm:$0xff]  ;;  %v73_v22 = vld [vmem:[#allocation2 + $0xc0] sm:$0xff] }
   0xd   :  { %162 = vmatpush.msra.mxu0 %v121_v6  ;;  %227 = vmatpush.msra.mxu1 %v122_v7  ;;  %v74_v23 = vld [vmem:[#allocation2 + $0xc8] sm:$0xff]  ;;  %v67_v24 = vld [vmem:[#allocation2 + $0x90] sm:$0xff]  ;;  %v68_v25 = vld [vmem:[#allocation2 + $0x98] sm:$0xff] }
   0xe   :  { %3069 = vmatpush.msra.mxu2 %v115_v8  ;;  %3085 = vmatpush.msra.mxu3 %v116_v9  ;;  %v61_v26 = vld [vmem:[#allocation2 + $0x60] sm:$0xff]  ;;  %v62_v27 = vld [vmem:[#allocation2 + $0x68] sm:$0xff]  ;;  %v55_v28 = vld [vmem:[#allocation2 + $0x30] sm:$0xff] }
   0xf   :  { %163 = vmatpush.msra.mxu0 %v115_v8  ;;  %228 = vmatpush.msra.mxu1 %v116_v9  ;;  %v56_v29 = vld [vmem:[#allocation2 + $0x38] sm:$0xff]  ;;  %v49_v30 = vld [vmem:[#allocation2] sm:$0xff]  ;;  %v50_v31 = vld [vmem:[#allocation2 + $0x8] sm:$0xff] }
  0x10   :  { %3070 = vmatpush.msra.mxu2 %v109_v10  ;;  %3086 = vmatpush.msra.mxu3 %v110_v11  ;;  %v3400_v32 = vld [vmem:[%s6800_s0 + $0x40] sm:$0xff]  ;;  %v135_v35 = vld [vmem:[#allocation2 + $0x2b0] sm:$0xff]  ;;  %v3414_v37 = vld [vmem:[%s6800_s0 + $0x48] sm:$0xff] }
  0x11   :  { %164 = vmatpush.msra.mxu0 %v109_v10  ;;  %229 = vmatpush.msra.mxu1 %v110_v11  ;;  %v3405_v33 = vld [vmem:[%s6800_s0] sm:$0xff]  ;;  %v123_v38 = vld [vmem:[#allocation2 + $0x250] sm:$0xff]  ;;  %v3419_v39 = vld [vmem:[%s6800_s0 + $0x8] sm:$0xff] }
  0x12   :  { %3071 = vmatpush.msra.mxu2 %v103_v12  ;;  %3087 = vmatpush.msra.mxu3 %v104_v13  ;;  %v141_v34 = vld [vmem:[#allocation2 + $0x2e0] sm:$0xff]  ;;  %v111_v41 = vld [vmem:[#allocation2 + $0x1f0] sm:$0xff]  ;;  %v3442_v49 = vld [vmem:[%s6800_s0 + $0x58] sm:$0xff] }
  0x13   :  { %165 = vmatpush.msra.mxu0 %v103_v12  ;;  %230 = vmatpush.msra.mxu1 %v104_v13  ;;  %v129_v36 = vld [vmem:[#allocation2 + $0x280] sm:$0xff]  ;;  %v3428_v43 = vld [vmem:[%s6800_s0 + $0x50] sm:$0xff]  ;;  %v3447_v51 = vld [vmem:[%s6800_s0 + $0x18] sm:$0xff] }
  0x14   :  { %3072 = vmatpush.msra.mxu2 %v97_v14  ;;  %3088 = vmatpush.msra.mxu3 %v98_v15  ;;  %v117_v40 = vld [vmem:[#allocation2 + $0x220] sm:$0xff]  ;;  %v99_v44 = vld [vmem:[#allocation2 + $0x190] sm:$0xff]  ;;  %v142_v53 = vld [vmem:[#allocation2 + $0x2e8] sm:$0xff] }
  0x15   :  { %166 = vmatpush.msra.mxu0 %v97_v14  ;;  %231 = vmatpush.msra.mxu1 %v98_v15  ;;  %v105_v42 = vld [vmem:[#allocation2 + $0x1c0] sm:$0xff]  ;;  %v3433_v45 = vld [vmem:[%s6800_s0 + $0x10] sm:$0xff]  ;;  %v136_v59 = vld [vmem:[#allocation2 + $0x2b8] sm:$0xff] }
  0x16   :  { %3073 = vmatpush.msra.mxu2 %v91_v16  ;;  %3089 = vmatpush.msra.mxu3 %v92_v17  ;;  %v93_v46 = vld [vmem:[#allocation2 + $0x160] sm:$0xff]  ;;  %v87_v47 = vld [vmem:[#allocation2 + $0x130] sm:$0xff]  ;;  %v130_v60 = vld [vmem:[#allocation2 + $0x288] sm:$0xff] }
  0x17   :  { %167 = vmatpush.msra.mxu0 %v91_v16  ;;  %232 = vmatpush.msra.mxu1 %v92_v17  ;;  %v81_v48 = vld [vmem:[#allocation2 + $0x100] sm:$0xff]  ;;  %v75_v50 = vld [vmem:[#allocation2 + $0xd0] sm:$0xff]  ;;  %v124_v61 = vld [vmem:[#allocation2 + $0x258] sm:$0xff] }
  0x18   :  { %3074 = vmatpush.msra.mxu2 %v85_v18  ;;  %3090 = vmatpush.msra.mxu3 %v86_v19  ;;  %v69_v52 = vld [vmem:[#allocation2 + $0xa0] sm:$0xff]  ;;  %v63_v54 = vld [vmem:[#allocation2 + $0x70] sm:$0xff]  ;;  %v118_v62 = vld [vmem:[#allocation2 + $0x228] sm:$0xff] }
  0x19   :  { %168 = vmatpush.msra.mxu0 %v85_v18  ;;  %233 = vmatpush.msra.mxu1 %v86_v19  ;;  %v57_v55 = vld [vmem:[#allocation2 + $0x40] sm:$0xff]  ;;  %v51_v57 = vld [vmem:[#allocation2 + $0x10] sm:$0xff]  ;;  %v3470_v63 = vld [vmem:[%s6800_s0 + $0x68] sm:$0xff] }
  0x1a   :  { %3075 = vmatpush.msra.mxu2 %v79_v20  ;;  %3091 = vmatpush.msra.mxu3 %v80_v21  ;;  %v3456_v56 = vld [vmem:[%s6800_s0 + $0x60] sm:$0xff]  ;;  %v3475_v0 = vld [vmem:[%s6800_s0 + $0x28] sm:$0xff]  ;;  %v112_v1 = vld [vmem:[#allocation2 + $0x1f8] sm:$0xff] }
  0x1b   :  { %169 = vmatpush.msra.mxu0 %v79_v20  ;;  %234 = vmatpush.msra.mxu1 %v80_v21  ;;  %v3461_v58 = vld [vmem:[%s6800_s0 + $0x20] sm:$0xff]  ;;  %v106_v2 = vld [vmem:[#allocation2 + $0x1c8] sm:$0xff]  ;;  %v100_v3 = vld [vmem:[#allocation2 + $0x198] sm:$0xff] }
  0x1c   :  { %3076 = vmatpush.msra.mxu2 %v73_v22  ;;  %3092 = vmatpush.msra.mxu3 %v74_v23  ;;  %v94_v4 = vld [vmem:[#allocation2 + $0x168] sm:$0xff]  ;;  %v3484_v5 = vld [vmem:[%s6800_s0 + $0x70] sm:$0xff]  ;;  %v88_v7 = vld [vmem:[#allocation2 + $0x138] sm:$0xff] }
  0x1d   :  { %170 = vmatpush.msra.mxu0 %v73_v22  ;;  %235 = vmatpush.msra.mxu1 %v74_v23  ;;  %v3489_v6 = vld [vmem:[%s6800_s0 + $0x30] sm:$0xff]  ;;  %v82_v8 = vld [vmem:[#allocation2 + $0x108] sm:$0xff]  ;;  %v76_v9 = vld [vmem:[#allocation2 + $0xd8] sm:$0xff] }
  0x1e   :  { %3077 = vmatpush.msra.mxu2 %v67_v24  ;;  %3093 = vmatpush.msra.mxu3 %v68_v25  ;;  %v70_v10 = vld [vmem:[#allocation2 + $0xa8] sm:$0xff]  ;;  %v3498_v11 = vld [vmem:[%s6800_s0 + $0x78] sm:$0xff] }
  0x1f   :  { %171 = vmatpush.msra.mxu0 %v67_v24  ;;  %236 = vmatpush.msra.mxu1 %v68_v25  ;;  %v3503_v12 = vld [vmem:[%s6800_s0 + $0x38] sm:$0xff]  ;;  %v58_v14 = vld [vmem:[#allocation2 + $0x48] sm:$0xff] }
  0x20   :  { %3078 = vmatpush.msra.mxu2 %v61_v26  ;;  %3094 = vmatpush.msra.mxu3 %v62_v27  ;;  %v64_v13 = vld [vmem:[#allocation2 + $0x78] sm:$0xff] }
  0x21   :  { %172 = vmatpush.msra.mxu0 %v61_v26  ;;  %237 = vmatpush.msra.mxu1 %v62_v27  ;;  %v52_v15 = vld [vmem:[#allocation2 + $0x18] sm:$0xff] }
  0x22   :  { %3079 = vmatpush.msra.mxu2 %v55_v28  ;;  %3095 = vmatpush.msra.mxu3 %v56_v29 }
  0x23   :  { %173 = vmatpush.msra.mxu0 %v55_v28  ;;  %238 = vmatpush.msra.mxu1 %v56_v29 }
  0x24   :  { %3080 = vmatpush.msra.mxu2 %v49_v30  ;;  %3096 = vmatpush.msra.mxu3 %v50_v31 }
  0x25   :  { %199 = vmatmul.f32.vlgmr.msra.gmra.mxu2 %v3400_v32  ;;  %264 = vmatmul.f32.vlgmr.msra.gmra.mxu3 %v3400_v32 }
  0x26   :  { %174 = vmatpush.msra.mxu0 %v49_v30  ;;  %239 = vmatpush.msra.mxu1 %v50_v31  ;;  %v143_v30 = vld [vmem:[#allocation2 + $0x2f0] sm:$0xff] }
  0x27   :  { %175 = vmatmul.f32.vlgmr.msra.gmra.mxu0 %v3405_v33  ;;  %240 = vmatmul.f32.vlgmr.msra.gmra.mxu1 %v3405_v33 }
  0x28   :  { %289 = vmatpush.msrb.mxu2 %v141_v34  ;;  %354 = vmatpush.msrb.mxu3 %v142_v53  ;;  %v101_v53 = vld [vmem:[#allocation2 + $0x1a0] sm:$0xff] }
  0x29   :  { %419 = vmatpush.msrb.mxu0 %v143_v30 }
  0x2a   :  { %290 = vmatpush.msrb.mxu2 %v135_v35  ;;  %355 = vmatpush.msrb.mxu3 %v136_v59  ;;  %v137_v35 = vld [vmem:[#allocation2 + $0x2c0] sm:$0xff] }
  0x2b   :  { %420 = vmatpush.msrb.mxu0 %v137_v35 }
  0x2c   :  { %291 = vmatpush.msrb.mxu2 %v129_v36  ;;  %356 = vmatpush.msrb.mxu3 %v130_v60  ;;  %v131_v36 = vld [vmem:[#allocation2 + $0x290] sm:$0xff] }
  0x2d   :  { %202 = vmatmul.f32.gmra.mxu2 %v3414_v37  ;;  %267 = vmatmul.f32.gmra.mxu3 %v3414_v37 }
  0x2e   :  { %292 = vmatpush.msrb.mxu2 %v123_v38  ;;  %357 = vmatpush.msrb.mxu3 %v124_v61 }
  0x2f   :  { %178 = vmatmul.f32.gmra.mxu0 %v3419_v39  ;;  %243 = vmatmul.f32.gmra.mxu1 %v3419_v39 }
  0x30   :  { %293 = vmatpush.msrb.mxu2 %v117_v40  ;;  %358 = vmatpush.msrb.mxu3 %v118_v62 }
  0x31   :  { %421 = vmatpush.msrb.mxu0 %v131_v36 }
  0x32   :  { %294 = vmatpush.msrb.mxu2 %v111_v41  ;;  %359 = vmatpush.msrb.mxu3 %v112_v1  ;;  %v125_v41 = vld [vmem:[#allocation2 + $0x260] sm:$0xff] }
  0x33   :  { %422 = vmatpush.msrb.mxu0 %v125_v41  ;;  %v77_v1 = vld [vmem:[#allocation2 + $0xe0] sm:$0xff] }
  0x34   :  { %295 = vmatpush.msrb.mxu2 %v105_v42  ;;  %360 = vmatpush.msrb.mxu3 %v106_v2  ;;  %v119_v42 = vld [vmem:[#allocation2 + $0x230] sm:$0xff] }
  0x35   :  { %205 = vmatmul.f32.gmra.mxu2 %v3428_v43  ;;  %270 = vmatmul.f32.gmra.mxu3 %v3428_v43  ;;  %v71_v2 = vld [vmem:[#allocation2 + $0xb0] sm:$0xff] }
  0x36   :  { %296 = vmatpush.msrb.mxu2 %v99_v44  ;;  %361 = vmatpush.msrb.mxu3 %v100_v3  ;;  %v113_v44 = vld [vmem:[#allocation2 + $0x200] sm:$0xff] }
  0x37   :  { %181 = vmatmul.f32.gmra.mxu0 %v3433_v45  ;;  %246 = vmatmul.f32.gmra.mxu1 %v3433_v45  ;;  %v65_v3 = vld [vmem:[#allocation2 + $0x80] sm:$0xff] }
  0x38   :  { %297 = vmatpush.msrb.mxu2 %v93_v46  ;;  %362 = vmatpush.msrb.mxu3 %v94_v4  ;;  %v3582_v4 = vld [vmem:[%s6803_s3] sm:$0x3f] }
  0x39   :  { %423 = vmatpush.msrb.mxu0 %v119_v42 }
  0x3a   :  { %298 = vmatpush.msrb.mxu2 %v87_v47  ;;  %363 = vmatpush.msrb.mxu3 %v88_v7  ;;  %v3585_v7 = vperm.slane %v3582_v4, 1 }
  0x3b   :  { %424 = vmatpush.msrb.mxu0 %v113_v44 }
  0x3c   :  { %299 = vmatpush.msrb.mxu2 %v81_v48  ;;  %364 = vmatpush.msrb.mxu3 %v82_v8  ;;  %v107_v48 = vld [vmem:[#allocation2 + $0x1d0] sm:$0xff] }
  0x3d   :  { %208 = vmatmul.f32.gmra.mxu2 %v3442_v49  ;;  %273 = vmatmul.f32.gmra.mxu3 %v3442_v49  ;;  %v59_v8 = vld [vmem:[#allocation2 + $0x50] sm:$0xff] }
  0x3e   :  { %300 = vmatpush.msrb.mxu2 %v75_v50  ;;  %365 = vmatpush.msrb.mxu3 %v76_v9  ;;  %v3590_v9 = vperm.slane %v3582_v4, 0 }
  0x3f   :  { %184 = vmatmul.f32.gmra.mxu0 %v3447_v51  ;;  %249 = vmatmul.f32.gmra.mxu1 %v3447_v51 }
  0x40   :  { %301 = vmatpush.msrb.mxu2 %v69_v52  ;;  %366 = vmatpush.msrb.mxu3 %v70_v10 }
  0x41   :  { %425 = vmatpush.msrb.mxu0 %v107_v48 }
  0x42   :  { %302 = vmatpush.msrb.mxu2 %v63_v54  ;;  %367 = vmatpush.msrb.mxu3 %v64_v13  ;;  %v95_v54 = vld [vmem:[#allocation2 + $0x170] sm:$0xff] }
  0x43   :  { %426 = vmatpush.msrb.mxu0 %v101_v53 }
  0x44   :  { %303 = vmatpush.msrb.mxu2 %v57_v55  ;;  %368 = vmatpush.msrb.mxu3 %v58_v14  ;;  %v89_v55 = vld [vmem:[#allocation2 + $0x140] sm:$0xff] }
  0x45   :  { %211 = vmatmul.f32.gmra.mxu2 %v3456_v56  ;;  %276 = vmatmul.f32.gmra.mxu3 %v3456_v56  ;;  %v53_v14 = vld [vmem:[#allocation2 + $0x20] sm:$0xff] }
  0x46   :  { %304 = vmatpush.msrb.mxu2 %v51_v57  ;;  %369 = vmatpush.msrb.mxu3 %v52_v15  ;;  %v83_v57 = vld [vmem:[#allocation2 + $0x110] sm:$0xff] }
  0x47   :  { %187 = vmatmul.f32.gmra.mxu0 %v3461_v58  ;;  %252 = vmatmul.f32.gmra.mxu1 %v3461_v58 }
  0x48   :  { %427 = vmatpush.msrb.mxu0 %v95_v54 }
  0x4a   :  { %428 = vmatpush.msrb.mxu0 %v89_v55 }
  0x4c   :  { %429 = vmatpush.msrb.mxu0 %v83_v57 }
  0x4d   :  { %214 = vmatmul.f32.gmra.mxu2 %v3470_v63  ;;  %279 = vmatmul.f32.gmra.mxu3 %v3470_v63 }
  0x4e   :  { %430 = vmatpush.msrb.mxu0 %v77_v1 }
  0x4f   :  { %190 = vmatmul.f32.gmra.mxu0 %v3475_v0  ;;  %255 = vmatmul.f32.gmra.mxu1 %v3475_v0 }
  0x50   :  { %431 = vmatpush.msrb.mxu0 %v71_v2 }
  0x52   :  { %432 = vmatpush.msrb.mxu0 %v65_v3 }
  0x54   :  { %433 = vmatpush.msrb.mxu0 %v59_v8 }
  0x55   :  { %217 = vmatmul.f32.gmra.mxu2 %v3484_v5  ;;  %282 = vmatmul.f32.gmra.mxu3 %v3484_v5 }
  0x56   :  { %434 = vmatpush.msrb.mxu0 %v53_v14 }
  0x57   :  { %193 = vmatmul.f32.gmra.mxu0 %v3489_v6  ;;  %258 = vmatmul.f32.gmra.mxu1 %v3489_v6 }
  0x5d   :  { %220 = vmatmul.f32.gmra.mxu2 %v3498_v11  ;;  %285 = vmatmul.f32.gmra.mxu3 %v3498_v11 }
  0x5f   :  { %196 = vmatmul.f32.gmra.mxu0 %v3503_v12  ;;  %261 = vmatmul.f32.gmra.mxu1 %v3503_v12 }
  0x65   :  { %305 = vmatmul.f32.vlgmr.msrb.gmra.mxu2 %v3405_v33  ;;  %370 = vmatmul.f32.vlgmr.msrb.gmra.mxu3 %v3405_v33 }
  0x67   :  { %435 = vmatmul.f32.vlgmr.msrb.gmra.mxu0 %v3405_v33 }
  0x6d   :  { %308 = vmatmul.f32.gmra.mxu2 %v3419_v39  ;;  %373 = vmatmul.f32.gmra.mxu3 %v3419_v39 }
  0x6f   :  { %438 = vmatmul.f32.gmra.mxu0 %v3419_v39 }
  0x75   :  { %311 = vmatmul.f32.gmra.mxu2 %v3433_v45  ;;  %376 = vmatmul.f32.gmra.mxu3 %v3433_v45 }
  0x77   :  { %441 = vmatmul.f32.gmra.mxu0 %v3433_v45 }
  0x7d   :  { %314 = vmatmul.f32.gmra.mxu2 %v3447_v51  ;;  %379 = vmatmul.f32.gmra.mxu3 %v3447_v51 }
  0x7f   :  { %444 = vmatmul.f32.gmra.mxu0 %v3447_v51 }
  0x85   :  { %317 = vmatmul.f32.gmra.mxu2 %v3461_v58  ;;  %382 = vmatmul.f32.gmra.mxu3 %v3461_v58 }
  0x87   :  { %447 = vmatmul.f32.gmra.mxu0 %v3461_v58 }
  0x8d   :  { %320 = vmatmul.f32.gmra.mxu2 %v3475_v0  ;;  %385 = vmatmul.f32.gmra.mxu3 %v3475_v0 }
  0x8f   :  { %450 = vmatmul.f32.gmra.mxu0 %v3475_v0 }
  0x95   :  { %323 = vmatmul.f32.gmra.mxu2 %v3489_v6  ;;  %388 = vmatmul.f32.gmra.mxu3 %v3489_v6 }
  0x97   :  { %453 = vmatmul.f32.gmra.mxu0 %v3489_v6 }
  0x9d   :  { %326 = vmatmul.f32.gmra.mxu2 %v3503_v12  ;;  %391 = vmatmul.f32.gmra.mxu3 %v3503_v12 }
  0x9f   :  { %456 = vmatmul.f32.gmra.mxu0 %v3503_v12 }
  0xa4   :  { %v3526_v16 = vpop.f32.mrf.mxu0  ;;  %v3528_v17 = vpop.f32.mrf.mxu1 }
  0xa5   :  { %329 = vmatmul.f32.gmra.mxu2 %v3400_v32  ;;  %394 = vmatmul.f32.gmra.mxu3 %v3400_v32 }
  0xa7   :  { %459 = vmatmul.f32.gmra.mxu0 %v3400_v32 }
  0xa8   :  { %v3531_v18 = vpop.f32.mrf.mxu2  ;;  %v3533_v19 = vpop.f32.mrf.mxu3 }
  0xac   :  { %v3537_v20 = vpop.f32.mrf.mxu0  ;;  %v3539_v21 = vpop.f32.mrf.mxu1 }
  0xad   :  { %332 = vmatmul.f32.gmra.mxu2 %v3414_v37  ;;  %397 = vmatmul.f32.gmra.mxu3 %v3414_v37 }
  0xaf   :  { %462 = vmatmul.f32.gmra.mxu0 %v3414_v37 }
  0xb0   :  { %v3541_v22 = vpop.f32.mrf.mxu2  ;;  %v3543_v23 = vpop.f32.mrf.mxu3 }
  0xb4   :  { %v3551_v26 = vpop.f32.mrf.mxu0  ;;  %v3553_v27 = vpop.f32.mrf.mxu1 }
  0xb5   :  { %335 = vmatmul.f32.gmra.mxu2 %v3428_v43  ;;  %400 = vmatmul.f32.gmra.mxu3 %v3428_v43 }
  0xb7   :  { %465 = vmatmul.f32.gmra.mxu0 %v3428_v43 }
  0xb8   :  { %v3547_v24 = vpop.f32.mrf.mxu2  ;;  %v3549_v25 = vpop.f32.mrf.mxu3 }
  0xbc   :  { %v3561_v31 = vpop.f32.mrf.mxu0  ;;  %v3563_v34 = vpop.f32.mrf.mxu1 }
  0xbd   :  { %338 = vmatmul.f32.gmra.mxu2 %v3442_v49  ;;  %403 = vmatmul.f32.gmra.mxu3 %v3442_v49  ;;  %v186_v14 = vadd.f32 %v3561_v31, %v3590_v9  ;;  %v180_v31 = vadd.f32 %v3537_v20, %v3590_v9  ;;  %v549_v20 = vld [vmem:[%s6801_s1] sm:$0xff] }
  0xbf   :  { %468 = vmatmul.f32.gmra.mxu0 %v3442_v49 }
  0xc0   :  { %v3557_v28 = vpop.f32.mrf.mxu2  ;;  %v3559_v29 = vpop.f32.mrf.mxu3 }
  0xc1   :  { %v275_v54 = vadd.f32 %v3559_v29, %v3585_v7  ;;  %v207_v29 = vadd.f32 %v3547_v24, %v3590_v9 }
  0xc4   :  { %v3568_v46 = vpop.f32.mrf.mxu0  ;;  %v3570_v47 = vpop.f32.mrf.mxu1 }
  0xc5   :  { %341 = vmatmul.f32.gmra.mxu2 %v3456_v56  ;;  %406 = vmatmul.f32.gmra.mxu3 %v3456_v56 }
  0xc7   :  { %471 = vmatmul.f32.gmra.mxu0 %v3456_v56 }
  0xc8   :  { %v212_v38 = vpop.f32.mrf.mxu2  ;;  %v277_v40 = vpop.f32.mrf.mxu3 }
  0xc9   :  { %v278_v48 = vadd.f32 %v277_v40, %v3585_v7  ;;  %v213_v55 = vadd.f32 %v212_v38, %v3590_v9  ;;  %v210_v40 = vadd.f32 %v3557_v28, %v3590_v9  ;;  %v204_v28 = vadd.f32 %v3541_v22, %v3590_v9 }
  0xcc   :  { %v3575_v59 = vpop.f32.mrf.mxu0  ;;  %v3577_v60 = vpop.f32.mrf.mxu1 }
  0xcd   :  { %344 = vmatmul.f32.gmra.mxu2 %v3470_v63  ;;  %409 = vmatmul.f32.gmra.mxu3 %v3470_v63  ;;  %v192_v22 = vadd.f32 %v3575_v59, %v3590_v9  ;;  %v251_v59 = vadd.f32 %v3563_v34, %v3585_v7  ;;  %v245_v34 = vadd.f32 %v3539_v21, %v3585_v7  ;;  %v3032_v21 = vld [vmem:[%s6801_s1 + $0x80] sm:$0xff] }
  0xcf   :  { %474 = vmatmul.f32.gmra.mxu0 %v3470_v63 }
  0xd0   :  { %v215_v50 = vpop.f32.mrf.mxu2  ;;  %v280_v52 = vpop.f32.mrf.mxu3 }
  0xd1   :  { %v281_v42 = vadd.f32 %v280_v52, %v3585_v7  ;;  %v216_v53 = vadd.f32 %v215_v50, %v3590_v9  ;;  %v269_v50 = vadd.f32 %v3543_v23, %v3585_v7  ;;  %v201_v23 = vadd.f32 %v3531_v18, %v3590_v9 }
  0xd2   :  { %v257_v18 = vadd.f32 %v3577_v60, %v3585_v7 }
  0xd4   :  { %v194_v36 = vpop.f32.mrf.mxu0  ;;  %v259_v41 = vpop.f32.mrf.mxu1 }
  0xd5   :  { %347 = vmatmul.f32.gmra.mxu2 %v3484_v5  ;;  %412 = vmatmul.f32.gmra.mxu3 %v3484_v5  ;;  %v260_v8 = vadd.f32 %v259_v41, %v3585_v7  ;;  %v3034_v41 = vld [vmem:[%s6801_s1 + $0x90] sm:$0xff] }
  0xd7   :  { %477 = vmatmul.f32.gmra.mxu0 %v3484_v5 }
  0xd8   :  { %v218_v61 = vpop.f32.mrf.mxu2  ;;  %v283_v62 = vpop.f32.mrf.mxu3 }
  0xd9   :  { %v284_v15 = vadd.f32 %v283_v62, %v3585_v7  ;;  %v219_v44 = vadd.f32 %v218_v61, %v3590_v9  ;;  %v272_v61 = vadd.f32 %v3549_v25, %v3585_v7  ;;  %v266_v25 = vadd.f32 %v3533_v19, %v3585_v7 }
  0xda   :  { %v195_v19 = vadd.f32 %v194_v36, %v3590_v9  ;;  %v551_v36 = vld [vmem:[%s6801_s1 + $0x10] sm:$0xff] }
  0xdc   :  { %v197_v38 = vpop.f32.mrf.mxu0  ;;  %v262_v62 = vpop.f32.mrf.mxu1 }
  0xdd   :  { %350 = vmatmul.f32.gmra.mxu2 %v3498_v11  ;;  %415 = vmatmul.f32.gmra.mxu3 %v3498_v11  ;;  %v198_v24 = vadd.f32 %v197_v38, %v3590_v9  ;;  %v263_v1 = vadd.f32 %v262_v62, %v3585_v7  ;;  %v3037_v38 = vld [vmem:[%s6801_s1 + $0xa8] sm:$0xff] }
  0xdf   :  { %480 = vmatmul.f32.gmra.mxu0 %v3498_v11 }
  0xe0   :  { %v221_v10 = vpop.f32.mrf.mxu2  ;;  %v286_v13 = vpop.f32.mrf.mxu3 }
  0xe1   :  { %v222_v30 = vadd.f32 %v221_v10, %v3590_v9  ;;  %v287_v35 = vadd.f32 %v286_v13, %v3585_v7  ;;  %v189_v10 = vadd.f32 %v3568_v46, %v3590_v9  ;;  %v254_v13 = vadd.f32 %v3570_v47, %v3585_v7 }
  0xe2   :  { %v248_v46 = vadd.f32 %v3553_v27, %v3585_v7  ;;  %v242_v27 = vadd.f32 %v3528_v17, %v3585_v7  ;;  %v550_v17 = vld [vmem:[%s6801_s1 + $0x8] sm:$0xff] }
  0xe3   :  { %565 = vmatpush.msra.mxu2 %v222_v30  ;;  %887 = vmatpush.msra.mxu3 %v287_v35  ;;  %v3033_v7 = vld [vmem:[%s6801_s1 + $0x88] sm:$0xff] }
  0xe5   :  { %566 = vmatpush.msra.mxu2 %v219_v44  ;;  %888 = vmatpush.msra.mxu3 %v284_v15  ;;  %v183_v15 = vadd.f32 %v3551_v26, %v3590_v9  ;;  %v177_v26 = vadd.f32 %v3526_v16, %v3590_v9  ;;  %v552_v44 = vld [vmem:[%s6801_s1 + $0x18] sm:$0xff] }
  0xe7   :  { %567 = vmatpush.msra.mxu2 %v216_v53  ;;  %889 = vmatpush.msra.mxu3 %v281_v42 }
  0xe8   :  { %v3603_v52 = vpop.f32.mrf.mxu2  ;;  %v3605_v57 = vpop.f32.mrf.mxu3 }
  0xe9   :  { %568 = vmatpush.msra.mxu2 %v213_v55  ;;  %890 = vmatpush.msra.mxu3 %v278_v48  ;;  %v3035_v48 = vld [vmem:[%s6801_s1 + $0x98] sm:$0xff]  ;;  %v553_v55 = vld [vmem:[%s6801_s1 + $0x20] sm:$0xff] }
  0xeb   :  { %569 = vmatpush.msra.mxu2 %v210_v40  ;;  %891 = vmatpush.msra.mxu3 %v275_v54 }
  0xed   :  { %570 = vmatpush.msra.mxu2 %v207_v29  ;;  %892 = vmatpush.msra.mxu3 %v272_v61  ;;  %v3036_v61 = vld [vmem:[%s6801_s1 + $0xa0] sm:$0xff]  ;;  %v554_v29 = vld [vmem:[%s6801_s1 + $0x28] sm:$0xff] }
  0xef   :  { %571 = vmatpush.msra.mxu2 %v204_v28  ;;  %893 = vmatpush.msra.mxu3 %v269_v50  ;;  %v555_v28 = vld [vmem:[%s6801_s1 + $0x30] sm:$0xff] }
  0xf0   :  { %v3624_v2 = vpop.f32.mrf.mxu2  ;;  %v3626_v3 = vpop.f32.mrf.mxu3 }
  0xf1   :  { %572 = vmatpush.msra.mxu2 %v201_v23  ;;  %894 = vmatpush.msra.mxu3 %v266_v25  ;;  %v3038_v23 = vld [vmem:[%s6801_s1 + $0xb0] sm:$0xff] }
  0xf3   :  { %573 = vmatpush.msra.mxu2 %v198_v24  ;;  %895 = vmatpush.msra.mxu3 %v263_v1 }
  0xf5   :  { %574 = vmatpush.msra.mxu2 %v195_v19  ;;  %896 = vmatpush.msra.mxu3 %v260_v8  ;;  %v556_v19 = vld [vmem:[%s6801_s1 + $0x38] sm:$0xff] }
  0xf6   :  { %v3039_v8 = vld [vmem:[%s6801_s1 + $0xb8] sm:$0xff] }
  0xf7   :  { %575 = vmatpush.msra.mxu2 %v192_v22  ;;  %897 = vmatpush.msra.mxu3 %v257_v18  ;;  %v557_v18 = vld [vmem:[%s6801_s1 + $0x40] sm:$0xff] }
  0xf8   :  { %v3643_v60 = vpop.f32.mrf.mxu2  ;;  %v3649_v47 = vpop.f32.mrf.mxu3 }
  0xf9   :  { %576 = vmatpush.msra.mxu2 %v189_v10  ;;  %898 = vmatpush.msra.mxu3 %v254_v13  ;;  %v3040_v10 = vld [vmem:[%s6801_s1 + $0xc0] sm:$0xff] }
  0xfb   :  { %577 = vmatpush.msra.mxu2 %v186_v14  ;;  %899 = vmatpush.msra.mxu3 %v251_v59  ;;  %v144_v59 = vld [vmem:[#allocation2 + $0x2f8] sm:$0xff] }
  0xfc   :  { %484 = vmatpush.msrb.mxu1 %v144_v59  ;;  %v60_v59 = vld [vmem:[#allocation2 + $0x58] sm:$0xff] }
  0xfd   :  { %578 = vmatpush.msra.mxu2 %v183_v15  ;;  %900 = vmatpush.msra.mxu3 %v248_v46  ;;  %v138_v15 = vld [vmem:[#allocation2 + $0x2c8] sm:$0xff]  ;;  %v132_v46 = vld [vmem:[#allocation2 + $0x298] sm:$0xff] }
  0xfe   :  { %485 = vmatpush.msrb.mxu1 %v138_v15 }
  0xff   :  { %579 = vmatpush.msra.mxu2 %v180_v31  ;;  %901 = vmatpush.msra.mxu3 %v245_v34  ;;  %v126_v31 = vld [vmem:[#allocation2 + $0x268] sm:$0xff] }
 0x100   :  { %v3666_v30 = vpop.f32.mrf.mxu2  ;;  %v3668_v16 = vpop.f32.mrf.mxu3  ;;  %486 = vmatpush.msrb.mxu1 %v132_v46  ;;  %v558_v34 = vld [vmem:[%s6801_s1 + $0x48] sm:$0xff] }
 0x101   :  { %580 = vmatpush.msra.mxu2 %v177_v26  ;;  %902 = vmatpush.msra.mxu3 %v242_v27  ;;  %v3041_v26 = vld [vmem:[%s6801_s1 + $0xc8] sm:$0xff]  ;;  %v120_v27 = vld [vmem:[#allocation2 + $0x238] sm:$0xff] }
 0x102   :  { %581 = vmatmul.f32.vlgmr.msra.gmra.mxu2 %v549_v20  ;;  %903 = vmatmul.f32.vlgmr.msra.gmra.mxu3 %v3032_v21  ;;  %v54_v46 = vld [vmem:[#allocation2 + $0x28] sm:$0xff] }
 0x103   :  { %487 = vmatpush.msrb.mxu1 %v126_v31  ;;  %v149_v31 = vperm.slane %v3582_v4, 2 }
 0x105   :  { %488 = vmatpush.msrb.mxu1 %v120_v27 }
 0x108   :  { %v3677_v9 = vpop.f32.mrf.mxu2  ;;  %v3680_v35 = vpop.f32.mrf.mxu3 }
 0x10a   :  { %584 = vmatmul.f32.gmra.mxu2 %v550_v17  ;;  %906 = vmatmul.f32.gmra.mxu3 %v3033_v7  ;;  %v114_v17 = vld [vmem:[#allocation2 + $0x208] sm:$0xff]  ;;  %v108_v7 = vld [vmem:[#allocation2 + $0x1d8] sm:$0xff] }
 0x10b   :  { %489 = vmatpush.msrb.mxu1 %v114_v17 }
 0x10d   :  { %490 = vmatpush.msrb.mxu1 %v108_v7  ;;  %v3790_v7 = vpop.f32.mrf.mxu0 }
 0x110   :  { %v3688_v42 = vpop.f32.mrf.mxu2  ;;  %v3697_v53 = vpop.f32.mrf.mxu3 }
 0x112   :  { %587 = vmatmul.f32.gmra.mxu2 %v551_v36  ;;  %909 = vmatmul.f32.gmra.mxu3 %v3034_v41  ;;  %v102_v36 = vld [vmem:[#allocation2 + $0x1a8] sm:$0xff]  ;;  %v559_v41 = vld [vmem:[%s6801_s1 + $0x50] sm:$0xff] }
 0x113   :  { %491 = vmatpush.msrb.mxu1 %v102_v36 }
 0x118   :  { %v3699_v54 = vpop.f32.mrf.mxu2  ;;  %v3710_v50 = vpop.f32.mrf.mxu3 }
 0x11a   :  { %590 = vmatmul.f32.gmra.mxu2 %v552_v44  ;;  %912 = vmatmul.f32.gmra.mxu3 %v3035_v48  ;;  %v3042_v44 = vld [vmem:[%s6801_s1 + $0xd0] sm:$0xff]  ;;  %v96_v48 = vld [vmem:[#allocation2 + $0x178] sm:$0xff] }
 0x11b   :  { %492 = vmatpush.msrb.mxu1 %v96_v48  ;;  %v562_v48 = vld [vmem:[%s6801_s1 + $0x68] sm:$0xff] }
 0x120   :  { %v3708_v40 = vpop.f32.mrf.mxu2  ;;  %v3721_v25 = vpop.f32.mrf.mxu3 }
 0x122   :  { %593 = vmatmul.f32.gmra.mxu2 %v553_v55  ;;  %915 = vmatmul.f32.gmra.mxu3 %v3036_v61  ;;  %v90_v61 = vld [vmem:[#allocation2 + $0x148] sm:$0xff] }
 0x123   :  { %493 = vmatpush.msrb.mxu1 %v90_v61  ;;  %v3045_v61 = vld [vmem:[%s6801_s1 + $0xe8] sm:$0xff] }
 0x128   :  { %v3719_v62 = vpop.f32.mrf.mxu2  ;;  %v3733_v1 = vpop.f32.mrf.mxu3 }
 0x12a   :  { %596 = vmatmul.f32.gmra.mxu2 %v554_v29  ;;  %918 = vmatmul.f32.gmra.mxu3 %v3037_v38  ;;  %v84_v38 = vld [vmem:[#allocation2 + $0x118] sm:$0xff] }
 0x12b   :  { %494 = vmatpush.msrb.mxu1 %v84_v38 }
 0x130   :  { %v3730_v24 = vpop.f32.mrf.mxu2  ;;  %v3750_v13 = vpop.f32.mrf.mxu3 }
 0x132   :  { %599 = vmatmul.f32.gmra.mxu2 %v555_v28  ;;  %921 = vmatmul.f32.gmra.mxu3 %v3038_v23  ;;  %v78_v28 = vld [vmem:[#allocation2 + $0xe8] sm:$0xff]  ;;  %v560_v23 = vld [vmem:[%s6801_s1 + $0x58] sm:$0xff] }
 0x133   :  { %495 = vmatpush.msrb.mxu1 %v78_v28  ;;  %v439_v28 = vpop.f32.mrf.mxu0 }
 0x138   :  { %v3741_v22 = vpop.f32.mrf.mxu2  ;;  %v3761_v21 = vpop.f32.mrf.mxu3 }
 0x13a   :  { %602 = vmatmul.f32.gmra.mxu2 %v556_v19  ;;  %924 = vmatmul.f32.gmra.mxu3 %v3039_v8  ;;  %v3043_v19 = vld [vmem:[%s6801_s1 + $0xd8] sm:$0xff] }
 0x13b   :  { %v72_v8 = vld [vmem:[#allocation2 + $0xb8] sm:$0xff] }
 0x13c   :  { %496 = vmatpush.msrb.mxu1 %v72_v8  ;;  %v322_v8 = vadd.f32 %v3688_v42, %v149_v31  ;;  %v313_v42 = vadd.f32 %v3643_v60, %v149_v31 }
 0x140   :  { %v3752_v14 = vpop.f32.mrf.mxu2  ;;  %v3770_v29 = vpop.f32.mrf.mxu3 }
 0x141   :  { %v340_v38 = vadd.f32 %v3752_v14, %v149_v31  ;;  %v328_v14 = vadd.f32 %v3708_v40, %v149_v31  ;;  %v3047_v40 = vld [vmem:[%s6801_s1 + $0xf8] sm:$0xff] }
 0x142   :  { %605 = vmatmul.f32.gmra.mxu2 %v557_v18  ;;  %927 = vmatmul.f32.gmra.mxu3 %v3040_v10  ;;  %v66_v10 = vld [vmem:[#allocation2 + $0x88] sm:$0xff] }
 0x143   :  { %497 = vmatpush.msrb.mxu1 %v66_v10  ;;  %v310_v10 = vadd.f32 %v3624_v2, %v149_v31 }
 0x145   :  { %498 = vmatpush.msrb.mxu1 %v60_v59 }
 0x147   :  { %499 = vmatpush.msrb.mxu1 %v54_v46  ;;  %v307_v46 = vadd.f32 %v3603_v52, %v149_v31  ;;  %v3847_v52 = vperm.slane %v3582_v4, 4 }
 0x148   :  { %v342_v20 = vpop.f32.mrf.mxu2  ;;  %v3780_v15 = vpop.f32.mrf.mxu3  ;;  %500 = vmatmul.f32.vlgmr.msrb.gmra.mxu1 %v3405_v33 }
 0x14a   :  { %608 = vmatmul.f32.gmra.mxu2 %v558_v34  ;;  %930 = vmatmul.f32.gmra.mxu3 %v3041_v26  ;;  %v561_v34 = vld [vmem:[%s6801_s1 + $0x60] sm:$0xff] }
 0x14b   :  { %v3044_v26 = vld [vmem:[%s6801_s1 + $0xe0] sm:$0xff] }
 0x150   :  { %v345_v55 = vpop.f32.mrf.mxu2  ;;  %v3798_v33 = vpop.f32.mrf.mxu3  ;;  %503 = vmatmul.f32.gmra.mxu1 %v3419_v39  ;;  %v3046_v39 = vld [vmem:[%s6801_s1 + $0xf0] sm:$0xff] }
 0x152   :  { %611 = vmatmul.f32.gmra.mxu2 %v559_v41  ;;  %933 = vmatmul.f32.gmra.mxu3 %v3042_v44  ;;  %v346_v41 = vadd.f32 %v345_v55, %v149_v31  ;;  %v343_v44 = vadd.f32 %v342_v20, %v149_v31  ;;  %v337_v20 = vadd.f32 %v3741_v22, %v149_v31 }
 0x153   :  { %v334_v55 = vadd.f32 %v3730_v24, %v149_v31  ;;  %v3816_v24 = vpop.f32.mrf.mxu0 }
 0x158   :  { %v348_v18 = vpop.f32.mrf.mxu2  ;;  %506 = vmatmul.f32.gmra.mxu1 %v3433_v45  ;;  %v3813_v22 = vpop.f32.mrf.mxu3  ;;  %v564_v45 = vld [vmem:[%s6801_s1 + $0x78] sm:$0xff] }
 0x159   :  { %v349_v36 = vadd.f32 %v348_v18, %v149_v31  ;;  %v319_v18 = vadd.f32 %v3677_v9, %v149_v31 }
 0x15a   :  { %614 = vmatmul.f32.gmra.mxu2 %v560_v23  ;;  %936 = vmatmul.f32.gmra.mxu3 %v3043_v19  ;;  %v331_v23 = vadd.f32 %v3719_v62, %v149_v31  ;;  %v563_v19 = vld [vmem:[%s6801_s1 + $0x70] sm:$0xff]  ;;  %v325_v62 = vadd.f32 %v3699_v54, %v149_v31  ;;  %v316_v54 = vadd.f32 %v3666_v30, %v149_v31  ;;  %v3839_v30 = vperm.slane %v3582_v4, 3 }
 0x15b   :  { %v3832_v59 = vpop.f32.mrf.mxu0 }
 0x15c   :  { %v372_v2 = vadd.f32 %v3605_v57, %v3839_v30  ;;  %v437_v57 = vadd.f32 %v3790_v7, %v3847_v52 }
 0x160   :  { %v351_v27 = vpop.f32.mrf.mxu2  ;;  %509 = vmatmul.f32.gmra.mxu1 %v3447_v51  ;;  %v3829_v9 = vpop.f32.mrf.mxu3  ;;  %v3048_v51 = vld [vmem:[%s6801_s1 + $0x100] sm:$0xff] }
 0x161   :  { %v352_v17 = vadd.f32 %v351_v27, %v149_v31  ;;  %v3049_v31 = vld [vmem:[%s6801_s1 + $0x108] sm:$0xff] }
 0x162   :  { %617 = vmatmul.f32.gmra.mxu2 %v561_v34  ;;  %939 = vmatmul.f32.gmra.mxu3 %v3044_v26 }
 0x163   :  { %1225 = vmatpush.msra.mxu0 %v352_v17  ;;  %v3852_v27 = vpop.f32.mrf.mxu0  ;;  %v440_v17 = vadd.f32 %v439_v28, %v3847_v52  ;;  %v378_v28 = vadd.f32 %v3649_v47, %v3839_v30 }
 0x165   :  { %1226 = vmatpush.msra.mxu0 %v349_v36 }
 0x167   :  { %1227 = vmatpush.msra.mxu0 %v346_v41 }
 0x168   :  { %512 = vmatmul.f32.gmra.mxu1 %v3461_v58 }
 0x169   :  { %1228 = vmatpush.msra.mxu0 %v343_v44 }
 0x16a   :  { %620 = vmatmul.f32.gmra.mxu2 %v562_v48  ;;  %942 = vmatmul.f32.gmra.mxu3 %v3045_v61  ;;  %v3050_v61 = vld [vmem:[%s6801_s1 + $0x110] sm:$0xff] }
 0x16b   :  { %1229 = vmatpush.msra.mxu0 %v340_v38  ;;  %v3874_v38 = vpop.f32.mrf.mxu0 }
 0x16d   :  { %1230 = vmatpush.msra.mxu0 %v337_v20 }
 0x16f   :  { %1231 = vmatpush.msra.mxu0 %v334_v55 }
 0x170   :  { %515 = vmatmul.f32.gmra.mxu1 %v3475_v0 }
 0x171   :  { %1232 = vmatpush.msra.mxu0 %v331_v23  ;;  %v3051_v23 = vld [vmem:[%s6801_s1 + $0x118] sm:$0xff] }
 0x172   :  { %623 = vmatmul.f32.gmra.mxu2 %v563_v19  ;;  %945 = vmatmul.f32.gmra.mxu3 %v3046_v39  ;;  %v381_v39 = vadd.f32 %v3668_v16, %v3839_v30 }
 0x173   :  { %1233 = vmatpush.msra.mxu0 %v328_v14  ;;  %v3886_v19 = vpop.f32.mrf.mxu0 }
 0x175   :  { %1234 = vmatpush.msra.mxu0 %v325_v62  ;;  %v3052_v62 = vld [vmem:[%s6801_s1 + $0x120] sm:$0xff] }
 0x177   :  { %1235 = vmatpush.msra.mxu0 %v322_v8 }
 0x178   :  { %518 = vmatmul.f32.gmra.mxu1 %v3489_v6 }
 0x179   :  { %1236 = vmatpush.msra.mxu0 %v319_v18 }
 0x17a   :  { %626 = vmatmul.f32.gmra.mxu2 %v564_v45  ;;  %948 = vmatmul.f32.gmra.mxu3 %v3047_v40  ;;  %v3053_v40 = vld [vmem:[%s6801_s1 + $0x128] sm:$0xff] }
 0x17b   :  { %1237 = vmatpush.msra.mxu0 %v316_v54  ;;  %v3900_v45 = vpop.f32.mrf.mxu0 }
 0x17d   :  { %1238 = vmatpush.msra.mxu0 %v313_v42 }
 0x17f   :  { %1239 = vmatpush.msra.mxu0 %v310_v10  ;;  %v3054_v10 = vld [vmem:[%s6801_s1 + $0x130] sm:$0xff] }
 0x180   :  { %521 = vmatmul.f32.gmra.mxu1 %v3503_v12  ;;  %v384_v12 = vadd.f32 %v3680_v35, %v3839_v30 }
 0x181   :  { %1240 = vmatpush.msra.mxu0 %v307_v46 }
 0x182   :  { %1241 = vmatmul.f32.vlgmr.msra.gmra.mxu0 %v3048_v51 }
 0x183   :  { %v3917_v46 = vpop.f32.mrf.mxu0 }
 0x185   :  { %v582_v60 = vpop.f32.mrf.mxu2  ;;  %v904_v34 = vpop.f32.mrf.mxu3 }
 0x186   :  { %v3844_v26 = vadd.f32 %v582_v60, %v372_v2  ;;  %v3860_v36 = vadd.f32 %v904_v34, %v437_v57  ;;  %v3055_v60 = vld [vmem:[%s6801_s1 + $0x138] sm:$0xff]  ;;  %v3056_v57 = vld [vmem:[%s6801_s1 + $0x140] sm:$0xff] }
 0x188   :  { %v630_v58 = vmul.f32 %v3844_v26, %v3844_v26  ;;  %v952_v7 = vmul.f32 %v3860_v36, %v3860_v36  ;;  %524 = vmatmul.f32.gmra.mxu1 %v3400_v32  ;;  %v387_v32 = vadd.f32 %v3697_v53, %v3839_v30 }
 0x18a   :  { %1244 = vmatmul.f32.gmra.mxu0 %v3049_v31  ;;  %646 = vadd.xlane.f32.xlu0 %v630_v58 }
 0x18b   :  { %v3932_v31 = vpop.f32.mrf.mxu0 }
 0x18d   :  { %v3862_v41 = vpop.f32.mrf.mxu2  ;;  %v907_v44 = vpop.f32.mrf.mxu3 }
 0x18e   :  { %v3864_v48 = vadd.f32 %v907_v44, %v440_v17  ;;  %v396_v44 = vadd.f32 %v3733_v1, %v3839_v30 }
 0x190   :  { %v953_v0 = vmul.f32 %v3864_v48, %v3864_v48  ;;  %527 = vmatmul.f32.gmra.mxu1 %v3414_v37  ;;  %v390_v37 = vadd.f32 %v3710_v50, %v3839_v30 }
 0x192   :  { %1247 = vmatmul.f32.gmra.mxu0 %v3050_v61  ;;  %970 = vadd.xlane.f32.xlu2 %v953_v0  ;;  %v3057_v0 = vld [vmem:[%s6801_s1 + $0x148] sm:$0xff] }
 0x193   :  { %968 = vadd.xlane.f32.xlu0 %v952_v7 }
 0x195   :  { %v588_v20 = vpop.f32.mrf.mxu2 }
 0x196   :  { %v3878_v55 = vadd.f32 %v588_v20, %v378_v28 }
 0x198   :  { %v632_v6 = vmul.f32 %v3878_v55, %v3878_v55  ;;  %530 = vmatmul.f32.gmra.mxu1 %v3428_v43  ;;  %v393_v43 = vadd.f32 %v3721_v25, %v3839_v30 }
 0x19a   :  { %1250 = vmatmul.f32.gmra.mxu0 %v3051_v23  ;;  %v3058_v23 = vld [vmem:[%s6801_s1 + $0x150] sm:$0xff] }
 0x19b   :  { %650 = vadd.xlane.f32.xlu0 %v632_v6 }
 0x19d   :  { %v591_v47 = vpop.f32.mrf.mxu2 }
 0x19e   :  { %v3890_v14 = vadd.f32 %v591_v47, %v381_v39  ;;  %v3059_v47 = vld [vmem:[%s6801_s1 + $0x158] sm:$0xff] }
 0x1a0   :  { %v633_v8 = vmul.f32 %v3890_v14, %v3890_v14  ;;  %533 = vmatmul.f32.gmra.mxu1 %v3442_v49  ;;  %v3944_v49 = vpop.f32.mrf.mxu0 }
 0x1a2   :  { %1253 = vmatmul.f32.gmra.mxu0 %v3052_v62 }
 0x1a3   :  { %652 = vadd.xlane.f32.xlu0 %v633_v8 }
 0x1a5   :  { %v594_v18 = vpop.f32.mrf.mxu2 }
 0x1a6   :  { %v3902_v16 = vadd.f32 %v594_v18, %v384_v12 }
 0x1a8   :  { %v634_v54 = vmul.f32 %v3902_v16, %v3902_v16  ;;  %536 = vmatmul.f32.gmra.mxu1 %v3456_v56  ;;  %v399_v56 = vadd.f32 %v3750_v13, %v3839_v30  ;;  %v3958_v20 = vpop.f32.mrf.mxu0 }
 0x1aa   :  { %1256 = vmatmul.f32.gmra.mxu0 %v3053_v40  ;;  %v3060_v40 = vld [vmem:[%s6801_s1 + $0x160] sm:$0xff] }
 0x1ab   :  { %654 = vadd.xlane.f32.xlu0 %v634_v54 }
 0x1ad   :  { %v597_v35 = vpop.f32.mrf.mxu2 }
 0x1ae   :  { %v3912_v42 = vadd.f32 %v597_v35, %v387_v32 }
 0x1b0   :  { %v635_v51 = vmul.f32 %v3912_v42, %v3912_v42  ;;  %539 = vmatmul.f32.gmra.mxu1 %v3470_v63  ;;  %v402_v63 = vadd.f32 %v3761_v21, %v3839_v30  ;;  %v3975_v62 = vpop.f32.mrf.mxu0 }
 0x1b2   :  { %1259 = vmatmul.f32.gmra.mxu0 %v3054_v10 }
 0x1b3   :  { %656 = vadd.xlane.f32.xlu0 %v635_v51  ;;  %v3061_v51 = vld [vmem:[%s6801_s1 + $0x168] sm:$0xff] }
 0x1b5   :  { %v600_v53 = vpop.f32.mrf.mxu2 }
 0x1b6   :  { %v3924_v2 = vadd.f32 %v600_v53, %v390_v37 }
 0x1b8   :  { %v636_v34 = vmul.f32 %v3924_v2, %v3924_v2  ;;  %542 = vmatmul.f32.gmra.mxu1 %v3484_v5  ;;  %v405_v5 = vadd.f32 %v3770_v29, %v3839_v30  ;;  %v3989_v32 = vpop.f32.mrf.mxu0 }
 0x1ba   :  { %1262 = vmatmul.f32.gmra.mxu0 %v3055_v60  ;;  %v411_v60 = vadd.f32 %v3798_v33, %v3839_v30 }
 0x1bb   :  { %658 = vadd.xlane.f32.xlu0 %v636_v34 }
 0x1bd   :  { %v603_v50 = vpop.f32.mrf.mxu2 }
 0x1be   :  { %v3936_v58 = vadd.f32 %v603_v50, %v393_v43  ;;  %v3062_v43 = vld [vmem:[%s6801_s1 + $0x170] sm:$0xff] }
 0x1c0   :  { %v637_v17 = vmul.f32 %v3936_v58, %v3936_v58  ;;  %545 = vmatmul.f32.gmra.mxu1 %v3498_v11  ;;  %v408_v11 = vadd.f32 %v3780_v15, %v3839_v30  ;;  %v4000_v53 = vpop.f32.mrf.mxu0 }
 0x1c2   :  { %1265 = vmatmul.f32.gmra.mxu0 %v3056_v57  ;;  %v910_v57 = vpop.f32.mrf.mxu3 }
 0x1c3   :  { %660 = vadd.xlane.f32.xlu0 %v637_v17 }
 0x1c5   :  { %v606_v25 = vpop.f32.mrf.mxu2  ;;  %v501_v18 = vpop.f32.mrf.mxu1 }
 0x1c6   :  { %v3948_v61 = vadd.f32 %v606_v25, %v396_v44  ;;  %v414_v44 = vadd.f32 %v3813_v22, %v3839_v30  ;;  %v417_v22 = vadd.f32 %v3829_v9, %v3839_v30 }
 0x1c8   :  { %v638_v7 = vmul.f32 %v3948_v61, %v3948_v61 }
 0x1ca   :  { %1268 = vmatmul.f32.gmra.mxu0 %v3057_v0  ;;  %v4013_v0 = vpop.f32.mrf.mxu0 }
 0x1cb   :  { %662 = vadd.xlane.f32.xlu0 %v638_v7  ;;  %v3063_v7 = vld [vmem:[%s6801_s1 + $0x178] sm:$0xff] }
 0x1cd   :  { %v609_v28 = vpop.f32.mrf.mxu2  ;;  %v504_v10 = vpop.f32.mrf.mxu1 }
 0x1ce   :  { %v3960_v1 = vadd.f32 %v609_v28, %v399_v56  ;;  %v4023_v28 = vperm.slane %v3582_v4, 5 }
 0x1d0   :  { %6836 = vst [vmem:[#allocation5_spill] sm:$0xff] %v3960_v1  ;;  %v639_v6 = vmul.f32 %v3960_v1, %v3960_v1  ;;  %v1570_v1 = vld [vmem:[#allocation2 + $0x338] sm:$0xff] }
 0x1d2   :  { %1271 = vmatmul.f32.gmra.mxu0 %v3058_v23 }
 0x1d3   :  { %664 = vadd.xlane.f32.xlu0 %v639_v6  ;;  %v913_v6 = vpop.f32.mrf.mxu3 }
 0x1d5   :  { %v612_v13 = vpop.f32.mrf.mxu2  ;;  %v507_v50 = vpop.f32.mrf.mxu1 }
 0x1d6   :  { %v3970_v39 = vadd.f32 %v612_v13, %v402_v63  ;;  %v502_v63 = vadd.f32 %v501_v18, %v4023_v28  ;;  %v505_v18 = vadd.f32 %v504_v10, %v4023_v28 }
 0x1d8   :  { %6837 = vst [vmem:[#allocation6_spill] sm:$0xff] %v3970_v39  ;;  %v640_v8 = vmul.f32 %v3970_v39, %v3970_v39 }
 0x1da   :  { %1274 = vmatmul.f32.gmra.mxu0 %v3059_v47 }
 0x1db   :  { %666 = vadd.xlane.f32.xlu0 %v640_v8  ;;  %v916_v9 = vpop.f32.mrf.mxu3 }
 0x1dd   :  { %v615_v21 = vpop.f32.mrf.mxu2  ;;  %v510_v23 = vpop.f32.mrf.mxu1 }
 0x1de   :  { %v3982_v12 = vadd.f32 %v615_v21, %v405_v5 }
 0x1e0   :  { %6838 = vst [vmem:[#allocation7_spill] sm:$0xff] %v3982_v12  ;;  %v641_v54 = vmul.f32 %v3982_v12, %v3982_v12  ;;  %v1643_v12 = vld [vmem:[#allocation2 + $0x580] sm:$0xff] }
 0x1e2   :  { %1277 = vmatmul.f32.gmra.mxu0 %v3060_v40 }
 0x1e3   :  { %668 = vadd.xlane.f32.xlu0 %v641_v54  ;;  %v375_v54 = vadd.f32 %v3626_v3, %v3839_v30  ;;  %v508_v3 = vadd.f32 %v507_v50, %v4023_v28  ;;  %v511_v50 = vadd.f32 %v510_v23, %v4023_v28 }
 0x1e5   :  { %v618_v35 = vpop.f32.mrf.mxu2  ;;  %v513_v40 = vpop.f32.mrf.mxu1 }
 0x1e6   :  { %v3993_v29 = vadd.f32 %v618_v35, %v408_v11  ;;  %v4040_v11 = vadd.f32 %v3862_v41, %v375_v54  ;;  %v919_v41 = vpop.f32.mrf.mxu3  ;;  %v514_v23 = vadd.f32 %v513_v40, %v4023_v28 }
 0x1e8   :  { %6839 = vst [vmem:[#allocation8_spill] sm:$0xff] %v3993_v29  ;;  %v642_v37 = vmul.f32 %v3993_v29, %v3993_v29 }
 0x1ea   :  { %1280 = vmatmul.f32.gmra.mxu0 %v3061_v51 }
 0x1eb   :  { %670 = vadd.xlane.f32.xlu0 %v642_v37  ;;  %v631_v37 = vmul.f32 %v4040_v11, %v4040_v11 }
 0x1ed   :  { %v621_v34 = vpop.f32.mrf.mxu2  ;;  %v516_v30 = vpop.f32.mrf.mxu1 }
 0x1ee   :  { %v4004_v15 = vadd.f32 %v621_v34, %v411_v60  ;;  %v443_v34 = vadd.f32 %v3816_v24, %v3847_v52  ;;  %v446_v24 = vadd.f32 %v3832_v59, %v3847_v52  ;;  %v449_v59 = vadd.f32 %v3852_v27, %v3847_v52 }
 0x1ef   :  { %v452_v27 = vadd.f32 %v3874_v38, %v3847_v52  ;;  %v517_v40 = vadd.f32 %v516_v30, %v4023_v28  ;;  %v455_v38 = vadd.f32 %v3886_v19, %v3847_v52 }
 0x1f0   :  { %6840 = vst [vmem:[#allocation9_spill] sm:$0xff] %v4004_v15  ;;  %v643_v17 = vmul.f32 %v4004_v15, %v4004_v15  ;;  %v4051_v10 = vadd.f32 %v910_v57, %v443_v34  ;;  %v1650_v15 = vld [vmem:[#allocation2 + $0x5b8] sm:$0xff] }
 0x1f2   :  { %1283 = vmatmul.f32.gmra.mxu0 %v3062_v43 }
 0x1f3   :  { %672 = vadd.xlane.f32.xlu0 %v643_v17 }
 0x1f5   :  { %v624_v25 = vpop.f32.mrf.mxu2 }
 0x1f6   :  { %v4015_v33 = vadd.f32 %v624_v25, %v414_v44  ;;  %v954_v25 = vmul.f32 %v4051_v10, %v4051_v10 }
 0x1f8   :  { %6841 = vst [vmem:[#allocation10_spill] sm:$0xff] %v4015_v33  ;;  %v644_v56 = vmul.f32 %v4015_v33, %v4015_v33 }
 0x1fa   :  { %1286 = vmatmul.f32.gmra.mxu0 %v3063_v7  ;;  %v4062_v7 = vadd.f32 %v913_v6, %v446_v24  ;;  %v4073_v6 = vadd.f32 %v916_v9, %v449_v59  ;;  %v4084_v9 = vadd.f32 %v919_v41, %v452_v27  ;;  %v458_v59 = vadd.f32 %v3900_v45, %v3847_v52 }
 0x1fb   :  { %674 = vadd.xlane.f32.xlu0 %v644_v56  ;;  %v519_v56 = vpop.f32.mrf.mxu1  ;;  %v461_v45 = vadd.f32 %v3917_v46, %v3847_v52  ;;  %v464_v46 = vadd.f32 %v3932_v31, %v3847_v52  ;;  %v467_v31 = vadd.f32 %v3944_v49, %v3847_v52  ;;  %v1654_v49 = vld [vmem:[#allocation2 + $0x5d8] sm:$0xff] }
 0x1fc   :  { %v520_v30 = vadd.f32 %v519_v56, %v4023_v28  ;;  %1739 = vmatpush.msrb.mxu2 %v1654_v49 }
 0x1fd   :  { %v627_v13 = vpop.f32.mrf.mxu2 }
 0x1fe   :  { %v4028_v47 = vadd.f32 %v627_v13, %v417_v22  ;;  %v922_v22 = vpop.f32.mrf.mxu3 }
 0x1ff   :  { %v1242_v8 = vpop.f32.mrf.mxu0  ;;  %v4097_v41 = vadd.f32 %v922_v22, %v455_v38 }
 0x200   :  { %6842 = vst [vmem:[#allocation11_spill] sm:$0xff] %v4028_v47  ;;  %v4030_v5 = vadd.f32 %v1242_v8, %v502_v63  ;;  %v645_v21 = vmul.f32 %v4028_v47, %v4028_v47  ;;  %v955_v8 = vmul.f32 %v4062_v7, %v4062_v7  ;;  %v1649_v47 = vld [vmem:[#allocation2 + $0x5b0] sm:$0xff] }
 0x202   :  { %v1290_v4 = vmul.f32 %v4030_v5, %v4030_v5 }
 0x203   :  { %676 = vadd.xlane.f32.xlu0 %v645_v21  ;;  %v522_v54 = vpop.f32.mrf.mxu1 }
 0x204   :  { %1306 = vadd.xlane.f32.xlu1 %v1290_v4  ;;  %v523_v56 = vadd.f32 %v522_v54, %v4023_v28 }
 0x207   :  { %v1245_v35 = vpop.f32.mrf.mxu0 }
 0x208   :  { %v4042_v51 = vadd.f32 %v1245_v35, %v505_v18  ;;  %v925_v18 = vpop.f32.mrf.mxu3 }
 0x20a   :  { %v1291_v60 = vmul.f32 %v4042_v51, %v4042_v51 }
 0x20c   :  { %648 = vadd.xlane.f32.xlu1 %v631_v37  ;;  %1308 = vadd.xlane.f32.xlu2 %v1291_v60  ;;  %v956_v37 = vmul.f32 %v4073_v6, %v4073_v6 }
 0x20f   :  { %v1248_v43 = vpop.f32.mrf.mxu0 }
 0x210   :  { %v4053_v17 = vadd.f32 %v1248_v43, %v508_v3  ;;  %v4088_v3 = vpop.xlane.xlu0 %646  ;;  %v928_v24 = vpop.f32.mrf.mxu3 }
 0x212   :  { %v1292_v44 = vmul.f32 %v4053_v17, %v4053_v17 }
 0x214   :  { %972 = vadd.xlane.f32.xlu1 %v954_v25  ;;  %1310 = vadd.xlane.f32.xlu2 %v1292_v44  ;;  %v957_v44 = vmul.f32 %v4084_v9, %v4084_v9  ;;  %v525_v25 = vpop.f32.mrf.mxu1 }
 0x215   :  { %v526_v54 = vadd.f32 %v525_v25, %v4023_v28 }
 0x217   :  { %v1251_v57 = vpop.f32.mrf.mxu0 }
 0x218   :  { %v4064_v63 = vadd.f32 %v1251_v57, %v511_v50  ;;  %v4107_v19 = vpop.xlane.xlu0 %968 }
 0x21a   :  { %v1293_v13 = vmul.f32 %v4064_v63, %v4064_v63 }
 0x21c   :  { %974 = vadd.xlane.f32.xlu1 %v955_v8  ;;  %1312 = vadd.xlane.f32.xlu2 %v1293_v13  ;;  %v958_v8 = vmul.f32 %v4097_v41, %v4097_v41  ;;  %v528_v22 = vpop.f32.mrf.mxu1 }
 0x21d   :  { %v529_v25 = vadd.f32 %v528_v22, %v4023_v28 }
 0x21f   :  { %v1254_v21 = vpop.f32.mrf.mxu0 }
 0x220   :  { %v4075_v4 = vadd.f32 %v1254_v21, %v514_v23  ;;  %v4110_v23 = vadd.f32 %v925_v18, %v458_v59  ;;  %v931_v21 = vpop.f32.mrf.mxu3  ;;  %v4123_v18 = vpop.xlane.xlu0 %650 }
 0x222   :  { %v1294_v35 = vmul.f32 %v4075_v4, %v4075_v4 }
 0x224   :  { %976 = vadd.xlane.f32.xlu1 %v956_v37  ;;  %1314 = vadd.xlane.f32.xlu2 %v1294_v35 }
 0x227   :  { %v1257_v60 = vpop.f32.mrf.mxu0 }
 0x228   :  { %v4086_v34 = vadd.f32 %v1257_v60, %v517_v40  ;;  %v959_v40 = vmul.f32 %v4110_v23, %v4110_v23  ;;  %v4121_v60 = vadd.f32 %v928_v24, %v461_v45  ;;  %v934_v38 = vpop.f32.mrf.mxu3  ;;  %v4134_v24 = vadd.f32 %v931_v21, %v464_v46  ;;  %v4136_v59 = vpop.xlane.xlu0 %652 }
 0x229   :  { %v4147_v21 = vadd.f32 %v934_v38, %v467_v31  ;;  %v1656_v31 = vld [vmem:[#allocation2 + $0x5e8] sm:$0xff] }
 0x22a   :  { %v1295_v43 = vmul.f32 %v4086_v34, %v4086_v34  ;;  %6843 = vst [vmem:[#allocation12_spill] sm:$0xff] %v4121_v60  ;;  %v961_v45 = vmul.f32 %v4134_v24, %v4134_v24  ;;  %1869 = vmatpush.msrb.mxu0 %v1656_v31 }
 0x22b   :  { %6845 = vst [vmem:[#allocation14_spill] sm:$0xff] %v4134_v24  ;;  %v962_v46 = vmul.f32 %v4147_v21, %v4147_v21  ;;  %v1584_v24 = vld [vmem:[#allocation2 + $0x3a8] sm:$0xff] }
 0x22c   :  { %978 = vadd.xlane.f32.xlu1 %v957_v44  ;;  %1316 = vadd.xlane.f32.xlu2 %v1295_v43  ;;  %v531_v44 = vpop.f32.mrf.mxu1  ;;  %6847 = vst [vmem:[#allocation16_spill] sm:$0xff] %v4147_v21  ;;  %v1582_v21 = vld [vmem:[#allocation2 + $0x398] sm:$0xff] }
 0x22d   :  { %v532_v22 = vadd.f32 %v531_v44, %v4023_v28  ;;  %v470_v44 = vadd.f32 %v3958_v20, %v3847_v52  ;;  %v1641_v20 = vld [vmem:[#allocation2 + $0x570] sm:$0xff]  ;;  %1870 = vmatpush.msrb.mxu0 %v1650_v15  ;;  %v473_v15 = vadd.f32 %v3975_v62, %v3847_v52  ;;  %v4179_v62 = vmax.f32 %v4107_v19, 1e-24 }
 0x22f   :  { %v1260_v50 = vpop.f32.mrf.mxu0  ;;  %vm1022_vm4 = vweird.f32 %v4179_v62 }
 0x230   :  { %v4099_v57 = vadd.f32 %v1260_v50, %v520_v30 }
 0x232   :  { %v1296_v13 = vmul.f32 %v4099_v57, %v4099_v57 }
 0x234   :  { %980 = vadd.xlane.f32.xlu1 %v958_v8  ;;  %1318 = vadd.xlane.f32.xlu2 %v1296_v13  ;;  %v960_v13 = vmul.f32 %v4121_v60, %v4121_v60 }
 0x237   :  { %v1263_v35 = vpop.f32.mrf.mxu0 }
 0x238   :  { %v4112_v37 = vadd.f32 %v1263_v35, %v523_v56  ;;  %v534_v35 = vpop.f32.mrf.mxu1 }
 0x23a   :  { %v1297_v27 = vmul.f32 %v4112_v37, %v4112_v37 }
 0x23c   :  { %982 = vadd.xlane.f32.xlu1 %v959_v40  ;;  %1320 = vadd.xlane.f32.xlu2 %v1297_v27  ;;  %v937_v27 = vpop.f32.mrf.mxu3 }
 0x23d   :  { %v4160_v33 = vadd.f32 %v937_v27, %v470_v44  ;;  %v1638_v44 = vld [vmem:[#allocation2 + $0x558] sm:$0xff] }
 0x23f   :  { %v1266_v43 = vpop.f32.mrf.mxu0  ;;  %6849 = vst [vmem:[#allocation18_spill] sm:$0xff] %v4160_v33  ;;  %v963_v49 = vmul.f32 %v4160_v33, %v4160_v33  ;;  %v1594_v33 = vld [vmem:[#allocation2 + $0x3f8] sm:$0xff] }
 0x240   :  { %v4125_v30 = vadd.f32 %v1266_v43, %v526_v54 }
 0x242   :  { %6844 = vst [vmem:[#allocation13_spill] sm:$0xff] %v4125_v30  ;;  %v1298_v50 = vmul.f32 %v4125_v30, %v4125_v30 }
 0x244   :  { %984 = vadd.xlane.f32.xlu1 %v960_v13  ;;  %1322 = vadd.xlane.f32.xlu2 %v1298_v50  ;;  %v4151_v50 = vpop.xlane.xlu0 %654  ;;  %v940_v38 = vpop.f32.mrf.mxu3 }
 0x247   :  { %v1269_v8 = vpop.f32.mrf.mxu0 }
 0x248   :  { %v4138_v56 = vadd.f32 %v1269_v8, %v529_v25  ;;  %v537_v25 = vpop.f32.mrf.mxu1  ;;  %v1653_v8 = vld [vmem:[#allocation2 + $0x5d0] sm:$0xff] }
 0x249   :  { %1674 = vmatpush.msra.mxu1 %v1653_v8  ;;  %v1636_v8 = vld [vmem:[#allocation2 + $0x548] sm:$0xff]  ;;  %v538_v31 = vadd.f32 %v537_v25, %v4023_v28  ;;  %v1625_v25 = vld [vmem:[#allocation2 + $0x4f0] sm:$0xff] }
 0x24a   :  { %6846 = vst [vmem:[#allocation15_spill] sm:$0xff] %v4138_v56  ;;  %v1299_v40 = vmul.f32 %v4138_v56, %v4138_v56 }
 0x24c   :  { %986 = vadd.xlane.f32.xlu1 %v961_v45  ;;  %1324 = vadd.xlane.f32.xlu2 %v1299_v40  ;;  %v1655_v45 = vld [vmem:[#allocation2 + $0x5e0] sm:$0xff]  ;;  %v535_v40 = vadd.f32 %v534_v35, %v4023_v28  ;;  %v1642_v35 = vld [vmem:[#allocation2 + $0x578] sm:$0xff] }
 0x24d   :  { %1804 = vmatpush.msrb.mxu3 %v1655_v45  ;;  %v1637_v45 = vld [vmem:[#allocation2 + $0x550] sm:$0xff] }
 0x24f   :  { %v1272_v54 = vpop.f32.mrf.mxu0  ;;  %1805 = vmatpush.msrb.mxu3 %v1649_v47  ;;  %v1630_v47 = vld [vmem:[#allocation2 + $0x518] sm:$0xff] }
 0x250   :  { %v4149_v43 = vadd.f32 %v1272_v54, %v532_v22  ;;  %v1647_v22 = vld [vmem:[#allocation2 + $0x5a0] sm:$0xff]  ;;  %v1648_v54 = vld [vmem:[#allocation2 + $0x5a8] sm:$0xff] }
 0x251   :  { %1675 = vmatpush.msra.mxu1 %v1647_v22  ;;  %1740 = vmatpush.msrb.mxu2 %v1648_v54  ;;  %v1631_v22 = vld [vmem:[#allocation2 + $0x520] sm:$0xff]  ;;  %v1632_v54 = vld [vmem:[#allocation2 + $0x528] sm:$0xff] }
 0x252   :  { %6848 = vst [vmem:[#allocation17_spill] sm:$0xff] %v4149_v43  ;;  %v1300_v13 = vmul.f32 %v4149_v43, %v4149_v43  ;;  %1806 = vmatpush.msrb.mxu3 %v1643_v12  ;;  %v4174_v12 = vmax.f32 %v4088_v3, 1e-24  ;;  %v1617_v3 = vld [vmem:[#allocation2 + $0x4b0] sm:$0xff] }
 0x253   :  { %1676 = vmatpush.msra.mxu1 %v1641_v20  ;;  %1741 = vmatpush.msrb.mxu2 %v1642_v35  ;;  %v540_v20 = vpop.f32.mrf.mxu1  ;;  %v1624_v35 = vld [vmem:[#allocation2 + $0x4e8] sm:$0xff] }
 0x254   :  { %988 = vadd.xlane.f32.xlu1 %v962_v46  ;;  %1326 = vadd.xlane.f32.xlu2 %v1300_v13  ;;  %v1644_v46 = vld [vmem:[#allocation2 + $0x588] sm:$0xff]  ;;  %v1635_v13 = vld [vmem:[#allocation2 + $0x540] sm:$0xff]  ;;  %3100 = vrsqrt.f32 %v4174_v12  ;;  %vm700_vm1 = vweird.f32 %v4174_v12 }
 0x255   :  { %1871 = vmatpush.msrb.mxu0 %v1644_v46  ;;  %1677 = vmatpush.msra.mxu1 %v1635_v13  ;;  %v1623_v46 = vld [vmem:[#allocation2 + $0x4e0] sm:$0xff]  ;;  %v4176_v13 = vadd.f32 %v940_v38, %v473_v15  ;;  %v1620_v38 = vld [vmem:[#allocation2 + $0x4c8] sm:$0xff]  ;;  %v1618_v15 = vld [vmem:[#allocation2 + $0x4b8] sm:$0xff]  ;;  %3102 = vrsqrt.f32 %v4179_v62 }
 0x256   :  { %1742 = vmatpush.msrb.mxu2 %v1636_v8  ;;  %1807 = vmatpush.msrb.mxu3 %v1637_v45  ;;  %v943_v8 = vpop.f32.mrf.mxu3  ;;  %v971_v45 = vpop.xlane.xlu2 %970 }
 0x257   :  { %v1275_v29 = vpop.f32.mrf.mxu0  ;;  %1872 = vmatpush.msrb.mxu0 %v1638_v44  ;;  %6851 = vst [vmem:[#allocation20_spill] sm:$0xff] %v4176_v13  ;;  %v1619_v44 = vld [vmem:[#allocation2 + $0x4c0] sm:$0xff]  ;;  %v4184_v19 = vmax.f32 %v971_v45, 1e-24  ;;  %v1606_v45 = vld [vmem:[#allocation2 + $0x458] sm:$0xff] }
 0x258   :  { %v4162_v43 = vadd.f32 %v1275_v29, %v535_v40  ;;  %v1629_v29 = vld [vmem:[#allocation2 + $0x510] sm:$0xff]  ;;  %v4170_v40 = vpop.xlane.xlu0 %656  ;;  %1743 = vmatpush.msrb.mxu2 %v1630_v47  ;;  %1808 = vmatpush.msrb.mxu3 %v1631_v22  ;;  %v1611_v47 = vld [vmem:[#allocation2 + $0x480] sm:$0xff]  ;;  %v4192_v22 = vmax.f32 %v4123_v18, 1e-24 }
 0x259   :  { %1678 = vmatpush.msra.mxu1 %v1629_v29  ;;  %1873 = vmatpush.msrb.mxu0 %v1632_v54  ;;  %v1613_v54 = vld [vmem:[#allocation2 + $0x490] sm:$0xff]  ;;  %3104 = vrsqrt.f32 %v4184_v19  ;;  %vm1032_vm5 = vweird.f32 %v4184_v19 }
 0x25a   :  { %6850 = vst [vmem:[#allocation19_spill] sm:$0xff] %v4162_v43  ;;  %v1301_v27 = vmul.f32 %v4162_v43, %v4162_v43  ;;  %1744 = vmatpush.msrb.mxu2 %v1624_v35  ;;  %1809 = vmatpush.msrb.mxu3 %v1625_v25  ;;  %v476_v35 = vadd.f32 %v3989_v32, %v3847_v52  ;;  %v1600_v32 = vld [vmem:[#allocation2 + $0x428] sm:$0xff]  ;;  %3106 = vrsqrt.f32 %v4192_v22  ;;  %vm720_vm10 = vweird.f32 %v4192_v22 }
 0x25b   :  { %1679 = vmatpush.msra.mxu1 %v1623_v46  ;;  %v1614_v46 = vld [vmem:[#allocation2 + $0x498] sm:$0xff]  ;;  %v541_v25 = vadd.f32 %v540_v20, %v4023_v28 }
 0x25c   :  { %990 = vadd.xlane.f32.xlu1 %v963_v49  ;;  %1328 = vadd.xlane.f32.xlu2 %v1301_v27  ;;  %v1626_v49 = vld [vmem:[#allocation2 + $0x4f8] sm:$0xff] }
 0x25d   :  { %1874 = vmatpush.msrb.mxu0 %v1626_v49  ;;  %1680 = vmatpush.msra.mxu1 %v1617_v3  ;;  %v1605_v49 = vld [vmem:[#allocation2 + $0x450] sm:$0xff]  ;;  %v1607_v3 = vld [vmem:[#allocation2 + $0x460] sm:$0xff] }
 0x25e   :  { %1745 = vmatpush.msrb.mxu2 %v1618_v15  ;;  %1810 = vmatpush.msrb.mxu3 %v1619_v44  ;;  %v1608_v15 = vld [vmem:[#allocation2 + $0x468] sm:$0xff]  ;;  %v1599_v44 = vld [vmem:[#allocation2 + $0x420] sm:$0xff] }
 0x25f   :  { %v1278_v43 = vpop.f32.mrf.mxu0  ;;  %1875 = vmatpush.msrb.mxu0 %v1620_v38  ;;  %1681 = vmatpush.msra.mxu1 %v1611_v47  ;;  %v4202_v38 = vpop.eup %3100  ;;  %v1602_v47 = vld [vmem:[#allocation2 + $0x438] sm:$0xff] }
 0x260   :  { %v4181_v27 = vadd.f32 %v1278_v43, %v538_v31  ;;  %v964_v43 = vmul.f32 %v4176_v13, %v4176_v13  ;;  %v1612_v31 = vld [vmem:[#allocation2 + $0x488] sm:$0xff]  ;;  %v4200_v18 = vpop.xlane.xlu0 %658  ;;  %1811 = vmatpush.msrb.mxu3 %v1613_v54  ;;  %v1593_v54 = vld [vmem:[#allocation2 + $0x3f0] sm:$0xff]  ;;  %v1595_v13 = vld [vmem:[#allocation2 + $0x400] sm:$0xff]  ;;  %vm701_vm0 = vweird.f32 %v4202_v38 }
 0x261   :  { %1746 = vmatpush.msrb.mxu2 %v1612_v31  ;;  %1876 = vmatpush.msrb.mxu0 %v1614_v46  ;;  %v4208_v31 = vmax.f32 %v4136_v59, 1e-24  ;;  %v946_v46 = vpop.f32.mrf.mxu3  ;;  %v1596_v59 = vld [vmem:[#allocation2 + $0x408] sm:$0xff]  ;;  %vm4291_vm3 = vmor %vm700_vm1, %vm701_vm0 }
 0x262   :  { %6852 = vst [vmem:[#allocation21_spill] sm:$0xff] %v4181_v27  ;;  %v1302_v29 = vmul.f32 %v4181_v27, %v4181_v27  ;;  %v4197_v27 = vadd.f32 %v943_v8, %v476_v35  ;;  %1682 = vmatpush.msra.mxu1 %v1605_v49  ;;  %v4205_v8 = vpop.eup %3102  ;;  %1812 = vmatpush.msrb.mxu3 %v1607_v3 }
 0x263   :  { %1747 = vmatpush.msrb.mxu2 %v1606_v45  ;;  %1877 = vmatpush.msrb.mxu0 %v1608_v15  ;;  %v1017_v3 = vmul.f32 %v4205_v8, %v4179_v62  ;;  %v1587_v15 = vld [vmem:[#allocation2 + $0x3c0] sm:$0xff]  ;;  %3108 = vrsqrt.f32 %v4208_v31  ;;  %vm1023_vm2 = vweird.f32 %v4205_v8  ;;  %vm730_vm13 = vweird.f32 %v4208_v31 }
 0x264   :  { %992 = vadd.xlane.f32.xlu1 %v964_v43  ;;  %1330 = vadd.xlane.f32.xlu2 %v1302_v29  ;;  %6853 = vst [vmem:[#allocation22_spill] sm:$0xff] %v4197_v27  ;;  %v543_v43 = vpop.f32.mrf.mxu1  ;;  %v1601_v29 = vld [vmem:[#allocation2 + $0x430] sm:$0xff]  ;;  %v965_v45 = vmul.f32 %v4197_v27, %v4197_v27  ;;  %v1590_v27 = vld [vmem:[#allocation2 + $0x3d8] sm:$0xff]  ;;  %vm4307_vm7 = vmor %vm1022_vm4, %vm1023_vm2 }
 0x265   :  { %1683 = vmatpush.msra.mxu1 %v1599_v44  ;;  %1748 = vmatpush.msrb.mxu2 %v1600_v32  ;;  %v1588_v44 = vld [vmem:[#allocation2 + $0x3c8] sm:$0xff]  ;;  %v4220_v32 = vpop.eup %3104 }
 0x266   :  { %1813 = vmatpush.msrb.mxu3 %v1601_v29  ;;  %1878 = vmatpush.msrb.mxu0 %v1602_v47  ;;  %v4226_v29 = vmax.f32 %v4151_v50, 1e-24  ;;  %v544_v47 = vadd.f32 %v543_v43, %v4023_v28  ;;  %v1027_v43 = vmul.f32 %v4220_v32, %v4184_v19  ;;  %vm1033_vm6 = vweird.f32 %v4220_v32 }
 0x267   :  { %v1281_v20 = vpop.f32.mrf.mxu0  ;;  %1684 = vmatpush.msra.mxu1 %v1593_v54  ;;  %1749 = vmatpush.msrb.mxu2 %v1594_v33  ;;  %v4229_v54 = vpop.eup %3106  ;;  %v1581_v33 = vld [vmem:[#allocation2 + $0x390] sm:$0xff]  ;;  %vm4323_vm9 = vmor %vm1032_vm5, %vm1033_vm6 }
 0x268   :  { %v4210_v35 = vadd.f32 %v1281_v20, %v541_v25  ;;  %v695_v25 = vmul.f32 %v4202_v38, %v4174_v12  ;;  %v479_v20 = vadd.f32 %v4000_v53, %v3847_v52  ;;  %1814 = vmatpush.msrb.mxu3 %v1595_v13  ;;  %1879 = vmatpush.msrb.mxu0 %v1596_v59  ;;  %v1583_v53 = vld [vmem:[#allocation2 + $0x3a0] sm:$0xff]  ;;  %v1576_v59 = vld [vmem:[#allocation2 + $0x368] sm:$0xff]  ;;  %3110 = vrsqrt.f32 %v4226_v29 }
 0x269   :  { %1685 = vmatpush.msra.mxu1 %v1587_v15  ;;  %1750 = vmatpush.msrb.mxu2 %v1588_v44  ;;  %v1018_v13 = vmul.f32 %v4205_v8, %v1017_v3  ;;  %v4241_v15 = vmax.f32 %v4170_v40, 1e-24  ;;  %v661_v3 = vpop.xlane.xlu0 %660  ;;  %vm721_vm8 = vweird.f32 %v4229_v54  ;;  %vm740_vm14 = vweird.f32 %v4226_v29 }
 0x26a   :  { %6854 = vst [vmem:[#allocation23_spill] sm:$0xff] %v4210_v35  ;;  %v1303_v49 = vmul.f32 %v4210_v35, %v4210_v35  ;;  %v1589_v35 = vld [vmem:[#allocation2 + $0x3d0] sm:$0xff]  ;;  %v4231_v56 = vadd.f32 %v946_v46, %v479_v20  ;;  %v696_v50 = vmul.f32 %v4202_v38, %v695_v25  ;;  %1880 = vmatpush.msrb.mxu0 %v1590_v27  ;;  %v1578_v20 = vld [vmem:[#allocation2 + $0x378] sm:$0xff]  ;;  %vm4339_vm11 = vmor %vm720_vm10, %vm721_vm8 }
 0x26b   :  { %1815 = vmatpush.msrb.mxu3 %v1589_v35  ;;  %v715_v46 = vmul.f32 %v4229_v54, %v4192_v22  ;;  %1686 = vmatpush.msra.mxu1 %v1581_v33  ;;  %v1577_v25 = vld [vmem:[#allocation2 + $0x370] sm:$0xff]  ;;  %v4245_v35 = vpop.eup %3108  ;;  %v949_v33 = vpop.f32.mrf.mxu3  ;;  %v1019_v60 = vmul.f32 0.5, %v1018_v13  ;;  %3112 = vrsqrt.f32 %v4241_v15 }
 0x26c   :  { %994 = vadd.xlane.f32.xlu1 %v965_v45  ;;  %1332 = vadd.xlane.f32.xlu2 %v1303_v49  ;;  %6855 = vst [vmem:[#allocation24_spill] sm:$0xff] %v4231_v56  ;;  %v1575_v49 = vld [vmem:[#allocation2 + $0x360] sm:$0xff]  ;;  %v546_v39 = vpop.f32.mrf.mxu1  ;;  %v1569_v27 = vld [vmem:[#allocation2 + $0x330] sm:$0xff]  ;;  %v966_v40 = vmul.f32 %v4231_v56, %v4231_v56  ;;  %vm731_vm12 = vweird.f32 %v4245_v35 }
 0x26d   :  { %1751 = vmatpush.msrb.mxu2 %v1582_v21  ;;  %1816 = vmatpush.msrb.mxu3 %v1583_v53  ;;  %v482_v21 = vadd.f32 %v4013_v0, %v3847_v52  ;;  %v1028_v53 = vmul.f32 %v4220_v32, %v1027_v43  ;;  %v1565_v56 = vld [vmem:[#allocation2 + $0x310] sm:$0xff]  ;;  %v725_v52 = vmul.f32 %v4245_v35, %v4208_v31  ;;  %v1564_v0 = vld [vmem:[#allocation2 + $0x308] sm:$0xff]  ;;  %vm4368_vm15 = vmor %vm730_vm13, %vm731_vm12 }
 0x26e   :  { %1881 = vmatpush.msrb.mxu0 %v1584_v24  ;;  %1687 = vmatpush.msra.mxu1 %v1575_v49  ;;  %v1572_v24 = vld [vmem:[#allocation2 + $0x348] sm:$0xff]  ;;  %v547_v49 = vadd.f32 %v546_v39, %v4023_v28  ;;  %v4259_v43 = vpop.eup %3110  ;;  %v1020_v28 = vsub.f32 1.5, %v1019_v60 }
 0x26f   :  { %v1284_v45 = vpop.f32.mrf.mxu0  ;;  %1752 = vmatpush.msrb.mxu2 %v1576_v59  ;;  %1817 = vmatpush.msrb.mxu3 %v1577_v25  ;;  %v1563_v59 = vld [vmem:[#allocation2 + $0x300] sm:$0xff]  ;;  %v4261_v13 = vadd.f32 %v949_v33, %v482_v21  ;;  %v1029_v25 = vmul.f32 0.5, %v1028_v53  ;;  %v4269_v21 = vmax.f32 %v4200_v18, 1e-24  ;;  %vm741_vm0 = vweird.f32 %v4259_v43 }
 0x270   :  { %v4243_v44 = vadd.f32 %v1284_v45, %v544_v47  ;;  %v1571_v47 = vld [vmem:[#allocation2 + $0x340] sm:$0xff]  ;;  %v697_v45 = vmul.f32 0.5, %v696_v50  ;;  %1882 = vmatpush.msrb.mxu0 %v1578_v20  ;;  %1688 = vmatpush.msra.mxu1 %v1569_v27  ;;  %v1566_v50 = vld [vmem:[#allocation2 + $0x318] sm:$0xff]  ;;  %v1021_v18 = vmul.f32 %v4205_v8, %v1020_v28  ;;  %vm4410_vm5 = vmor %vm740_vm14, %vm741_vm0 }
 0x271   :  { %1818 = vmatpush.msrb.mxu3 %v1571_v47  ;;  %1753 = vmatpush.msrb.mxu2 %v1570_v1  ;;  %v735_v47 = vmul.f32 %v4259_v43, %v4226_v29  ;;  %v4273_v33 = vpop.eup %3112  ;;  %v1030_v53 = vsub.f32 1.5, %v1029_v25 }
 0x272   :  { %6856 = vst [vmem:[#allocation25_spill] sm:$0xff] %v4243_v44  ;;  %v1304_v30 = vmul.f32 %v4243_v44, %v4243_v44  ;;  %v716_v44 = vmul.f32 %v4229_v54, %v715_v46  ;;  %1883 = vmatpush.msrb.mxu0 %v1572_v24  ;;  %v698_v46 = vsub.f32 1.5, %v697_v45  ;;  %1689 = vmatpush.msra.mxu1 %v1563_v59  ;;  %v4275_v45 = vmax.f32 %v661_v3, 1e-24  ;;  %v663_v24 = vpop.xlane.xlu0 %662 }
 0x273   :  { %1819 = vmatpush.msrb.mxu3 %v1565_v56  ;;  %1754 = vmatpush.msrb.mxu2 %v1564_v0  ;;  %v967_v56 = vmul.f32 %v4261_v13, %v4261_v13  ;;  %v736_v59 = vmul.f32 %v4259_v43, %v735_v47  ;;  %v4297_v12 = vmax.f32 %v663_v24, 1e-24  ;;  %vm751_vm6 = vweird.f32 %v4273_v33 }
 0x274   :  { %996 = vadd.xlane.f32.xlu1 %v966_v40  ;;  %1334 = vadd.xlane.f32.xlu2 %v1304_v30  ;;  %v717_v27 = vmul.f32 0.5, %v716_v44  ;;  %v726_v30 = vmul.f32 %v4245_v35, %v725_v52  ;;  %v699_v44 = vmul.f32 %v4202_v38, %v698_v46  ;;  %v745_v52 = vmul.f32 %v4273_v33, %v4241_v15 }
 0x275   :  { %1884 = vmatpush.msrb.mxu0 %v1566_v50  ;;  %v1031_v46 = vmul.f32 %v4220_v32, %v1030_v53 }
 0x276   :  { %v718_v3 = vsub.f32 1.5, %v717_v27  ;;  %v703_v50 = vsel %vm4291_vm3, %v4202_v38, %v699_v44  ;;  %v746_v47 = vmul.f32 %v4273_v33, %v745_v52  ;;  %vm750_vm3 = vweird.f32 %v4241_v15 }
 0x277   :  { %v1287_v20 = vpop.f32.mrf.mxu0  ;;  %v1307_v39 = vpop.xlane.xlu1 %1306  ;;  %v1035_v53 = vsel %vm4323_vm9, %v4220_v32, %v1031_v46  ;;  %vm4446_vm9 = vmor %vm750_vm3, %vm751_vm6  ;;  %vm770_vm6 = vweird.f32 %v4275_v45 }
 0x278   :  { %v4263_v40 = vadd.f32 %v1287_v20, %v547_v49  ;;  %v4271_v1 = vmax.f32 %v1307_v39, 1e-24  ;;  %v727_v49 = vmul.f32 0.5, %v726_v30  ;;  %v1025_v20 = vsel %vm4307_vm7, %v4205_v8, %v1021_v18 }
 0x279   :  { %v719_v39 = vmul.f32 %v4229_v54, %v718_v3  ;;  %v737_v30 = vmul.f32 0.5, %v736_v59  ;;  %v1176_v24 = vmul.f32 %v1025_v20, %v3860_v36  ;;  %v854_v3 = vmul.f32 %v703_v50, %v3844_v26 }
 0x27a   :  { %v1305_v60 = vmul.f32 %v4263_v40, %v4263_v40  ;;  %3114 = vrsqrt.f32 %v4271_v1  ;;  %v728_v27 = vsub.f32 1.5, %v727_v49  ;;  %v747_v52 = vmul.f32 0.5, %v746_v47 }
 0x27b   :  { %3116 = vrsqrt.f32 %v4269_v21  ;;  %v723_v49 = vsel %vm4339_vm11, %v4229_v54, %v719_v39  ;;  %v738_v59 = vsub.f32 1.5, %v737_v30  ;;  %v4355_v0 = vmul.f32 %v1035_v53, %v3864_v48 }
 0x27c   :  { %998 = vadd.xlane.f32.xlu1 %v967_v56  ;;  %1336 = vadd.xlane.f32.xlu2 %v1305_v60  ;;  %3118 = vrsqrt.f32 %v4275_v45  ;;  %v729_v36 = vmul.f32 %v4245_v35, %v728_v27  ;;  %v1192_v54 = vadd.f32 %v1176_v24, %v854_v3  ;;  %v4361_v46 = vmul.f32 %v723_v49, %v3878_v55  ;;  %v665_v24 = vpop.xlane.xlu0 %664 }
 0x27d   :  { %3120 = vrsqrt.f32 %v4297_v12  ;;  %v739_v30 = vmul.f32 %v4259_v43, %v738_v59  ;;  %v748_v47 = vsub.f32 1.5, %v747_v52  ;;  %vm1360_vm2 = vweird.f32 %v4271_v1 }
 0x27e   :  { %v733_v27 = vsel %vm4368_vm15, %v4245_v35, %v729_v36  ;;  %v4427_v48 = vmax.f32 %v665_v24, 1e-24 }
 0x27f   :  { %v649_v62 = vpop.xlane.xlu1 %648  ;;  %v1309_v38 = vpop.xlane.xlu2 %1308  ;;  %v4404_v59 = vmul.f32 %v733_v27, %v3890_v14  ;;  %v4421_v14 = vmul.f32 %v4273_v33, %v748_v47 }
 0x280   :  { %v4316_v28 = vmax.f32 %v649_v62, 1e-24  ;;  %v4318_v19 = vpop.eup %3114  ;;  %v4321_v60 = vmax.f32 %v1309_v38, 1e-24 }
 0x281   :  { %v1355_v8 = vmul.f32 %v4318_v19, %v4271_v1  ;;  %v4331_v44 = vpop.eup %3116  ;;  %vm1361_vm1 = vweird.f32 %v4318_v19  ;;  %v753_v52 = vsel %vm4446_vm9, %v4273_v33, %v4421_v14 }
 0x282   :  { %3122 = vrsqrt.f32 %v4321_v60  ;;  %v4344_v22 = vpop.eup %3118  ;;  %v755_v26 = vmul.f32 %v4331_v44, %v4269_v21  ;;  %vm1362_vm4 = vmor %vm1360_vm2, %vm1361_vm1  ;;  %vm1370_vm10 = vweird.f32 %v4321_v60  ;;  %vm710_vm12 = vweird.f32 %v4316_v28 }
 0x283   :  { %v1356_v32 = vmul.f32 %v4318_v19, %v1355_v8  ;;  %3124 = vrsqrt.f32 %v4316_v28  ;;  %v765_v25 = vmul.f32 %v4344_v22, %v4275_v45  ;;  %v4366_v20 = vpop.eup %3120  ;;  %vm761_vm15 = vweird.f32 %v4331_v44 }
 0x284   :  { %v756_v53 = vmul.f32 %v4331_v44, %v755_v26  ;;  %vm760_vm2 = vweird.f32 %v4269_v21  ;;  %v4604_v21 = vmul.f32 %v753_v52, %v3912_v42  ;;  %vm781_vm9 = vweird.f32 %v4366_v20 }
 0x285   :  { %v1357_v50 = vmul.f32 0.5, %v1356_v32  ;;  %v766_v35 = vmul.f32 %v4344_v22, %v765_v25  ;;  %v775_v32 = vmul.f32 %v4366_v20, %v4297_v12 }
 0x286   :  { %v4423_v25 = vmul.f32 0.5, %v756_v53 }
 0x287   :  { %v973_v62 = vpop.xlane.xlu1 %972  ;;  %v1358_v31 = vsub.f32 1.5, %v1357_v50  ;;  %v1311_v39 = vpop.xlane.xlu2 %1310  ;;  %v743_v50 = vsel %vm4410_vm5, %v4259_v43, %v739_v30 }
 0x288   :  { %v4374_v55 = vmax.f32 %v973_v62, 1e-24  ;;  %v4376_v38 = vpop.eup %3122  ;;  %v4382_v56 = vmax.f32 %v1311_v39, 1e-24  ;;  %v4425_v62 = vmul.f32 0.5, %v766_v35 }
 0x289   :  { %v4384_v8 = vpop.eup %3124  ;;  %v1359_v18 = vmul.f32 %v4318_v19, %v1358_v31  ;;  %v1365_v3 = vmul.f32 %v4376_v38, %v4321_v60  ;;  %vm1371_vm7 = vweird.f32 %v4376_v38  ;;  %v4467_v60 = vmul.f32 %v743_v50, %v3902_v16 }
 0x28a   :  { %v705_v49 = vmul.f32 %v4384_v8, %v4316_v28  ;;  %3126 = vrsqrt.f32 %v4382_v56  ;;  %vm711_vm8 = vweird.f32 %v4384_v8  ;;  %vm4455_vm11 = vmor %vm1370_vm10, %vm1371_vm7  ;;  %vm1380_vm1 = vweird.f32 %v4382_v56 }
 0x28b   :  { %v1363_v1 = vsel %vm1362_vm4, %v4318_v19, %v1359_v18  ;;  %v1366_v36 = vmul.f32 %v4376_v38, %v1365_v3  ;;  %3128 = vrsqrt.f32 %v4374_v55  ;;  %vm712_vm13 = vmor %vm710_vm12, %vm711_vm8  ;;  %vm1042_vm4 = vweird.f32 %v4374_v55 }
 0x28c   :  { %v1514_v26 = vmul.f32 %v1363_v1, %v4030_v5  ;;  %v706_v19 = vmul.f32 %v4384_v8, %v705_v49  ;;  %v776_v5 = vmul.f32 %v4366_v20, %v775_v32  ;;  %vm771_vm7 = vweird.f32 %v4344_v22 }
 0x28d   :  { %v1367_v29 = vmul.f32 0.5, %v1366_v36 }
 0x28e   :  { %v1530_v31 = vadd.f32 %v1514_v26, %v1192_v54  ;;  %v707_v39 = vmul.f32 0.5, %v706_v19  ;;  %v667_v26 = vpop.xlane.xlu0 %666  ;;  %v758_v19 = vsub.f32 1.5, %v4423_v25 }
 0x28f   :  { %v975_v27 = vpop.xlane.xlu1 %974  ;;  %v1368_v18 = vsub.f32 1.5, %v1367_v29  ;;  %v1313_v3 = vpop.xlane.xlu2 %1312 }
 0x290   :  { %v4431_v43 = vmax.f32 %v975_v27, 1e-24  ;;  %v4433_v30 = vpop.eup %3126  ;;  %v4435_v47 = vmax.f32 %v1530_v31, 0.0  ;;  %v708_v53 = vsub.f32 1.5, %v707_v39  ;;  %v4438_v24 = vmax.f32 %v1313_v3, 1e-24 }
 0x291   :  { %v4440_v54 = vpop.eup %3128  ;;  %v1369_v49 = vmul.f32 %v4376_v38, %v1368_v18  ;;  %v1375_v32 = vmul.f32 %v4433_v30, %v4382_v56  ;;  %v768_v31 = vsub.f32 1.5, %v4425_v62  ;;  %v4487_v18 = vmul.f32 0.5, %v776_v5 }
 0x292   :  { %3130 = vrsqrt.f32 %v4431_v43  ;;  %v709_v36 = vmul.f32 %v4384_v8, %v708_v53  ;;  %v1037_v15 = vmul.f32 %v4440_v54, %v4374_v55  ;;  %1690 = vmatmul.f32.vlgmr.msra.gmra.mxu1 %v4435_v47  ;;  %1755 = vmatmul.f32.vlgmr.msrb.gmra.mxu2 %v4435_v47  ;;  %v4489_v3 = vmax.f32 %v667_v26, 1e-24 }
 0x293   :  { %3132 = vrsqrt.f32 %v4438_v24  ;;  %v1376_v28 = vmul.f32 %v4433_v30, %v1375_v32  ;;  %1820 = vmatmul.f32.vlgmr.msrb.gmra.mxu3 %v4435_v47  ;;  %1885 = vmatmul.f32.vlgmr.msrb.gmra.mxu0 %v4435_v47  ;;  %v1373_v16 = vsel %vm4455_vm11, %v4376_v38, %v1369_v49  ;;  %vm1381_vm14 = vweird.f32 %v4433_v30 }
 0x294   :  { %v713_v50 = vsel %vm712_vm13, %v4384_v8, %v709_v36  ;;  %v1038_v29 = vmul.f32 %v4440_v54, %v1037_v15  ;;  %3134 = vrsqrt.f32 %v4427_v48  ;;  %v1515_v8 = vmul.f32 %v1373_v16, %v4042_v51  ;;  %vm4513_vm3 = vmor %vm1380_vm1, %vm1381_vm14 }
 0x295   :  { %v855_v39 = vmul.f32 %v713_v50, %v4040_v11  ;;  %v1377_v27 = vmul.f32 0.5, %v1376_v28  ;;  %vm1043_vm0 = vweird.f32 %v4440_v54  ;;  %vm1052_vm11 = vweird.f32 %v4431_v43 }
 0x296   :  { %v1039_v25 = vmul.f32 0.5, %v1038_v29  ;;  %v4524_v29 = vmul.f32 %v4331_v44, %v758_v19  ;;  %vm1044_vm5 = vmor %vm1042_vm4, %vm1043_vm0  ;;  %vm1390_vm12 = vweird.f32 %v4438_v24 }
 0x297   :  { %v977_v53 = vpop.xlane.xlu1 %976  ;;  %v1193_v49 = vadd.f32 %v4355_v0, %v855_v39  ;;  %v1378_v62 = vsub.f32 1.5, %v1377_v27  ;;  %v1315_v32 = vpop.xlane.xlu2 %1314  ;;  %vm4585_vm0 = vmor %vm760_vm2, %vm761_vm15 }
 0x298   :  { %v4492_v38 = vpop.eup %3130  ;;  %v4496_v1 = vmax.f32 %v977_v53, 1e-24  ;;  %v1040_v5 = vsub.f32 1.5, %v1039_v25  ;;  %v4504_v15 = vmax.f32 %v1315_v32, 1e-24  ;;  %v4539_v53 = vmul.f32 %v4344_v22, %v768_v31  ;;  %vm4616_vm15 = vmor %vm770_vm6, %vm771_vm7 }
 0x299   :  { %v4498_v11 = vpop.eup %3132  ;;  %v1047_v36 = vmul.f32 %v4492_v38, %v4431_v43  ;;  %v1531_v26 = vadd.f32 %v1515_v8, %v1193_v49  ;;  %v1379_v51 = vmul.f32 %v4433_v30, %v1378_v62  ;;  %v778_v8 = vsub.f32 1.5, %v4487_v18 }
 0x29a   :  { %v1385_v0 = vmul.f32 %v4498_v11, %v4438_v24  ;;  %v1041_v16 = vmul.f32 %v4440_v54, %v1040_v5  ;;  %3136 = vrsqrt.f32 %v4504_v15  ;;  %v4521_v56 = vpop.eup %3134  ;;  %vm1053_vm8 = vweird.f32 %v4492_v38 }
 0x29b   :  { %v1048_v50 = vmul.f32 %v4492_v38, %v1047_v36  ;;  %v4526_v39 = vmax.f32 %v1531_v26, 0.0  ;;  %3138 = vrsqrt.f32 %v4496_v1  ;;  %v1383_v55 = vsel %vm4513_vm3, %v4433_v30, %v1379_v51  ;;  %v669_v26 = vpop.xlane.xlu0 %668  ;;  %vm1054_vm13 = vmor %vm1052_vm11, %vm1053_vm8 }
 0x29c   :  { %v1386_v27 = vmul.f32 %v4498_v11, %v1385_v0  ;;  %v1045_v19 = vsel %vm1044_vm5, %v4440_v54, %v1041_v16  ;;  %v785_v32 = vmul.f32 %v4521_v56, %v4427_v48  ;;  %3140 = vrsqrt.f32 %v4489_v3 }
 0x29d   :  { %v1049_v25 = vmul.f32 0.5, %v1048_v50  ;;  %v1178_v49 = vmul.f32 %v1045_v19, %v4051_v10  ;;  %1693 = vmatmul.f32.gmra.mxu1 %v4526_v39  ;;  %1758 = vmatmul.f32.gmra.mxu2 %v4526_v39  ;;  %v1516_v10 = vmul.f32 %v1383_v55, %v4053_v17  ;;  %vm1391_vm10 = vweird.f32 %v4498_v11 }
 0x29e   :  { %v1387_v62 = vmul.f32 0.5, %v1386_v27  ;;  %1823 = vmatmul.f32.gmra.mxu3 %v4526_v39  ;;  %1888 = vmatmul.f32.gmra.mxu0 %v4526_v39  ;;  %v786_v27 = vmul.f32 %v4521_v56, %v785_v32  ;;  %vm4573_vm14 = vmor %vm1390_vm12, %vm1391_vm10  ;;  %v773_v45 = vsel %vm4616_vm15, %v4344_v22, %v4539_v53  ;;  %vm1400_vm3 = vweird.f32 %v4504_v15 }
 0x29f   :  { %v1050_v30 = vsub.f32 1.5, %v1049_v25  ;;  %v979_v54 = vpop.xlane.xlu1 %978  ;;  %v1194_v31 = vadd.f32 %v1178_v49, %v4361_v46  ;;  %v1317_v5 = vpop.xlane.xlu2 %1316  ;;  %vm1062_vm5 = vweird.f32 %v4496_v1  ;;  %vm780_vm6 = vweird.f32 %v4297_v12 }
 0x2a0   :  { %v1388_v18 = vsub.f32 1.5, %v1387_v62  ;;  %v4554_v36 = vpop.eup %3136  ;;  %v4558_v0 = vmax.f32 %v1317_v5, 1e-24  ;;  %v4560_v28 = vmax.f32 %v979_v54, 1e-24  ;;  %v4632_v35 = vmul.f32 0.5, %v786_v27  ;;  %vm4677_vm8 = vmor %vm780_vm6, %vm781_vm9 }
 0x2a1   :  { %v1051_v51 = vmul.f32 %v4492_v38, %v1050_v30  ;;  %v4562_v16 = vpop.eup %3138  ;;  %v1532_v17 = vadd.f32 %v1516_v10, %v1194_v31  ;;  %v1395_v50 = vmul.f32 %v4554_v36, %v4504_v15  ;;  %v763_v30 = vsel %vm4585_vm0, %v4331_v44, %v4524_v29 }
 0x2a2   :  { %v1389_v46 = vmul.f32 %v4498_v11, %v1388_v18  ;;  %v1057_v19 = vmul.f32 %v4562_v16, %v4496_v1  ;;  %3142 = vrsqrt.f32 %v4558_v0  ;;  %v4596_v32 = vpop.eup %3140  ;;  %v4630_v44 = vmul.f32 %v4366_v20, %v778_v8 }
 0x2a3   :  { %v1055_v55 = vsel %vm1054_vm13, %v4492_v38, %v1051_v51  ;;  %v4589_v25 = vmax.f32 %v1532_v17, 0.0  ;;  %v1396_v62 = vmul.f32 %v4554_v36, %v1395_v50  ;;  %3144 = vrsqrt.f32 %v4560_v28 }
 0x2a4   :  { %v1393_v49 = vsel %vm4573_vm14, %v4498_v11, %v1389_v46  ;;  %v1179_v38 = vmul.f32 %v1055_v55, %v4062_v7  ;;  %v1058_v11 = vmul.f32 %v4562_v16, %v1057_v19  ;;  %vm1401_vm1 = vweird.f32 %v4554_v36  ;;  %v671_v46 = vpop.xlane.xlu0 %670 }
 0x2a5   :  { %v1517_v42 = vmul.f32 %v1393_v49, %v4064_v63  ;;  %v1397_v14 = vmul.f32 0.5, %v1396_v62  ;;  %1696 = vmatmul.f32.gmra.mxu1 %v4589_v25  ;;  %1761 = vmatmul.f32.gmra.mxu2 %v4589_v25  ;;  %vm1063_vm2 = vweird.f32 %v4562_v16  ;;  %v795_v17 = vmul.f32 %v4596_v32, %v4489_v3  ;;  %vm4656_vm4 = vmor %vm1400_vm3, %vm1401_vm1 }
 0x2a6   :  { %v1195_v33 = vadd.f32 %v1179_v38, %v4404_v59  ;;  %v1059_v52 = vmul.f32 0.5, %v1058_v11  ;;  %1826 = vmatmul.f32.gmra.mxu3 %v4589_v25  ;;  %1891 = vmatmul.f32.gmra.mxu0 %v4589_v25  ;;  %v4636_v59 = vmax.f32 %v669_v26, 1e-24  ;;  %v4664_v15 = vmul.f32 %v763_v30, %v3924_v2  ;;  %vm1064_vm7 = vmor %vm1062_vm5, %vm1063_vm2 }
 0x2a7   :  { %v981_v63 = vpop.xlane.xlu1 %980  ;;  %v1398_v54 = vsub.f32 1.5, %v1397_v14  ;;  %v1319_v10 = vpop.xlane.xlu2 %1318  ;;  %v4673_v19 = vmul.f32 %v773_v45, %v3936_v58  ;;  %v783_v58 = vsel %vm4677_vm8, %v4366_v20, %v4630_v44  ;;  %v4697_v62 = vmax.f32 %v671_v46, 1e-24 }
 0x2a8   :  { %v1533_v29 = vadd.f32 %v1517_v42, %v1195_v33  ;;  %v4639_v31 = vpop.eup %3142  ;;  %v1060_v22 = vsub.f32 1.5, %v1059_v52  ;;  %v4642_v53 = vmax.f32 %v1319_v10, 1e-24  ;;  %v4644_v8 = vmax.f32 %v981_v63, 1e-24 }
 0x2a9   :  { %v1399_v5 = vmul.f32 %v4554_v36, %v1398_v54  ;;  %v1405_v26 = vmul.f32 %v4639_v31, %v4558_v0  ;;  %v4652_v51 = vpop.eup %3144  ;;  %vm1411_vm10 = vweird.f32 %v4639_v31  ;;  %vm790_vm12 = vweird.f32 %v4427_v48 }
 0x2aa   :  { %v4646_v18 = vmax.f32 %v1533_v29, 0.0  ;;  %v1061_v27 = vmul.f32 %v4562_v16, %v1060_v22  ;;  %3146 = vrsqrt.f32 %v4642_v53  ;;  %v1067_v55 = vmul.f32 %v4652_v51, %v4560_v28 }
 0x2ab   :  { %v1406_v43 = vmul.f32 %v4639_v31, %v1405_v26  ;;  %v1403_v2 = vsel %vm4656_vm4, %v4554_v36, %v1399_v5  ;;  %3148 = vrsqrt.f32 %v4644_v8  ;;  %v788_v36 = vsub.f32 1.5, %v4632_v35 }
 0x2ac   :  { %v1065_v12 = vsel %vm1064_vm7, %v4562_v16, %v1061_v27  ;;  %v1068_v38 = vmul.f32 %v4652_v51, %v1067_v55  ;;  %v796_v16 = vmul.f32 %v4596_v32, %v795_v17  ;;  %3150 = vrsqrt.f32 %v4636_v59  ;;  %v673_v17 = vpop.xlane.xlu0 %672 }
 0x2ad   :  { %v1180_v24 = vmul.f32 %v1065_v12, %v4073_v6  ;;  %v1407_v49 = vmul.f32 0.5, %v1406_v43  ;;  %1699 = vmatmul.f32.gmra.mxu1 %v4646_v18  ;;  %1764 = vmatmul.f32.gmra.mxu2 %v4646_v18  ;;  %v1518_v20 = vmul.f32 %v1403_v2, %v4075_v4  ;;  %vm1073_vm11 = vweird.f32 %v4652_v51 }
 0x2ae   :  { %1829 = vmatmul.f32.gmra.mxu3 %v4646_v18  ;;  %1894 = vmatmul.f32.gmra.mxu0 %v4646_v18  ;;  %v1069_v7 = vmul.f32 0.5, %v1068_v38  ;;  %vm791_vm13 = vweird.f32 %v4521_v56  ;;  %v797_v63 = vmul.f32 0.5, %v796_v16  ;;  %vm1410_vm14 = vweird.f32 %v4558_v0 }
 0x2af   :  { %v983_v6 = vpop.xlane.xlu1 %982  ;;  %v1196_v30 = vadd.f32 %v1180_v24, %v4467_v60  ;;  %v1408_v11 = vsub.f32 1.5, %v1407_v49  ;;  %v1321_v42 = vpop.xlane.xlu2 %1320  ;;  %vm4724_vm0 = vmor %vm1410_vm14, %vm1411_vm10  ;;  %vm1072_vm15 = vweird.f32 %v4560_v28  ;;  %v4734_v0 = vmul.f32 %v783_v58, %v3948_v61 }
 0x2b0   :  { %v4703_v33 = vpop.eup %3146  ;;  %v4707_v14 = vmax.f32 %v1321_v42, 1e-24  ;;  %v4709_v45 = vmax.f32 %v983_v6, 1e-24  ;;  %v1070_v35 = vsub.f32 1.5, %v1069_v7  ;;  %v4737_v26 = vmul.f32 %v4521_v56, %v788_v36  ;;  %vm1074_vm9 = vmor %vm1072_vm15, %vm1073_vm11 }
 0x2b1   :  { %v1534_v44 = vadd.f32 %v1518_v20, %v1196_v30  ;;  %v1409_v4 = vmul.f32 %v4639_v31, %v1408_v11  ;;  %v1415_v60 = vmul.f32 %v4703_v33, %v4642_v53  ;;  %v4715_v52 = vpop.eup %3148  ;;  %v798_v27 = vsub.f32 1.5, %v797_v63  ;;  %vm4780_vm4 = vmor %vm790_vm12, %vm791_vm13 }
 0x2b2   :  { %3152 = vrsqrt.f32 %v4707_v14  ;;  %v1071_v10 = vmul.f32 %v4652_v51, %v1070_v35  ;;  %v4731_v5 = vpop.eup %3150  ;;  %v1077_v46 = vmul.f32 %v4715_v52, %v4644_v8  ;;  %vm801_vm1 = vweird.f32 %v4596_v32 }
 0x2b3   :  { %v4720_v29 = vmax.f32 %v1534_v44, 0.0  ;;  %v1416_v22 = vmul.f32 %v4703_v33, %v1415_v60  ;;  %3154 = vrsqrt.f32 %v4709_v45  ;;  %v1413_v28 = vsel %vm4724_vm0, %v4639_v31, %v1409_v4 }
 0x2b4   :  { %3156 = vrsqrt.f32 %v4697_v62  ;;  %v1075_v61 = vsel %vm1074_vm9, %v4652_v51, %v1071_v10  ;;  %v1078_v55 = vmul.f32 %v4715_v52, %v1077_v46  ;;  %v805_v31 = vmul.f32 %v4731_v5, %v4636_v59 }
 0x2b5   :  { %v1417_v50 = vmul.f32 0.5, %v1416_v22  ;;  %1702 = vmatmul.f32.gmra.mxu1 %v4720_v29  ;;  %1767 = vmatmul.f32.gmra.mxu2 %v4720_v29  ;;  %v1181_v43 = vmul.f32 %v1075_v61, %v4084_v9  ;;  %v4758_v51 = vmax.f32 %v673_v17, 1e-24  ;;  %vm800_vm2 = vweird.f32 %v4489_v3 }
 0x2b6   :  { %1832 = vmatmul.f32.gmra.mxu3 %v4720_v29  ;;  %1897 = vmatmul.f32.gmra.mxu0 %v4720_v29  ;;  %v1519_v9 = vmul.f32 %v1413_v28, %v4086_v34  ;;  %v1079_v38 = vmul.f32 0.5, %v1078_v55  ;;  %vm1421_vm3 = vweird.f32 %v4703_v33  ;;  %vm1083_vm5 = vweird.f32 %v4715_v52  ;;  %vm4840_vm13 = vmor %vm800_vm2, %vm801_vm1 }
 0x2b7   :  { %v985_v1 = vpop.xlane.xlu1 %984  ;;  %v1418_v2 = vsub.f32 1.5, %v1417_v50  ;;  %v1323_v12 = vpop.xlane.xlu2 %1322  ;;  %v1197_v49 = vadd.f32 %v1181_v43, %v4604_v21  ;;  %v793_v7 = vsel %vm4780_vm4, %v4521_v56, %v4737_v26  ;;  %vm1420_vm6 = vweird.f32 %v4642_v53 }
 0x2b8   :  { %v4760_v58 = vmax.f32 %v985_v1, 1e-24  ;;  %v4762_v24 = vpop.eup %3152  ;;  %v4767_v36 = vmax.f32 %v1323_v12, 1e-24  ;;  %v1080_v30 = vsub.f32 1.5, %v1079_v38  ;;  %v4797_v44 = vmul.f32 %v4596_v32, %v798_v27  ;;  %vm4803_vm7 = vmor %vm1420_vm6, %vm1421_vm3 }
 0x2b9   :  { %v1419_v16 = vmul.f32 %v4703_v33, %v1418_v2  ;;  %v1425_v6 = vmul.f32 %v4762_v24, %v4707_v14  ;;  %v4774_v20 = vpop.eup %3154  ;;  %v1535_v21 = vadd.f32 %v1519_v9, %v1197_v49  ;;  %vm1082_vm8 = vweird.f32 %v4644_v8 }
 0x2ba   :  { %3158 = vrsqrt.f32 %v4760_v58  ;;  %v4786_v11 = vpop.eup %3156  ;;  %v1087_v42 = vmul.f32 %v4774_v20, %v4709_v45  ;;  %v1081_v60 = vmul.f32 %v4715_v52, %v1080_v30  ;;  %vm1084_vm10 = vmor %vm1082_vm8, %vm1083_vm5  ;;  %v806_v10 = vmul.f32 %v4731_v5, %v805_v31 }
 0x2bb   :  { %3160 = vrsqrt.f32 %v4767_v36  ;;  %v1426_v48 = vmul.f32 %v4762_v24, %v1425_v6  ;;  %v4799_v4 = vmax.f32 %v1535_v21, 0.0  ;;  %v1423_v53 = vsel %vm4803_vm7, %v4703_v33, %v1419_v16 }
 0x2bc   :  { %3162 = vrsqrt.f32 %v4758_v51  ;;  %v1088_v54 = vmul.f32 %v4774_v20, %v1087_v42  ;;  %v815_v22 = vmul.f32 %v4786_v11, %v4697_v62  ;;  %v1085_v17 = vsel %vm1084_vm10, %v4715_v52, %v1081_v60 }
 0x2bd   :  { %v1427_v63 = vmul.f32 0.5, %v1426_v48  ;;  %vm1431_vm11 = vweird.f32 %v4762_v24  ;;  %1705 = vmatmul.f32.gmra.mxu1 %v4799_v4  ;;  %1770 = vmatmul.f32.gmra.mxu2 %v4799_v4  ;;  %v1182_v33 = vmul.f32 %v1085_v17, %v4097_v41  ;;  %vm1093_vm12 = vweird.f32 %v4774_v20 }
 0x2be   :  { %v1089_v61 = vmul.f32 0.5, %v1088_v54  ;;  %1835 = vmatmul.f32.gmra.mxu3 %v4799_v4  ;;  %1900 = vmatmul.f32.gmra.mxu0 %v4799_v4  ;;  %v1520_v27 = vmul.f32 %v1423_v53, %v4099_v57  ;;  %v803_v9 = vsel %vm4840_vm13, %v4596_v32, %v4797_v44  ;;  %vm1430_vm14 = vweird.f32 %v4707_v14 }
 0x2bf   :  { %v987_v8 = vpop.xlane.xlu1 %986  ;;  %v1428_v28 = vsub.f32 1.5, %v1427_v63  ;;  %v1325_v52 = vpop.xlane.xlu2 %1324  ;;  %v1198_v31 = vadd.f32 %v1182_v33, %v4664_v15  ;;  %vm4859_vm0 = vmor %vm1430_vm14, %vm1431_vm11  ;;  %vm1092_vm15 = vweird.f32 %v4709_v45  ;;  %v4866_v14 = vmul.f32 0.5, %v806_v10 }
 0x2c0   :  { %v4821_v46 = vpop.eup %3158  ;;  %v4832_v55 = vmax.f32 %v1325_v52, 1e-24  ;;  %v4834_v1 = vmax.f32 %v987_v8, 1e-24  ;;  %v1090_v57 = vsub.f32 1.5, %v1089_v61  ;;  %v816_v6 = vmul.f32 %v4786_v11, %v815_v22  ;;  %vm1094_vm9 = vmor %vm1092_vm15, %vm1093_vm12  ;;  %v6895_v52 = vld [vmem:[#allocation12_spill] sm:$0xff] }
 0x2c1   :  { %v4827_v50 = vpop.eup %3160  ;;  %v1097_v43 = vmul.f32 %v4821_v46, %v4760_v58  ;;  %v1429_v2 = vmul.f32 %v4762_v24, %v1428_v28  ;;  %v1536_v15 = vadd.f32 %v1520_v27, %v1198_v31  ;;  %vm1103_vm1 = vweird.f32 %v4821_v46  ;;  %v6896_v31 = vld [vmem:[#allocation5_spill] sm:$0xff] }
 0x2c2   :  { %v1435_v12 = vmul.f32 %v4827_v50, %v4767_v36  ;;  %3164 = vrsqrt.f32 %v4832_v55  ;;  %v4855_v49 = vpop.eup %3162  ;;  %v1091_v16 = vmul.f32 %v4774_v20, %v1090_v57  ;;  %vm1441_vm2 = vweird.f32 %v4827_v50 }
 0x2c3   :  { %v1098_v3 = vmul.f32 %v4821_v46, %v1097_v43  ;;  %3166 = vrsqrt.f32 %v4834_v1  ;;  %v4872_v30 = vmax.f32 %v1536_v15, 0.0  ;;  %v1433_v48 = vsel %vm4859_vm0, %v4762_v24, %v1429_v2 }
 0x2c4   :  { %v1436_v32 = vmul.f32 %v4827_v50, %v1435_v12  ;;  %v1095_v45 = vsel %vm1094_vm9, %v4774_v20, %v1091_v16  ;;  %v825_v44 = vmul.f32 %v4855_v49, %v4758_v51  ;;  %vm1102_vm3 = vweird.f32 %v4760_v58  ;;  %v6898_v16 = vld [vmem:[#allocation6_spill] sm:$0xff] }
 0x2c5   :  { %v1099_v21 = vmul.f32 0.5, %v1098_v3  ;;  %v1183_v35 = vmul.f32 %v1095_v45, %v4110_v23  ;;  %1708 = vmatmul.f32.gmra.mxu1 %v4872_v30  ;;  %1773 = vmatmul.f32.gmra.mxu2 %v4872_v30  ;;  %v1521_v23 = vmul.f32 %v1433_v48, %v4112_v37  ;;  %vm1440_vm5 = vweird.f32 %v4767_v36  ;;  %vm1104_vm6 = vmor %vm1102_vm3, %vm1103_vm1  ;;  %v675_v36 = vpop.xlane.xlu0 %674 }
 0x2c6   :  { %v1437_v42 = vmul.f32 0.5, %v1436_v32  ;;  %1838 = vmatmul.f32.gmra.mxu3 %v4872_v30  ;;  %1903 = vmatmul.f32.gmra.mxu0 %v4872_v30  ;;  %v817_v8 = vmul.f32 0.5, %v816_v6  ;;  %vm1442_vm7 = vmor %vm1440_vm5, %vm1441_vm2  ;;  %v4921_v2 = vmul.f32 %v793_v7, %v6896_v31  ;;  %v4930_v32 = vmul.f32 %v803_v9, %v6898_v16  ;;  %v1657_v16 = vld [vmem:[#allocation2 + $0x5f0] sm:$0xff] }
 0x2c7   :  { %v1100_v60 = vsub.f32 1.5, %v1099_v21  ;;  %v989_v53 = vpop.xlane.xlu1 %988  ;;  %v1327_v24 = vpop.xlane.xlu2 %1326  ;;  %v1199_v10 = vadd.f32 %v1183_v35, %v4673_v19  ;;  %v808_v34 = vsub.f32 1.5, %v4866_v14  ;;  %v4933_v56 = vmax.f32 %v675_v36, 1e-24  ;;  %1934 = vmatpush.msrb.mxu1 %v1657_v16 }
 0x2c8   :  { %v1438_v63 = vsub.f32 1.5, %v1437_v42  ;;  %v4886_v20 = vmax.f32 %v989_v53, 1e-24  ;;  %v4888_v54 = vpop.eup %3164  ;;  %v4895_v58 = vmax.f32 %v1327_v24, 1e-24  ;;  %v818_v6 = vsub.f32 1.5, %v817_v8 }
 0x2c9   :  { %v1101_v22 = vmul.f32 %v4821_v46, %v1100_v60  ;;  %v1445_v37 = vmul.f32 %v4888_v54, %v4832_v55  ;;  %v4904_v19 = vpop.eup %3166  ;;  %v1537_v33 = vadd.f32 %v1521_v23, %v1199_v10  ;;  %vm811_vm4 = vweird.f32 %v4731_v5 }
 0x2ca   :  { %v1439_v17 = vmul.f32 %v4827_v50, %v1438_v63  ;;  %3168 = vrsqrt.f32 %v4886_v20  ;;  %v1107_v41 = vmul.f32 %v4904_v19, %v4834_v1  ;;  %vm1451_vm8 = vweird.f32 %v4888_v54 }
 0x2cb   :  { %v1105_v28 = vsel %vm1104_vm6, %v4821_v46, %v1101_v22  ;;  %3170 = vrsqrt.f32 %v4895_v58  ;;  %v1446_v43 = vmul.f32 %v4888_v54, %v1445_v37  ;;  %v826_v46 = vmul.f32 %v4855_v49, %v825_v44 }
 0x2cc   :  { %v1443_v61 = vsel %vm1442_vm7, %v4827_v50, %v1439_v17  ;;  %v1184_v27 = vmul.f32 %v1105_v28, %v6895_v52  ;;  %v4924_v57 = vmax.f32 %v1537_v33, 0.0  ;;  %v6897_v50 = vld [vmem:[#allocation13_spill] sm:$0xff]  ;;  %v1108_v38 = vmul.f32 %v4904_v19, %v1107_v41 }
 0x2cd   :  { %v1522_v12 = vmul.f32 %v1443_v61, %v6897_v50  ;;  %v1447_v15 = vmul.f32 0.5, %v1446_v43  ;;  %v4944_v14 = vmul.f32 0.5, %v826_v46  ;;  %vm1113_vm10 = vweird.f32 %v4904_v19  ;;  %v6901_v61 = vld [vmem:[#allocation14_spill] sm:$0xff]  ;;  %v677_v41 = vpop.xlane.xlu0 %676  ;;  %v6902_v50 = vld [vmem:[#allocation15_spill] sm:$0xff] }
 0x2ce   :  { %v1200_v3 = vadd.f32 %v1184_v27, %v4734_v0  ;;  %v1109_v45 = vmul.f32 0.5, %v1108_v38  ;;  %1711 = vmatmul.f32.gmra.mxu1 %v4924_v57  ;;  %1776 = vmatmul.f32.gmra.mxu2 %v4924_v57  ;;  %vm810_vm11 = vweird.f32 %v4636_v59  ;;  %vm1450_vm12 = vweird.f32 %v4832_v55 }
 0x2cf   :  { %v991_v26 = vpop.xlane.xlu1 %990  ;;  %v1448_v48 = vsub.f32 1.5, %v1447_v15  ;;  %v1329_v0 = vpop.xlane.xlu2 %1328  ;;  %1841 = vmatmul.f32.gmra.mxu3 %v4924_v57  ;;  %1906 = vmatmul.f32.gmra.mxu0 %v4924_v57  ;;  %vm1112_vm13 = vweird.f32 %v4834_v1  ;;  %vm4966_vm14 = vmor %vm1450_vm12, %vm1451_vm8  ;;  %v4974_v55 = vmul.f32 %v4731_v5, %v808_v34  ;;  %v4977_v1 = vmul.f32 %v4786_v11, %v818_v6  ;;  %v1658_v34 = vld [vmem:[#allocation2 + $0x5f8] sm:$0xff] }
 0x2d0   :  { %v4935_v7 = vpop.eup %3168  ;;  %v1538_v21 = vadd.f32 %v1522_v12, %v1200_v3  ;;  %v4939_v42 = vmax.f32 %v991_v26, 1e-24  ;;  %v4951_v35 = vmax.f32 %v1329_v0, 1e-24  ;;  %v1110_v53 = vsub.f32 1.5, %v1109_v45  ;;  %vm1114_vm15 = vmor %vm1112_vm13, %vm1113_vm10  ;;  %1999 = vmatpush.msra.mxu2 %v1658_v34  ;;  %v1651_v0 = vld [vmem:[#allocation2 + $0x5c0] sm:$0xff] }
 0x2d1   :  { %v4941_v9 = vpop.eup %3170  ;;  %v1117_v44 = vmul.f32 %v4935_v7, %v4886_v20  ;;  %v1449_v60 = vmul.f32 %v4888_v54, %v1448_v48  ;;  %vm821_vm0 = vweird.f32 %v4786_v11  ;;  %v828_v36 = vsub.f32 1.5, %v4944_v14  ;;  %v1652_v14 = vld [vmem:[#allocation2 + $0x5c8] sm:$0xff]  ;;  %vm5033_vm7 = vmor %vm810_vm11, %vm811_vm4  ;;  %1935 = vmatpush.msrb.mxu1 %v1651_v0 }
 0x2d2   :  { %v1455_v63 = vmul.f32 %v4941_v9, %v4895_v58  ;;  %3172 = vrsqrt.f32 %v4951_v35  ;;  %v4962_v23 = vmax.f32 %v1538_v21, 0.0  ;;  %v1111_v22 = vmul.f32 %v4904_v19, %v1110_v53  ;;  %2000 = vmatpush.msra.mxu2 %v1652_v14 }
 0x2d3   :  { %v1118_v24 = vmul.f32 %v4935_v7, %v1117_v44  ;;  %3174 = vrsqrt.f32 %v4939_v42  ;;  %v1453_v8 = vsel %vm4966_vm14, %v4888_v54, %v1449_v60  ;;  %vm1123_vm9 = vweird.f32 %v4935_v7 }
 0x2d4   :  { %v1456_v17 = vmul.f32 %v4941_v9, %v1455_v63  ;;  %3176 = vrsqrt.f32 %v4933_v56  ;;  %v1115_v33 = vsel %vm1114_vm15, %v4904_v19, %v1111_v22  ;;  %vm1461_vm1 = vweird.f32 %v4941_v9 }
 0x2d5   :  { %v1119_v37 = vmul.f32 0.5, %v1118_v24  ;;  %v1185_v52 = vmul.f32 %v1115_v33, %v6901_v61  ;;  %vm1122_vm2 = vweird.f32 %v4886_v20  ;;  %v1523_v12 = vmul.f32 %v1453_v8, %v6902_v50  ;;  %v6910_v8 = vld [vmem:[#allocation17_spill] sm:$0xff] }
 0x2d6   :  { %v1457_v28 = vmul.f32 0.5, %v1456_v17  ;;  %1714 = vmatmul.f32.gmra.mxu1 %v4962_v23  ;;  %1779 = vmatmul.f32.gmra.mxu2 %v4962_v23  ;;  %vm1460_vm3 = vweird.f32 %v4895_v58  ;;  %vm1124_vm5 = vmor %vm1122_vm2, %vm1123_vm9  ;;  %v5016_v21 = vmax.f32 %v677_v41, 1e-24  ;;  %v813_v59 = vsel %vm5033_vm7, %v4731_v5, %v4974_v55  ;;  %v1646_v17 = vld [vmem:[#allocation2 + $0x598] sm:$0xff] }
 0x2d7   :  { %v1120_v27 = vsub.f32 1.5, %v1119_v37  ;;  %v993_v43 = vpop.xlane.xlu1 %992  ;;  %v1331_v54 = vpop.xlane.xlu2 %1330  ;;  %v1201_v3 = vadd.f32 %v1185_v52, %v4921_v2  ;;  %1844 = vmatmul.f32.gmra.mxu3 %v4962_v23  ;;  %1909 = vmatmul.f32.gmra.mxu0 %v4962_v23  ;;  %vm5020_vm6 = vmor %vm1460_vm3, %vm1461_vm1  ;;  %vm820_vm4 = vweird.f32 %v4697_v62  ;;  %vm831_vm10 = vweird.f32 %v4855_v49 }
 0x2d8   :  { %v1458_v31 = vsub.f32 1.5, %v1457_v28  ;;  %v4994_v19 = vmax.f32 %v993_v43, 1e-24  ;;  %v4996_v46 = vpop.eup %3172  ;;  %v5003_v38 = vmax.f32 %v1331_v54, 1e-24  ;;  %vm5053_vm8 = vmor %vm820_vm4, %vm821_vm0  ;;  %2001 = vmatpush.msra.mxu2 %v1646_v17  ;;  %v5065_v28 = vmul.f32 %v4855_v49, %v828_v36  ;;  %v1640_v43 = vld [vmem:[#allocation2 + $0x568] sm:$0xff] }
 0x2d9   :  { %v1121_v15 = vmul.f32 %v4935_v7, %v1120_v27  ;;  %v5005_v6 = vpop.eup %3174  ;;  %v1465_v2 = vmul.f32 %v4996_v46, %v4951_v35  ;;  %v1539_v48 = vadd.f32 %v1523_v12, %v1201_v3  ;;  %v823_v62 = vsel %vm5053_vm8, %v4786_v11, %v4977_v1  ;;  %v1639_v27 = vld [vmem:[#allocation2 + $0x560] sm:$0xff]  ;;  %v1633_v12 = vld [vmem:[#allocation2 + $0x530] sm:$0xff]  ;;  %v1634_v3 = vld [vmem:[#allocation2 + $0x538] sm:$0xff] }
 0x2da   :  { %v1459_v26 = vmul.f32 %v4941_v9, %v1458_v31  ;;  %3178 = vrsqrt.f32 %v4994_v19  ;;  %v1127_v20 = vmul.f32 %v5005_v6, %v4939_v42  ;;  %v5027_v44 = vpop.eup %3176  ;;  %vm1471_vm11 = vweird.f32 %v4996_v46  ;;  %2002 = vmatpush.msra.mxu2 %v1640_v43 }
 0x2db   :  { %v1125_v58 = vsel %vm1124_vm5, %v4935_v7, %v1121_v15  ;;  %v6907_v7 = vld [vmem:[#allocation16_spill] sm:$0xff]  ;;  %v1466_v24 = vmul.f32 %v4996_v46, %v1465_v2  ;;  %3180 = vrsqrt.f32 %v5003_v38  ;;  %v5048_v10 = vmax.f32 %v1539_v48, 0.0 }
 0x2dc   :  { %v1463_v53 = vsel %vm5020_vm6, %v4941_v9, %v1459_v26  ;;  %v1186_v63 = vmul.f32 %v1125_v58, %v6907_v7  ;;  %v1128_v22 = vmul.f32 %v5005_v6, %v1127_v20  ;;  %v1645_v9 = vld [vmem:[#allocation2 + $0x590] sm:$0xff]  ;;  %3182 = vrsqrt.f32 %v5016_v21  ;;  %v1628_v58 = vld [vmem:[#allocation2 + $0x508] sm:$0xff]  ;;  %2003 = vmatpush.msra.mxu2 %v1634_v3 }
 0x2dd   :  { %v1524_v33 = vmul.f32 %v1463_v53, %v6910_v8  ;;  %v1467_v55 = vmul.f32 0.5, %v1466_v24  ;;  %1936 = vmatpush.msrb.mxu1 %v1645_v9  ;;  %vm1133_vm12 = vweird.f32 %v5005_v6  ;;  %v835_v16 = vmul.f32 %v5027_v44, %v4933_v56  ;;  %v6913_v20 = vld [vmem:[#allocation7_spill] sm:$0xff]  ;;  %v6917_v9 = vld [vmem:[#allocation18_spill] sm:$0xff] }
 0x2de   :  { %v1202_v5 = vadd.f32 %v1186_v63, %v4930_v32  ;;  %v1129_v61 = vmul.f32 0.5, %v1128_v22  ;;  %1717 = vmatmul.f32.gmra.mxu1 %v5048_v10  ;;  %1782 = vmatmul.f32.gmra.mxu2 %v5048_v10  ;;  %vm1470_vm13 = vweird.f32 %v4951_v35  ;;  %vm1132_vm0 = vweird.f32 %v4939_v42  ;;  %v1627_v35 = vld [vmem:[#allocation2 + $0x500] sm:$0xff]  ;;  %v6914_v63 = vld [vmem:[#allocation8_spill] sm:$0xff] }
 0x2df   :  { %v995_v52 = vpop.xlane.xlu1 %994  ;;  %v1468_v31 = vsub.f32 1.5, %v1467_v55  ;;  %v1333_v11 = vpop.xlane.xlu2 %1332  ;;  %1847 = vmatmul.f32.gmra.mxu3 %v5048_v10  ;;  %1912 = vmatmul.f32.gmra.mxu0 %v5048_v10  ;;  %vm5091_vm14 = vmor %vm1470_vm13, %vm1471_vm11  ;;  %v865_v0 = vmul.f32 %v813_v59, %v6913_v20  ;;  %vm830_vm15 = vweird.f32 %v4758_v51  ;;  %v866_v24 = vmul.f32 %v823_v62, %v6914_v63  ;;  %v6918_v62 = vld [vmem:[#allocation19_spill] sm:$0xff] }
 0x2e0   :  { %v5068_v41 = vpop.eup %3178  ;;  %v1540_v32 = vadd.f32 %v1524_v33, %v1202_v5  ;;  %v5073_v1 = vmax.f32 %v995_v52, 1e-24  ;;  %v1130_v36 = vsub.f32 1.5, %v1129_v61  ;;  %v5080_v50 = vmax.f32 %v1333_v11, 1e-24  ;;  %1937 = vmatpush.msrb.mxu1 %v1639_v27  ;;  %vm1134_vm9 = vmor %vm1132_vm0, %vm1133_vm12  ;;  %2004 = vmatpush.msra.mxu2 %v1628_v58  ;;  %v1621_v33 = vld [vmem:[#allocation2 + $0x4d0] sm:$0xff] }
 0x2e1   :  { %v1137_v54 = vmul.f32 %v5068_v41, %v4994_v19  ;;  %v5082_v15 = vpop.eup %3180  ;;  %v1469_v34 = vmul.f32 %v4996_v46, %v1468_v31  ;;  %vm5117_vm1 = vmor %vm830_vm15, %vm831_vm10  ;;  %v836_v22 = vmul.f32 %v5027_v44, %v835_v16  ;;  %vm1143_vm2 = vweird.f32 %v5068_v41  ;;  %v1622_v5 = vld [vmem:[#allocation2 + $0x4d8] sm:$0xff]  ;;  %v1615_v31 = vld [vmem:[#allocation2 + $0x4a0] sm:$0xff] }
 0x2e2   :  { %3184 = vrsqrt.f32 %v5073_v1  ;;  %v1131_v2 = vmul.f32 %v5005_v6, %v1130_v36  ;;  %v1475_v48 = vmul.f32 %v5082_v15, %v5003_v38  ;;  %v5102_v14 = vmax.f32 %v1540_v32, 0.0  ;;  %1938 = vmatpush.msrb.mxu1 %v1633_v12  ;;  %v5107_v42 = vpop.eup %3182  ;;  %v1616_v11 = vld [vmem:[#allocation2 + $0x4a8] sm:$0xff]  ;;  %2005 = vmatpush.msra.mxu2 %v1622_v5 }
 0x2e3   :  { %v1138_v45 = vmul.f32 %v5068_v41, %v1137_v54  ;;  %3186 = vrsqrt.f32 %v5080_v50  ;;  %v1473_v60 = vsel %vm5091_vm14, %v4996_v46, %v1469_v34  ;;  %v833_v46 = vsel %vm5117_vm1, %v4855_v49, %v5065_v28 }
 0x2e4   :  { %v1135_v53 = vsel %vm1134_vm9, %v5005_v6, %v1131_v2  ;;  %v1476_v7 = vmul.f32 %v5082_v15, %v1475_v48  ;;  %1939 = vmatpush.msrb.mxu1 %v1627_v35  ;;  %v1525_v61 = vmul.f32 %v1473_v60, %v6918_v62  ;;  %vm1142_vm3 = vweird.f32 %v4994_v19  ;;  %v1609_v2 = vld [vmem:[#allocation2 + $0x470] sm:$0xff]  ;;  %v1610_v48 = vld [vmem:[#allocation2 + $0x478] sm:$0xff]  ;;  %2006 = vmatpush.msra.mxu2 %v1616_v11 }
 0x2e5   :  { %v1139_v51 = vmul.f32 0.5, %v1138_v45  ;;  %v1187_v17 = vmul.f32 %v1135_v53, %v6917_v9  ;;  %vm1481_vm5 = vweird.f32 %v5082_v15  ;;  %v5144_v54 = vmul.f32 0.5, %v836_v22  ;;  %vm1144_vm6 = vmor %vm1142_vm3, %vm1143_vm2  ;;  %v6919_v19 = vld [vmem:[#allocation20_spill] sm:$0xff] }
 0x2e6   :  { %v1477_v6 = vmul.f32 0.5, %v1476_v7  ;;  %1720 = vmatmul.f32.gmra.mxu1 %v5102_v14  ;;  %1785 = vmatmul.f32.gmra.mxu2 %v5102_v14  ;;  %vm1480_vm7 = vweird.f32 %v5003_v38  ;;  %v845_v20 = vmul.f32 %v5107_v42, %v5016_v21  ;;  %vm841_vm8 = vweird.f32 %v5027_v44 }
 0x2e7   :  { %v1140_v37 = vsub.f32 1.5, %v1139_v51  ;;  %v997_v8 = vpop.xlane.xlu1 %996  ;;  %v1203_v52 = vadd.f32 %v1187_v17, %v865_v0  ;;  %v1335_v27 = vpop.xlane.xlu2 %1334  ;;  %1850 = vmatmul.f32.gmra.mxu3 %v5102_v14  ;;  %1915 = vmatmul.f32.gmra.mxu0 %v5102_v14  ;;  %vm1482_vm4 = vmor %vm1480_vm7, %vm1481_vm5  ;;  %v6920_v0 = vld [vmem:[#allocation21_spill] sm:$0xff]  ;;  %v838_v59 = vsub.f32 1.5, %v5144_v54  ;;  %v1604_v17 = vld [vmem:[#allocation2 + $0x448] sm:$0xff]  ;;  %vm1152_vm12 = vweird.f32 %v5073_v1 }
 0x2e8   :  { %v5128_v55 = vpop.eup %3184  ;;  %v5134_v49 = vmax.f32 %v997_v8, 1e-24  ;;  %v1478_v28 = vsub.f32 1.5, %v1477_v6  ;;  %v5150_v3 = vmax.f32 %v1335_v27, 1e-24  ;;  %1940 = vmatpush.msrb.mxu1 %v1621_v33  ;;  %2007 = vmatpush.msra.mxu2 %v1610_v48  ;;  %v6921_v51 = vld [vmem:[#allocation9_spill] sm:$0xff]  ;;  %vm1490_vm13 = vweird.f32 %v5080_v50 }
 0x2e9   :  { %v1141_v43 = vmul.f32 %v5068_v41, %v1140_v37  ;;  %v1147_v32 = vmul.f32 %v5128_v55, %v5073_v1  ;;  %v5142_v36 = vpop.eup %3186  ;;  %v1541_v12 = vadd.f32 %v1525_v61, %v1203_v52  ;;  %v867_v63 = vmul.f32 %v833_v46, %v6921_v51  ;;  %v1597_v61 = vld [vmem:[#allocation2 + $0x410] sm:$0xff]  ;;  %v1598_v52 = vld [vmem:[#allocation2 + $0x418] sm:$0xff]  ;;  %v1591_v54 = vld [vmem:[#allocation2 + $0x3e0] sm:$0xff] }
 0x2ea   :  { %3188 = vrsqrt.f32 %v5134_v49  ;;  %v1479_v16 = vmul.f32 %v5082_v15, %v1478_v28  ;;  %v1485_v26 = vmul.f32 %v5142_v36, %v5080_v50  ;;  %1941 = vmatpush.msrb.mxu1 %v1615_v31  ;;  %vm1153_vm10 = vweird.f32 %v5128_v55  ;;  %2008 = vmatpush.msra.mxu2 %v1604_v17 }
 0x2eb   :  { %v1145_v34 = vsel %vm1144_vm6, %v5068_v41, %v1141_v43  ;;  %v5158_v45 = vmax.f32 %v1541_v12, 0.0  ;;  %v1148_v58 = vmul.f32 %v5128_v55, %v1147_v32  ;;  %3190 = vrsqrt.f32 %v5150_v3  ;;  %vm1154_vm14 = vmor %vm1152_vm12, %vm1153_vm10  ;;  %v1592_v12 = vld [vmem:[#allocation2 + $0x3e8] sm:$0xff] }
 0x2ec   :  { %v1188_v35 = vmul.f32 %v1145_v34, %v6919_v19  ;;  %v1483_v38 = vsel %vm1482_vm4, %v5082_v15, %v1479_v16  ;;  %v1486_v41 = vmul.f32 %v5142_v36, %v1485_v26  ;;  %1942 = vmatpush.msrb.mxu1 %v1609_v2  ;;  %v1603_v15 = vld [vmem:[#allocation2 + $0x440] sm:$0xff]  ;;  %vm1491_vm11 = vweird.f32 %v5142_v36  ;;  %2009 = vmatpush.msra.mxu2 %v1598_v52  ;;  %v6924_v2 = vld [vmem:[#allocation22_spill] sm:$0xff] }
 0x2ed   :  { %v1526_v60 = vmul.f32 %v1483_v38, %v6920_v0  ;;  %v1149_v7 = vmul.f32 0.5, %v1148_v58  ;;  %v846_v28 = vmul.f32 %v5107_v42, %v845_v20  ;;  %v839_v1 = vmul.f32 %v5027_v44, %v838_v59  ;;  %vm5205_vm0 = vmor %vm1490_vm13, %vm1491_vm11  ;;  %v6927_v38 = vld [vmem:[#allocation23_spill] sm:$0xff] }
 0x2ee   :  { %v1204_v53 = vadd.f32 %v1188_v35, %v866_v24  ;;  %v1487_v22 = vmul.f32 0.5, %v1486_v41  ;;  %1723 = vmatmul.f32.gmra.mxu1 %v5158_v45  ;;  %1788 = vmatmul.f32.gmra.mxu2 %v5158_v45  ;;  %vm840_vm15 = vweird.f32 %v4933_v56  ;;  %vm1162_vm3 = vweird.f32 %v5134_v49 }
 0x2ef   :  { %v999_v9 = vpop.xlane.xlu1 %998  ;;  %v1150_v8 = vsub.f32 1.5, %v1149_v7  ;;  %v1337_v24 = vpop.xlane.xlu2 %1336  ;;  %1853 = vmatmul.f32.gmra.mxu3 %v5158_v45  ;;  %1918 = vmatmul.f32.gmra.mxu0 %v5158_v45  ;;  %v847_v58 = vmul.f32 0.5, %v846_v28  ;;  %vm5220_vm1 = vmor %vm840_vm15, %vm841_vm8  ;;  %vm1500_vm6 = vweird.f32 %v5150_v3  ;;  %v6929_v28 = vld [vmem:[#allocation24_spill] sm:$0xff]  ;;  %vm851_vm4 = vweird.f32 %v5107_v42 }
 0x2f0   :  { %v5173_v6 = vpop.eup %3188  ;;  %v1542_v37 = vadd.f32 %v1526_v60, %v1204_v53  ;;  %v5178_v46 = vmax.f32 %v999_v9, 1e-24  ;;  %v1488_v33 = vsub.f32 1.5, %v1487_v22  ;;  %v5185_v62 = vmax.f32 %v1337_v24, 1e-24  ;;  %1943 = vmatpush.msrb.mxu1 %v1603_v15  ;;  %2010 = vmatpush.msra.mxu2 %v1592_v12  ;;  %v1585_v60 = vld [vmem:[#allocation2 + $0x3b0] sm:$0xff] }
 0x2f1   :  { %v1157_v5 = vmul.f32 %v5173_v6, %v5134_v49  ;;  %v5187_v27 = vpop.eup %3190  ;;  %v1151_v43 = vmul.f32 %v5128_v55, %v1150_v8  ;;  %vm1163_vm9 = vweird.f32 %v5173_v6  ;;  %v1586_v53 = vld [vmem:[#allocation2 + $0x3b8] sm:$0xff]  ;;  %v843_v56 = vsel %vm5220_vm1, %v5027_v44, %v839_v1  ;;  %v1579_v44 = vld [vmem:[#allocation2 + $0x380] sm:$0xff]  ;;  %v1580_v9 = vld [vmem:[#allocation2 + $0x388] sm:$0xff] }
 0x2f2   :  { %3192 = vrsqrt.f32 %v5178_v46  ;;  %v1489_v32 = vmul.f32 %v5142_v36, %v1488_v33  ;;  %v1495_v31 = vmul.f32 %v5187_v27, %v5150_v3  ;;  %v5201_v16 = vmax.f32 %v1542_v37, 0.0  ;;  %1944 = vmatpush.msrb.mxu1 %v1597_v61  ;;  %vm1164_vm5 = vmor %vm1162_vm3, %vm1163_vm9  ;;  %2011 = vmatpush.msra.mxu2 %v1586_v53  ;;  %v1573_v24 = vld [vmem:[#allocation2 + $0x350] sm:$0xff]  ;;  %v1574_v33 = vld [vmem:[#allocation2 + $0x358] sm:$0xff] }
 0x2f3   :  { %v1158_v11 = vmul.f32 %v5173_v6, %v1157_v5  ;;  %v1155_v50 = vsel %vm1154_vm14, %v5128_v55, %v1151_v43  ;;  %3194 = vrsqrt.f32 %v5185_v62  ;;  %vm1501_vm2 = vweird.f32 %v5187_v27  ;;  %v6928_v5 = vld [vmem:[#allocation10_spill] sm:$0xff] }
 0x2f4   :  { %v1493_v26 = vsel %vm5205_vm0, %v5142_v36, %v1489_v32  ;;  %v1189_v48 = vmul.f32 %v1155_v50, %v6924_v2  ;;  %v1496_v19 = vmul.f32 %v5187_v27, %v1495_v31  ;;  %1945 = vmatpush.msrb.mxu1 %v1591_v54  ;;  %v848_v17 = vsub.f32 1.5, %v847_v58  ;;  %vm1502_vm7 = vmor %vm1500_vm6, %vm1501_vm2  ;;  %2012 = vmatpush.msra.mxu2 %v1580_v9  ;;  %v1567_v50 = vld [vmem:[#allocation2 + $0x320] sm:$0xff] }
 0x2f5   :  { %v1159_v35 = vmul.f32 0.5, %v1158_v11  ;;  %v1527_v36 = vmul.f32 %v1493_v26, %v6927_v38  ;;  %v868_v61 = vmul.f32 %v843_v56, %v6928_v5  ;;  %v6930_v11 = vld [vmem:[#allocation25_spill] sm:$0xff]  ;;  %v1568_v26 = vld [vmem:[#allocation2 + $0x328] sm:$0xff]  ;;  %vm850_vm8 = vweird.f32 %v5016_v21 }
 0x2f6   :  { %v1205_v41 = vadd.f32 %v1189_v48, %v867_v63  ;;  %v1497_v20 = vmul.f32 0.5, %v1496_v19  ;;  %1726 = vmatmul.f32.gmra.mxu1 %v5201_v16  ;;  %1791 = vmatmul.f32.gmra.mxu2 %v5201_v16  ;;  %v849_v31 = vmul.f32 %v5107_v42, %v848_v17  ;;  %vm5262_vm11 = vmor %vm850_vm8, %vm851_vm4  ;;  %vm1172_vm13 = vweird.f32 %v5178_v46 }
 0x2f7   :  { %v1160_v0 = vsub.f32 1.5, %v1159_v35  ;;  %1856 = vmatmul.f32.gmra.mxu3 %v5201_v16  ;;  %1921 = vmatmul.f32.gmra.mxu0 %v5201_v16  ;;  %vm1510_vm14 = vweird.f32 %v5185_v62 }
 0x2f8   :  { %v5225_v7 = vpop.eup %3192  ;;  %v1543_v51 = vadd.f32 %v1527_v36, %v1205_v41  ;;  %v1498_v63 = vsub.f32 1.5, %v1497_v20  ;;  %1946 = vmatpush.msrb.mxu1 %v1585_v60  ;;  %2013 = vmatpush.msra.mxu2 %v1574_v33  ;;  %v853_v21 = vsel %vm5262_vm11, %v5107_v42, %v849_v31  ;;  %v6933_v36 = vld [vmem:[#allocation11_spill] sm:$0xff] }
 0x2f9   :  { %v1161_v59 = vmul.f32 %v5173_v6, %v1160_v0  ;;  %v1167_v22 = vmul.f32 %v5225_v7, %v5178_v46  ;;  %v3195_v15 = vpop.eup %3194  ;;  %vm1173_vm10 = vweird.f32 %v5225_v7  ;;  %v869_v41 = vmul.f32 %v853_v21, %v6933_v36 }
 0x2fa   :  { %v1499_v49 = vmul.f32 %v5187_v27, %v1498_v63  ;;  %v1505_v8 = vmul.f32 %v3195_v15, %v5185_v62  ;;  %v5246_v52 = vmax.f32 %v1543_v51, 0.0  ;;  %1947 = vmatpush.msrb.mxu1 %v1579_v44  ;;  %vm1511_vm12 = vweird.f32 %v3195_v15  ;;  %2014 = vmatpush.msra.mxu2 %v1568_v26  ;;  %vm1174_vm0 = vmor %vm1172_vm13, %vm1173_vm10 }
 0x2fb   :  { %v1165_v37 = vsel %vm1164_vm5, %v5173_v6, %v1161_v59  ;;  %v1168_v32 = vmul.f32 %v5225_v7, %v1167_v22  ;;  %vm1512_vm15 = vmor %vm1510_vm14, %vm1511_vm12 }
 0x2fc   :  { %v1190_v43 = vmul.f32 %v1165_v37, %v6929_v28  ;;  %v1503_v3 = vsel %vm1502_vm7, %v5187_v27, %v1499_v49  ;;  %v1506_v6 = vmul.f32 %v3195_v15, %v1505_v8  ;;  %1948 = vmatpush.msrb.mxu1 %v1573_v24 }
 0x2fd   :  { %v1528_v54 = vmul.f32 %v1503_v3, %v6930_v11  ;;  %v1169_v1 = vmul.f32 0.5, %v1168_v32 }
 0x2fe   :  { %v1206_v12 = vadd.f32 %v1190_v43, %v868_v61  ;;  %v1507_v34 = vmul.f32 0.5, %v1506_v6  ;;  %1729 = vmatmul.f32.gmra.mxu1 %v5246_v52  ;;  %1794 = vmatmul.f32.gmra.mxu2 %v5246_v52 }
 0x2ff   :  { %v1170_v48 = vsub.f32 1.5, %v1169_v1  ;;  %1859 = vmatmul.f32.gmra.mxu3 %v5246_v52  ;;  %1924 = vmatmul.f32.gmra.mxu0 %v5246_v52 }
 0x300   :  { %v1544_v2 = vadd.f32 %v1528_v54, %v1206_v12  ;;  %v1508_v19 = vsub.f32 1.5, %v1507_v34  ;;  %1949 = vmatpush.msrb.mxu1 %v1567_v50 }
 0x301   :  { %v1171_v35 = vmul.f32 %v5225_v7, %v1170_v48 }
 0x302   :  { %v1509_v58 = vmul.f32 %v3195_v15, %v1508_v19  ;;  %v5276_v55 = vmax.f32 %v1544_v2, 0.0 }
 0x303   :  { %v1175_v38 = vsel %vm1174_vm0, %v5225_v7, %v1171_v35 }
 0x304   :  { %v1513_v42 = vsel %vm1512_vm15, %v3195_v15, %v1509_v58  ;;  %v1191_v20 = vmul.f32 %v1175_v38, %v4261_v13 }
 0x305   :  { %v1529_v46 = vmul.f32 %v1513_v42, %v4263_v40 }
 0x306   :  { %v1207_v0 = vadd.f32 %v1191_v20, %v869_v41  ;;  %1732 = vmatmul.f32.gmra.mxu1 %v5276_v55  ;;  %1797 = vmatmul.f32.gmra.mxu2 %v5276_v55 }
 0x307   :  { %1862 = vmatmul.f32.gmra.mxu3 %v5276_v55  ;;  %1927 = vmatmul.f32.gmra.mxu0 %v5276_v55 }
 0x308   :  { %v1545_v62 = vadd.f32 %v1529_v46, %v1207_v0 }
 0x30a   :  { %v5286_v60 = vmax.f32 %v1545_v62, 0.0 }
 0x30e   :  { %1735 = vmatmul.f32.gmra.mxu1 %v5286_v60  ;;  %1800 = vmatmul.f32.gmra.mxu2 %v5286_v60 }
 0x30f   :  { %1865 = vmatmul.f32.gmra.mxu3 %v5286_v60  ;;  %1930 = vmatmul.f32.gmra.mxu0 %v5286_v60  ;;  %v5292_v13 = vpop.f32.mrf.mxu1 }
 0x310   :  { %v5410_v20 = vpop.f32.mrf.mxu0 }
 0x315   :  { %v5296_v40 = vpop.f32.mrf.mxu2 }
 0x316   :  { %1950 = vmatmul.f32.vlgmr.msrb.gmra.mxu1 %v4435_v47  ;;  %2015 = vmatmul.f32.vlgmr.msra.gmra.mxu2 %v4435_v47  ;;  %v5298_v53 = vpop.f32.mrf.mxu3 }
 0x31a   :  { %v5300_v7 = vpop.f32.mrf.mxu1 }
 0x31e   :  { %1953 = vmatmul.f32.gmra.mxu1 %v4526_v39  ;;  %2018 = vmatmul.f32.gmra.mxu2 %v4526_v39 }
 0x320   :  { %v5304_v56 = vpop.f32.mrf.mxu2 }
 0x321   :  { %v5306_v51 = vpop.f32.mrf.mxu3 }
 0x322   :  { %v5308_v63 = vpop.f32.mrf.mxu1 }
 0x326   :  { %1956 = vmatmul.f32.gmra.mxu1 %v4589_v25  ;;  %2021 = vmatmul.f32.gmra.mxu2 %v4589_v25 }
 0x328   :  { %v5312_v47 = vpop.f32.mrf.mxu2 }
 0x329   :  { %v5314_v59 = vpop.f32.mrf.mxu3 }
 0x32a   :  { %v5316_v22 = vpop.f32.mrf.mxu1 }
 0x32e   :  { %1959 = vmatmul.f32.gmra.mxu1 %v4646_v18  ;;  %2024 = vmatmul.f32.gmra.mxu2 %v4646_v18 }
 0x330   :  { %v5320_v39 = vpop.f32.mrf.mxu2 }
 0x331   :  { %v5322_v44 = vpop.f32.mrf.mxu3 }
 0x332   :  { %v5324_v9 = vpop.f32.mrf.mxu1 }
 0x336   :  { %1962 = vmatmul.f32.gmra.mxu1 %v4720_v29  ;;  %2027 = vmatmul.f32.gmra.mxu2 %v4720_v29 }
 0x338   :  { %v5328_v25 = vpop.f32.mrf.mxu2 }
 0x339   :  { %v5330_v15 = vpop.f32.mrf.mxu3 }
 0x33a   :  { %v5332_v17 = vpop.f32.mrf.mxu1 }
 0x33e   :  { %1965 = vmatmul.f32.gmra.mxu1 %v4799_v4  ;;  %2030 = vmatmul.f32.gmra.mxu2 %v4799_v4 }
 0x340   :  { %v5336_v18 = vpop.f32.mrf.mxu2 }
 0x341   :  { %v5338_v49 = vpop.f32.mrf.mxu3 }
 0x342   :  { %v5340_v37 = vpop.f32.mrf.mxu1 }
 0x346   :  { %1968 = vmatmul.f32.gmra.mxu1 %v4872_v30  ;;  %2033 = vmatmul.f32.gmra.mxu2 %v4872_v30 }
 0x348   :  { %v5344_v29 = vpop.f32.mrf.mxu2 }
 0x349   :  { %v5346_v8 = vpop.f32.mrf.mxu3 }
 0x34b   :  { %v5348_v24 = vpop.f32.mrf.mxu1 }
 0x34e   :  { %1971 = vmatmul.f32.gmra.mxu1 %v4924_v57  ;;  %2036 = vmatmul.f32.gmra.mxu2 %v4924_v57 }
 0x351   :  { %v5352_v4 = vpop.f32.mrf.mxu2 }
 0x352   :  { %v5354_v33 = vpop.f32.mrf.mxu3 }
 0x353   :  { %v5356_v5 = vpop.f32.mrf.mxu1 }
 0x356   :  { %1974 = vmatmul.f32.gmra.mxu1 %v4962_v23  ;;  %2039 = vmatmul.f32.gmra.mxu2 %v4962_v23 }
 0x359   :  { %v5360_v30 = vpop.f32.mrf.mxu2 }
 0x35a   :  { %v5362_v61 = vpop.f32.mrf.mxu3 }
 0x35b   :  { %v5364_v28 = vpop.f32.mrf.mxu1 }
 0x35e   :  { %1977 = vmatmul.f32.gmra.mxu1 %v5048_v10  ;;  %2042 = vmatmul.f32.gmra.mxu2 %v5048_v10 }
 0x361   :  { %v5368_v57 = vpop.f32.mrf.mxu2 }
 0x362   :  { %v5370_v43 = vpop.f32.mrf.mxu3 }
 0x363   :  { %v1721_v32 = vpop.f32.mrf.mxu1 }
 0x366   :  { %1980 = vmatmul.f32.gmra.mxu1 %v5102_v14  ;;  %2045 = vmatmul.f32.gmra.mxu2 %v5102_v14 }
 0x369   :  { %v5374_v23 = vpop.f32.mrf.mxu2 }
 0x36a   :  { %v5376_v3 = vpop.f32.mrf.mxu3 }
 0x36b   :  { %v1724_v6 = vpop.f32.mrf.mxu1 }
 0x36e   :  { %1983 = vmatmul.f32.gmra.mxu1 %v5158_v45  ;;  %2048 = vmatmul.f32.gmra.mxu2 %v5158_v45  ;;  %v5389_v45 = vld [vmem:[%s6803_s3 + $0x6] sm:$0x3f] }
 0x36f   :  { %v5392_v26 = vperm.slane %v5389_v45, 0  ;;  %v5399_v19 = vperm.slane %v5389_v45, 1  ;;  %v5402_v21 = vperm.slane %v5389_v45, 2 }
 0x371   :  { %v1789_v31 = vpop.f32.mrf.mxu2  ;;  %v1725_v0 = vadd.f32 %v1724_v6, %v5392_v26 }
 0x372   :  { %v1854_v10 = vpop.f32.mrf.mxu3 }
 0x373   :  { %v1727_v11 = vpop.f32.mrf.mxu1 }
 0x374   :  { %v1728_v36 = vadd.f32 %v1727_v11, %v5392_v26  ;;  %v1722_v11 = vadd.f32 %v1721_v32, %v5392_v26  ;;  %v1716_v32 = vadd.f32 %v5356_v5, %v5392_v26  ;;  %v1784_v5 = vadd.f32 %v5368_v57, %v5399_v19 }
 0x375   :  { %v1704_v57 = vadd.f32 %v5324_v9, %v5392_v26  ;;  %v1772_v9 = vadd.f32 %v5336_v18, %v5399_v19  ;;  %v1834_v18 = vadd.f32 %v5330_v15, %v5402_v21 }
 0x376   :  { %1986 = vmatmul.f32.gmra.mxu1 %v5201_v16  ;;  %2051 = vmatmul.f32.gmra.mxu2 %v5201_v16 }
 0x379   :  { %v1792_v54 = vpop.f32.mrf.mxu2 }
 0x37a   :  { %v1857_v12 = vpop.f32.mrf.mxu3 }
 0x37b   :  { %v1730_v1 = vpop.f32.mrf.mxu1  ;;  %v1858_v6 = vadd.f32 %v1857_v12, %v5402_v21 }
 0x37c   :  { %v1731_v35 = vadd.f32 %v1730_v1, %v5392_v26 }
 0x37e   :  { %1989 = vmatmul.f32.gmra.mxu1 %v5246_v52  ;;  %2054 = vmatmul.f32.gmra.mxu2 %v5246_v52 }
 0x381   :  { %v1795_v14 = vpop.f32.mrf.mxu2 }
 0x382   :  { %v1860_v34 = vpop.f32.mrf.mxu3 }
 0x383   :  { %v1733_v50 = vpop.f32.mrf.mxu1  ;;  %v1861_v1 = vadd.f32 %v1860_v34, %v5402_v21  ;;  %v5426_v34 = vpop.f32.mrf.mxu0 }
 0x384   :  { %v1734_v27 = vadd.f32 %v1733_v50, %v5392_v26  ;;  %v1793_v50 = vadd.f32 %v1792_v54, %v5399_v19  ;;  %v1787_v54 = vadd.f32 %v5374_v23, %v5399_v19  ;;  %v1849_v23 = vadd.f32 %v5370_v43, %v5402_v21 }
 0x385   :  { %v1843_v43 = vadd.f32 %v5354_v33, %v5402_v21  ;;  %v1698_v33 = vadd.f32 %v5308_v63, %v5392_v26  ;;  %v1766_v63 = vadd.f32 %v5320_v39, %v5399_v19  ;;  %v1760_v39 = vadd.f32 %v5304_v56, %v5399_v19 }
 0x386   :  { %1992 = vmatmul.f32.gmra.mxu1 %v5276_v55  ;;  %2057 = vmatmul.f32.gmra.mxu2 %v5276_v55 }
 0x389   :  { %v1798_v16 = vpop.f32.mrf.mxu2 }
 0x38a   :  { %v1863_v2 = vpop.f32.mrf.mxu3  ;;  %v1799_v46 = vadd.f32 %v1798_v16, %v5399_v19  ;;  %v1719_v16 = vadd.f32 %v5364_v28, %v5392_v26  ;;  %v1713_v28 = vadd.f32 %v5348_v24, %v5392_v26  ;;  %v1781_v24 = vadd.f32 %v5360_v30, %v5399_v19 }
 0x38b   :  { %v1736_v48 = vpop.f32.mrf.mxu1  ;;  %v1864_v62 = vadd.f32 %v1863_v2, %v5402_v21  ;;  %v1790_v2 = vadd.f32 %v1789_v31, %v5399_v19  ;;  %v1852_v31 = vadd.f32 %v5376_v3, %v5402_v21  ;;  %v1707_v3 = vadd.f32 %v5332_v17, %v5392_v26 }
 0x38c   :  { %v1737_v52 = vadd.f32 %v1736_v48, %v5392_v26  ;;  %v1846_v48 = vadd.f32 %v5362_v61, %v5402_v21  ;;  %v1775_v17 = vadd.f32 %v5344_v29, %v5399_v19  ;;  %v1701_v30 = vadd.f32 %v5316_v22, %v5392_v26 }
 0x38d   :  { %v1840_v61 = vadd.f32 %v5346_v8, %v5402_v21  ;;  %v1837_v29 = vadd.f32 %v5338_v49, %v5402_v21  ;;  %v1769_v22 = vadd.f32 %v5328_v25, %v5399_v19  ;;  %v1695_v8 = vadd.f32 %v5300_v7, %v5392_v26 }
 0x38e   :  { %1995 = vmatmul.f32.gmra.mxu1 %v5286_v60  ;;  %2060 = vmatmul.f32.gmra.mxu2 %v5286_v60  ;;  %v1796_v60 = vadd.f32 %v1795_v14, %v5399_v19  ;;  %v1855_v14 = vadd.f32 %v1854_v10, %v5402_v21  ;;  %v1710_v10 = vadd.f32 %v5340_v37, %v5392_v26 }
 0x38f   :  { %2064 = vmatpush.msra.mxu3 %v1737_v52  ;;  %v1778_v37 = vadd.f32 %v5352_v4, %v5399_v19  ;;  %v5460_v4 = vpop.f32.mrf.mxu0  ;;  %v1692_v49 = vadd.f32 %v5292_v13, %v5392_v26  ;;  %v1763_v7 = vadd.f32 %v5312_v47, %v5399_v19  ;;  %v1828_v25 = vadd.f32 %v5314_v59, %v5402_v21  ;;  %v3292_v13 = vld [vmem:[%s6801_s1] sm:$0xff] }
 0x390   :  { %v1757_v47 = vadd.f32 %v5296_v40, %v5399_v19  ;;  %v1822_v59 = vadd.f32 %v5298_v53, %v5402_v21  ;;  %v3293_v26 = vld [vmem:[%s6801_s1 + $0x80] sm:$0xff] }
 0x391   :  { %2065 = vmatpush.msra.mxu3 %v1734_v27  ;;  %v1801_v58 = vpop.f32.mrf.mxu2  ;;  %v1831_v27 = vadd.f32 %v5322_v44, %v5402_v21  ;;  %v1825_v44 = vadd.f32 %v5306_v51, %v5402_v21  ;;  %v3294_v40 = vld [vmem:[%s6801_s1 + $0x100] sm:$0xff]  ;;  %v3295_v51 = vld [vmem:[%s6801_s1 + $0x8] sm:$0xff] }
 0x392   :  { %v1802_v55 = vadd.f32 %v1801_v58, %v5399_v19  ;;  %v1866_v38 = vpop.f32.mrf.mxu3  ;;  %v3298_v58 = vld [vmem:[%s6801_s1 + $0x10] sm:$0xff] }
 0x393   :  { %v1867_v41 = vadd.f32 %v1866_v38, %v5402_v21  ;;  %2066 = vmatpush.msra.mxu3 %v1731_v35  ;;  %v5408_v42 = vpop.f32.mrf.mxu1  ;;  %v3296_v21 = vld [vmem:[%s6801_s1 + $0x88] sm:$0xff] }
 0x394   :  { %2369 = vmatpush.msra.mxu0 %v1802_v55  ;;  %v3297_v35 = vld [vmem:[%s6801_s1 + $0x108] sm:$0xff]  ;;  %v3299_v55 = vld [vmem:[%s6801_s1 + $0x90] sm:$0xff] }
 0x395   :  { %2067 = vmatpush.msra.mxu3 %v1728_v36  ;;  %2690 = vmatpush.msra.mxu1 %v1867_v41  ;;  %v3300_v36 = vld [vmem:[%s6801_s1 + $0x110] sm:$0xff] }
 0x396   :  { %2370 = vmatpush.msra.mxu0 %v1799_v46  ;;  %v3301_v46 = vld [vmem:[%s6801_s1 + $0x18] sm:$0xff] }
 0x397   :  { %2068 = vmatpush.msra.mxu3 %v1725_v0  ;;  %2691 = vmatpush.msra.mxu1 %v1864_v62  ;;  %v5495_v15 = vpop.f32.mrf.mxu0  ;;  %v3302_v0 = vld [vmem:[%s6801_s1 + $0x98] sm:$0xff] }
 0x398   :  { %2371 = vmatpush.msra.mxu0 %v1796_v60  ;;  %v3303_v62 = vld [vmem:[%s6801_s1 + $0x118] sm:$0xff] }
 0x399   :  { %2069 = vmatpush.msra.mxu3 %v1722_v11  ;;  %2692 = vmatpush.msra.mxu1 %v1861_v1  ;;  %v3304_v11 = vld [vmem:[%s6801_s1 + $0x20] sm:$0xff] }
 0x39a   :  { %2372 = vmatpush.msra.mxu0 %v1793_v50  ;;  %v3305_v50 = vld [vmem:[%s6801_s1 + $0xa0] sm:$0xff] }
 0x39b   :  { %2070 = vmatpush.msra.mxu3 %v1719_v16  ;;  %2693 = vmatpush.msra.mxu1 %v1858_v6  ;;  %v5434_v12 = vpop.f32.mrf.mxu1  ;;  %v3306_v16 = vld [vmem:[%s6801_s1 + $0x120] sm:$0xff]  ;;  %v3307_v6 = vld [vmem:[%s6801_s1 + $0x28] sm:$0xff] }
 0x39c   :  { %2373 = vmatpush.msra.mxu0 %v1790_v2 }
 0x39d   :  { %2071 = vmatpush.msra.mxu3 %v1716_v32  ;;  %2694 = vmatpush.msra.mxu1 %v1855_v14  ;;  %v3308_v14 = vld [vmem:[%s6801_s1 + $0xa8] sm:$0xff] }
 0x39e   :  { %2374 = vmatpush.msra.mxu0 %v1787_v54  ;;  %v3309_v54 = vld [vmem:[%s6801_s1 + $0x128] sm:$0xff] }
 0x39f   :  { %2072 = vmatpush.msra.mxu3 %v1713_v28  ;;  %2695 = vmatpush.msra.mxu1 %v1852_v31  ;;  %v5510_v53 = vpop.f32.mrf.mxu0  ;;  %v3310_v28 = vld [vmem:[%s6801_s1 + $0x30] sm:$0xff] }
 0x3a0   :  { %2375 = vmatpush.msra.mxu0 %v1784_v5 }
 0x3a1   :  { %2073 = vmatpush.msra.mxu3 %v1710_v10  ;;  %2696 = vmatpush.msra.mxu1 %v1849_v23  ;;  %v3311_v10 = vld [vmem:[%s6801_s1 + $0xb0] sm:$0xff] }
 0x3a2   :  { %2376 = vmatpush.msra.mxu0 %v1781_v24  ;;  %v3312_v23 = vld [vmem:[%s6801_s1 + $0x130] sm:$0xff]  ;;  %v3313_v24 = vld [vmem:[%s6801_s1 + $0x38] sm:$0xff] }
 0x3a3   :  { %2074 = vmatpush.msra.mxu3 %v1707_v3  ;;  %2697 = vmatpush.msra.mxu1 %v1846_v48  ;;  %v5468_v52 = vpop.f32.mrf.mxu1  ;;  %v3314_v3 = vld [vmem:[%s6801_s1 + $0xb8] sm:$0xff] }
 0x3a4   :  { %2377 = vmatpush.msra.mxu0 %v1778_v37  ;;  %v3315_v37 = vld [vmem:[%s6801_s1 + $0x138] sm:$0xff] }
 0x3a5   :  { %2075 = vmatpush.msra.mxu3 %v1704_v57  ;;  %2698 = vmatpush.msra.mxu1 %v1843_v43  ;;  %v3316_v43 = vld [vmem:[%s6801_s1 + $0x40] sm:$0xff] }
 0x3a6   :  { %2378 = vmatpush.msra.mxu0 %v1775_v17  ;;  %v3317_v17 = vld [vmem:[%s6801_s1 + $0xc0] sm:$0xff] }
 0x3a7   :  { %2076 = vmatpush.msra.mxu3 %v1701_v30  ;;  %2699 = vmatpush.msra.mxu1 %v1840_v61  ;;  %v5526_v38 = vpop.f32.mrf.mxu0  ;;  %v3318_v30 = vld [vmem:[%s6801_s1 + $0x140] sm:$0xff] }
 0x3a8   :  { %2379 = vmatpush.msra.mxu0 %v1772_v9  ;;  %v3319_v9 = vld [vmem:[%s6801_s1 + $0x48] sm:$0xff] }
 0x3a9   :  { %2077 = vmatpush.msra.mxu3 %v1698_v33  ;;  %2700 = vmatpush.msra.mxu1 %v1837_v29  ;;  %v3320_v29 = vld [vmem:[%s6801_s1 + $0xc8] sm:$0xff] }
 0x3aa   :  { %2380 = vmatpush.msra.mxu0 %v1769_v22  ;;  %v3321_v22 = vld [vmem:[%s6801_s1 + $0x148] sm:$0xff] }
 0x3ab   :  { %2078 = vmatpush.msra.mxu3 %v1695_v8  ;;  %2701 = vmatpush.msra.mxu1 %v1834_v18  ;;  %v5499_v56 = vpop.f32.mrf.mxu1  ;;  %v3322_v8 = vld [vmem:[%s6801_s1 + $0x50] sm:$0xff] }
 0x3ac   :  { %2381 = vmatpush.msra.mxu0 %v1766_v63 }
 0x3ad   :  { %2079 = vmatpush.msra.mxu3 %v1692_v49  ;;  %2702 = vmatpush.msra.mxu1 %v1831_v27  ;;  %v3323_v49 = vld [vmem:[%s6801_s1 + $0xd0] sm:$0xff] }
 0x3ae   :  { %2080 = vmatmul.f32.vlgmr.msra.gmra.mxu3 %v3292_v13  ;;  %2382 = vmatpush.msra.mxu0 %v1763_v7  ;;  %v3324_v27 = vld [vmem:[%s6801_s1 + $0x150] sm:$0xff]  ;;  %v3325_v7 = vld [vmem:[%s6801_s1 + $0x58] sm:$0xff] }
 0x3af   :  { %2703 = vmatpush.msra.mxu1 %v1828_v25  ;;  %v5542_v60 = vpop.f32.mrf.mxu0  ;;  %v3326_v13 = vld [vmem:[%s6801_s1 + $0xd8] sm:$0xff] }
 0x3b0   :  { %2383 = vmatpush.msra.mxu0 %v1760_v39 }
 0x3b1   :  { %2704 = vmatpush.msra.mxu1 %v1825_v44  ;;  %v3327_v44 = vld [vmem:[%s6801_s1 + $0x158] sm:$0xff] }
 0x3b2   :  { %2384 = vmatpush.msra.mxu0 %v1757_v47  ;;  %v2016_v47 = vpop.f32.mrf.mxu2 }
 0x3b3   :  { %2705 = vmatpush.msra.mxu1 %v1822_v59  ;;  %2385 = vmatmul.f32.vlgmr.msra.gmra.mxu0 %v3293_v26  ;;  %v5512_v19 = vpop.f32.mrf.mxu1  ;;  %v3328_v59 = vld [vmem:[%s6801_s1 + $0x60] sm:$0xff] }
 0x3b4   :  { %2706 = vmatmul.f32.vlgmr.msra.gmra.mxu1 %v3294_v40  ;;  %v3329_v26 = vld [vmem:[%s6801_s1 + $0xe0] sm:$0xff] }
 0x3b6   :  { %2083 = vmatmul.f32.gmra.mxu3 %v3295_v51  ;;  %v3330_v51 = vld [vmem:[%s6801_s1 + $0x160] sm:$0xff] }
 0x3b7   :  { %v5558_v2 = vpop.f32.mrf.mxu0 }
 0x3bb   :  { %2388 = vmatmul.f32.gmra.mxu0 %v3296_v21  ;;  %v5531_v41 = vpop.f32.mrf.mxu1 }
 0x3bc   :  { %2709 = vmatmul.f32.gmra.mxu1 %v3297_v35  ;;  %v3331_v35 = vld [vmem:[%s6801_s1 + $0x68] sm:$0xff] }
 0x3be   :  { %2086 = vmatmul.f32.gmra.mxu3 %v3298_v58  ;;  %v2019_v58 = vpop.f32.mrf.mxu2 }
 0x3bf   :  { %v5571_v31 = vpop.f32.mrf.mxu0 }
 0x3c3   :  { %2391 = vmatmul.f32.gmra.mxu0 %v3299_v55  ;;  %v5547_v1 = vpop.f32.mrf.mxu1  ;;  %v3332_v55 = vld [vmem:[%s6801_s1 + $0xe8] sm:$0xff] }
 0x3c4   :  { %2712 = vmatmul.f32.gmra.mxu1 %v3300_v36  ;;  %v3333_v36 = vld [vmem:[%s6801_s1 + $0x168] sm:$0xff] }
 0x3c6   :  { %2089 = vmatmul.f32.gmra.mxu3 %v3301_v46 }
 0x3c7   :  { %v5587_v48 = vpop.f32.mrf.mxu0 }
 0x3cb   :  { %2394 = vmatmul.f32.gmra.mxu0 %v3302_v0  ;;  %v5560_v32 = vpop.f32.mrf.mxu1  ;;  %v3334_v0 = vld [vmem:[%s6801_s1 + $0x70] sm:$0xff] }
 0x3cc   :  { %2715 = vmatmul.f32.gmra.mxu1 %v3303_v62 }
 0x3ce   :  { %2092 = vmatmul.f32.gmra.mxu3 %v3304_v11  ;;  %v2022_v11 = vpop.f32.mrf.mxu2 }
 0x3cf   :  { %v5603_v61 = vpop.f32.mrf.mxu0 }
 0x3d3   :  { %2397 = vmatmul.f32.gmra.mxu0 %v3305_v50  ;;  %v5573_v5 = vpop.f32.mrf.mxu1  ;;  %v3335_v50 = vld [vmem:[%s6801_s1 + $0xf0] sm:$0xff] }
 0x3d4   :  { %2718 = vmatmul.f32.gmra.mxu1 %v3306_v16  ;;  %v3336_v16 = vld [vmem:[%s6801_s1 + $0x170] sm:$0xff] }
 0x3d6   :  { %2095 = vmatmul.f32.gmra.mxu3 %v3307_v6  ;;  %v3337_v6 = vld [vmem:[%s6801_s1 + $0x78] sm:$0xff] }
 0x3d7   :  { %v5619_v18 = vpop.f32.mrf.mxu0 }
 0x3db   :  { %2400 = vmatmul.f32.gmra.mxu0 %v3308_v14  ;;  %v5592_v57 = vpop.f32.mrf.mxu1 }
 0x3dc   :  { %2721 = vmatmul.f32.gmra.mxu1 %v3309_v54 }
 0x3de   :  { %2098 = vmatmul.f32.gmra.mxu3 %v3310_v28  ;;  %v5685_v28 = vperm.slane %v5389_v45, 4 }
 0x3df   :  { %v5632_v25 = vpop.f32.mrf.mxu0 }
 0x3e3   :  { %2403 = vmatmul.f32.gmra.mxu0 %v3311_v10  ;;  %v5608_v33 = vpop.f32.mrf.mxu1  ;;  %v3338_v10 = vld [vmem:[%s6801_s1 + $0xf8] sm:$0xff] }
 0x3e4   :  { %2724 = vmatmul.f32.gmra.mxu1 %v3312_v23  ;;  %v5691_v23 = vperm.slane %v5389_v45, 3 }
 0x3e6   :  { %2101 = vmatmul.f32.gmra.mxu3 %v3313_v24  ;;  %v5694_v24 = vperm.slane %v5389_v45, 5 }
 0x3e7   :  { %v5648_v40 = vpop.f32.mrf.mxu0 }
 0x3eb   :  { %2406 = vmatmul.f32.gmra.mxu0 %v3314_v3  ;;  %v5621_v63 = vpop.f32.mrf.mxu1  ;;  %v2025_v3 = vpop.f32.mrf.mxu2 }
 0x3ec   :  { %2727 = vmatmul.f32.gmra.mxu1 %v3315_v37  ;;  %v3339_v37 = vld [vmem:[%s6801_s1 + $0x178] sm:$0xff] }
 0x3ee   :  { %2104 = vmatmul.f32.gmra.mxu3 %v3316_v43  ;;  %v1952_v43 = vadd.f32 %v5408_v42, %v5685_v28 }
 0x3ef   :  { %v5664_v46 = vpop.f32.mrf.mxu0 }
 0x3f3   :  { %2409 = vmatmul.f32.gmra.mxu0 %v3317_v17  ;;  %v5634_v39 = vpop.f32.mrf.mxu1  ;;  %v1887_v17 = vadd.f32 %v5410_v20, %v5691_v23 }
 0x3f4   :  { %2730 = vmatmul.f32.gmra.mxu1 %v3318_v30  ;;  %v2017_v30 = vadd.f32 %v2016_v47, %v5694_v24  ;;  %v2020_v47 = vadd.f32 %v2019_v58, %v5694_v24  ;;  %v1958_v58 = vadd.f32 %v5468_v52, %v5685_v28 }
 0x3f6   :  { %2107 = vmatmul.f32.gmra.mxu3 %v3319_v9 }
 0x3f7   :  { %v5680_v14 = vpop.f32.mrf.mxu0 }
 0x3fb   :  { %2412 = vmatmul.f32.gmra.mxu0 %v3320_v29  ;;  %v5653_v21 = vpop.f32.mrf.mxu1 }
 0x3fc   :  { %2733 = vmatmul.f32.gmra.mxu1 %v3321_v22 }
 0x3fe   :  { %2110 = vmatmul.f32.gmra.mxu3 %v3322_v8 }
 0x403   :  { %2415 = vmatmul.f32.gmra.mxu0 %v3323_v49  ;;  %v5669_v62 = vpop.f32.mrf.mxu1 }
 0x404   :  { %2736 = vmatmul.f32.gmra.mxu1 %v3324_v27 }
 0x406   :  { %2113 = vmatmul.f32.gmra.mxu3 %v3325_v7  ;;  %v2028_v7 = vpop.f32.mrf.mxu2 }
 0x40b   :  { %2418 = vmatmul.f32.gmra.mxu0 %v3326_v13  ;;  %v5682_v54 = vpop.f32.mrf.mxu1  ;;  %v1955_v13 = vadd.f32 %v5434_v12, %v5685_v28 }
 0x40c   :  { %2739 = vmatmul.f32.gmra.mxu1 %v3327_v44  ;;  %v1890_v44 = vadd.f32 %v5426_v34, %v5691_v23 }
 0x40e   :  { %2116 = vmatmul.f32.gmra.mxu3 %v3328_v59 }
 0x413   :  { %2421 = vmatmul.f32.gmra.mxu0 %v3329_v26 }
 0x414   :  { %2742 = vmatmul.f32.gmra.mxu1 %v3330_v51 }
 0x416   :  { %2119 = vmatmul.f32.gmra.mxu3 %v3331_v35 }
 0x41b   :  { %2424 = vmatmul.f32.gmra.mxu0 %v3332_v55 }
 0x41c   :  { %2745 = vmatmul.f32.gmra.mxu1 %v3333_v36 }
 0x41e   :  { %2122 = vmatmul.f32.gmra.mxu3 %v3334_v0 }
 0x423   :  { %2427 = vmatmul.f32.gmra.mxu0 %v3335_v50  ;;  %v1893_v50 = vadd.f32 %v5460_v4, %v5691_v23 }
 0x424   :  { %2748 = vmatmul.f32.gmra.mxu1 %v3336_v16  ;;  %v2023_v16 = vadd.f32 %v2022_v11, %v5694_v24  ;;  %v1961_v11 = vadd.f32 %v5499_v56, %v5685_v28 }
 0x426   :  { %2125 = vmatmul.f32.gmra.mxu3 %v3337_v6  ;;  %v2031_v6 = vpop.f32.mrf.mxu2 }
 0x42b   :  { %2430 = vmatmul.f32.gmra.mxu0 %v3338_v10 }
 0x42c   :  { %2751 = vmatmul.f32.gmra.mxu1 %v3339_v37 }
 0x430   :  { %v2386_v9 = vpop.f32.mrf.mxu0 }
 0x431   :  { %v2081_v29 = vpop.f32.mrf.mxu3  ;;  %v5704_v22 = vadd.f32 %v2386_v9, %v1952_v43  ;;  %v2707_v45 = vpop.f32.mrf.mxu1 }
 0x432   :  { %v5706_v8 = vadd.f32 %v2081_v29, %v1887_v17  ;;  %v5708_v49 = vadd.f32 %v2707_v45, %v2017_v30  ;;  %v1896_v45 = vadd.f32 %v5495_v15, %v5691_v23 }
 0x433   :  { %v2434_v27 = vmul.f32 %v5704_v22, %v5704_v22 }
 0x434   :  { %v2755_v42 = vmul.f32 %v5708_v49, %v5708_v49  ;;  %v2129_v20 = vmul.f32 %v5706_v8, %v5706_v8 }
 0x435   :  { %2450 = vadd.xlane.f32.xlu1 %v2434_v27  ;;  %v2026_v27 = vadd.f32 %v2025_v3, %v5694_v24  ;;  %v1964_v3 = vadd.f32 %v5512_v19, %v5685_v28 }
 0x436   :  { %2771 = vadd.xlane.f32.xlu2 %v2755_v42  ;;  %2145 = vadd.xlane.f32.xlu0 %v2129_v20 }
 0x438   :  { %v2389_v59 = vpop.f32.mrf.mxu0 }
 0x439   :  { %v2084_v26 = vpop.f32.mrf.mxu3  ;;  %v5721_v51 = vadd.f32 %v2389_v59, %v1955_v13  ;;  %v2710_v35 = vpop.f32.mrf.mxu1 }
 0x43a   :  { %v5723_v55 = vadd.f32 %v2084_v26, %v1890_v44  ;;  %v5725_v36 = vadd.f32 %v2710_v35, %v2020_v47  ;;  %v2034_v47 = vpop.f32.mrf.mxu2 }
 0x43b   :  { %v2435_v0 = vmul.f32 %v5721_v51, %v5721_v51 }
 0x43c   :  { %v2130_v12 = vmul.f32 %v5723_v55, %v5723_v55  ;;  %v2756_v34 = vmul.f32 %v5725_v36, %v5725_v36 }
 0x43e   :  { %2452 = vadd.xlane.f32.xlu2 %v2435_v0  ;;  %2147 = vadd.xlane.f32.xlu1 %v2130_v12  ;;  %v1899_v0 = vadd.f32 %v5510_v53, %v5691_v23  ;;  %v2029_v12 = vadd.f32 %v2028_v7, %v5694_v24  ;;  %v1967_v7 = vadd.f32 %v5531_v41, %v5685_v28 }
 0x43f   :  { %2773 = vadd.xlane.f32.xlu0 %v2756_v34 }
 0x440   :  { %v2392_v10 = vpop.f32.mrf.mxu0 }
 0x441   :  { %v2087_v37 = vpop.f32.mrf.mxu3  ;;  %v5738_v43 = vadd.f32 %v2392_v10, %v1958_v58  ;;  %v2713_v17 = vpop.f32.mrf.mxu1 }
 0x442   :  { %v5740_v30 = vadd.f32 %v2087_v37, %v1893_v50  ;;  %v5742_v9 = vadd.f32 %v2713_v17, %v2023_v16 }
 0x443   :  { %v2436_v29 = vmul.f32 %v5738_v43, %v5738_v43 }
 0x444   :  { %v2131_v52 = vmul.f32 %v5740_v30, %v5740_v30  ;;  %v2757_v4 = vmul.f32 %v5742_v9, %v5742_v9 }
 0x446   :  { %2149 = vadd.xlane.f32.xlu2 %v2131_v52  ;;  %2775 = vadd.xlane.f32.xlu1 %v2757_v4  ;;  %v1902_v52 = vadd.f32 %v5526_v38, %v5691_v23  ;;  %v2032_v4 = vadd.f32 %v2031_v6, %v5694_v24  ;;  %v1970_v6 = vadd.f32 %v5547_v1, %v5685_v28 }
 0x447   :  { %2454 = vadd.xlane.f32.xlu0 %v2436_v29  ;;  %v2037_v29 = vpop.f32.mrf.mxu2 }
 0x448   :  { %v2395_v42 = vpop.f32.mrf.mxu0 }
 0x449   :  { %v2090_v20 = vpop.f32.mrf.mxu3  ;;  %v5755_v13 = vadd.f32 %v2395_v42, %v1961_v11  ;;  %v2716_v44 = vpop.f32.mrf.mxu1 }
 0x44a   :  { %v5757_v59 = vadd.f32 %v2090_v20, %v1896_v45  ;;  %v5759_v26 = vadd.f32 %v2716_v44, %v2026_v27 }
 0x44b   :  { %v2437_v35 = vmul.f32 %v5755_v13, %v5755_v13 }
 0x44c   :  { %v2758_v56 = vmul.f32 %v5759_v26, %v5759_v26  ;;  %v2132_v15 = vmul.f32 %v5757_v59, %v5757_v59 }
 0x44e   :  { %2777 = vadd.xlane.f32.xlu2 %v2758_v56  ;;  %2456 = vadd.xlane.f32.xlu1 %v2437_v35 }
 0x44f   :  { %2151 = vadd.xlane.f32.xlu0 %v2132_v15  ;;  %v2040_v56 = vpop.f32.mrf.mxu2  ;;  %v1905_v15 = vadd.f32 %v5542_v60, %v5691_v23 }
 0x450   :  { %v2398_v34 = vpop.f32.mrf.mxu0 }
 0x451   :  { %v2093_v58 = vpop.f32.mrf.mxu3  ;;  %v5772_v50 = vadd.f32 %v2398_v34, %v1964_v3  ;;  %v2719_v16 = vpop.f32.mrf.mxu1  ;;  %v2035_v3 = vadd.f32 %v2034_v47, %v5694_v24  ;;  %v1973_v47 = vadd.f32 %v5560_v32, %v5685_v28 }
 0x452   :  { %v5774_v10 = vadd.f32 %v2093_v58, %v1899_v0  ;;  %v5776_v37 = vadd.f32 %v2719_v16, %v2029_v12 }
 0x453   :  { %v2438_v17 = vmul.f32 %v5772_v50, %v5772_v50 }
 0x454   :  { %v2133_v19 = vmul.f32 %v5774_v10, %v5774_v10  ;;  %v2759_v53 = vmul.f32 %v5776_v37, %v5776_v37 }
 0x456   :  { %2458 = vadd.xlane.f32.xlu2 %v2438_v17  ;;  %2153 = vadd.xlane.f32.xlu1 %v2133_v19 }
 0x457   :  { %2779 = vadd.xlane.f32.xlu0 %v2759_v53  ;;  %v1908_v53 = vadd.f32 %v5558_v2, %v5691_v23 }
 0x458   :  { %v2401_v11 = vpop.f32.mrf.mxu0 }
 0x459   :  { %v2096_v45 = vpop.f32.mrf.mxu3  ;;  %v5789_v27 = vadd.f32 %v2401_v11, %v1967_v7  ;;  %v2722_v42 = vpop.f32.mrf.mxu1  ;;  %v2038_v7 = vadd.f32 %v2037_v29, %v5694_v24  ;;  %v1976_v29 = vadd.f32 %v5573_v5, %v5685_v28 }
 0x45a   :  { %v5791_v20 = vadd.f32 %v2096_v45, %v1902_v52  ;;  %v5793_v44 = vadd.f32 %v2722_v42, %v2032_v4  ;;  %v2043_v52 = vpop.f32.mrf.mxu2 }
 0x45b   :  { %v2439_v35 = vmul.f32 %v5789_v27, %v5789_v27 }
 0x45c   :  { %v2134_v41 = vmul.f32 %v5791_v20, %v5791_v20  ;;  %v2760_v38 = vmul.f32 %v5793_v44, %v5793_v44 }
 0x45e   :  { %2155 = vadd.xlane.f32.xlu2 %v2134_v41  ;;  %2781 = vadd.xlane.f32.xlu1 %v2760_v38 }
 0x45f   :  { %2460 = vadd.xlane.f32.xlu0 %v2439_v35 }
 0x460   :  { %v2404_v0 = vpop.f32.mrf.mxu0 }
 0x461   :  { %v2099_v12 = vpop.f32.mrf.mxu3  ;;  %v5806_v34 = vadd.f32 %v2404_v0, %v1970_v6  ;;  %v2725_v58 = vpop.f32.mrf.mxu1  ;;  %v1911_v6 = vadd.f32 %v5571_v31, %v5691_v23 }
 0x462   :  { %v5808_v16 = vadd.f32 %v2099_v12, %v1905_v15  ;;  %v5810_v17 = vadd.f32 %v2725_v58, %v2035_v3  ;;  %v2041_v15 = vadd.f32 %v2040_v56, %v5694_v24  ;;  %v1979_v56 = vadd.f32 %v5592_v57, %v5685_v28 }
 0x463   :  { %v2440_v19 = vmul.f32 %v5806_v34, %v5806_v34 }
 0x464   :  { %v2761_v1 = vmul.f32 %v5810_v17, %v5810_v17  ;;  %v2135_v60 = vmul.f32 %v5808_v16, %v5808_v16 }
 0x466   :  { %2783 = vadd.xlane.f32.xlu2 %v2761_v1  ;;  %2462 = vadd.xlane.f32.xlu1 %v2440_v19  ;;  %v2046_v19 = vpop.f32.mrf.mxu2 }
 0x467   :  { %2157 = vadd.xlane.f32.xlu0 %v2135_v60 }
 0x468   :  { %v2407_v4 = vpop.f32.mrf.mxu0 }
 0x469   :  { %v2102_v11 = vpop.f32.mrf.mxu3  ;;  %v5823_v45 = vadd.f32 %v2407_v4, %v1973_v47  ;;  %v2728_v42 = vpop.f32.mrf.mxu1 }
 0x46a   :  { %v5825_v35 = vadd.f32 %v2102_v11, %v1908_v53  ;;  %v5827_v41 = vadd.f32 %v2728_v42, %v2038_v7  ;;  %v1914_v53 = vadd.f32 %v5587_v48, %v5691_v23  ;;  %v2044_v7 = vadd.f32 %v2043_v52, %v5694_v24 }
 0x46b   :  { %v2441_v38 = vmul.f32 %v5823_v45, %v5823_v45  ;;  %v1982_v52 = vadd.f32 %v5608_v33, %v5685_v28 }
 0x46c   :  { %v2136_v32 = vmul.f32 %v5825_v35, %v5825_v35  ;;  %v2762_v2 = vmul.f32 %v5827_v41, %v5827_v41 }
 0x46e   :  { %2464 = vadd.xlane.f32.xlu2 %v2441_v38  ;;  %2159 = vadd.xlane.f32.xlu1 %v2136_v32 }
 0x46f   :  { %2785 = vadd.xlane.f32.xlu0 %v2762_v2 }
 0x470   :  { %v2410_v3 = vpop.f32.mrf.mxu0 }
 0x471   :  { %v2105_v0 = vpop.f32.mrf.mxu3  ;;  %v5840_v12 = vadd.f32 %v2410_v3, %v1976_v29  ;;  %v2731_v58 = vpop.f32.mrf.mxu1  ;;  %v2047_v3 = vadd.f32 %v2046_v19, %v5694_v24  ;;  %v1985_v19 = vadd.f32 %v5621_v63, %v5685_v28 }
 0x472   :  { %v5842_v1 = vadd.f32 %v2105_v0, %v1911_v6  ;;  %v5844_v60 = vadd.f32 %v2731_v58, %v2041_v15  ;;  %v2049_v6 = vpop.f32.mrf.mxu2  ;;  %v1917_v15 = vadd.f32 %v5603_v61, %v5691_v23 }
 0x473   :  { %v2442_v47 = vmul.f32 %v5840_v12, %v5840_v12 }
 0x474   :  { %v2137_v5 = vmul.f32 %v5842_v1, %v5842_v1  ;;  %v2763_v31 = vmul.f32 %v5844_v60, %v5844_v60 }
 0x476   :  { %2161 = vadd.xlane.f32.xlu2 %v2137_v5  ;;  %2787 = vadd.xlane.f32.xlu1 %v2763_v31 }
 0x477   :  { %2466 = vadd.xlane.f32.xlu0 %v2442_v47 }
 0x478   :  { %v2413_v4 = vpop.f32.mrf.mxu0 }
 0x479   :  { %v2108_v11 = vpop.f32.mrf.mxu3  ;;  %v5857_v42 = vadd.f32 %v2413_v4, %v1979_v56  ;;  %v2734_v38 = vpop.f32.mrf.mxu1  ;;  %v1920_v4 = vadd.f32 %v5619_v18, %v5691_v23 }
 0x47a   :  { %v5859_v32 = vadd.f32 %v2108_v11, %v1914_v53  ;;  %v5861_v2 = vadd.f32 %v2734_v38, %v2044_v7  ;;  %v2052_v7 = vpop.f32.mrf.mxu2  ;;  %v2050_v11 = vadd.f32 %v2049_v6, %v5694_v24  ;;  %v1988_v6 = vadd.f32 %v5634_v39, %v5685_v28 }
 0x47b   :  { %v2443_v29 = vmul.f32 %v5857_v42, %v5857_v42 }
 0x47c   :  { %v2764_v57 = vmul.f32 %v5861_v2, %v5861_v2  ;;  %v2138_v48 = vmul.f32 %v5859_v32, %v5859_v32 }
 0x47e   :  { %2789 = vadd.xlane.f32.xlu2 %v2764_v57  ;;  %2468 = vadd.xlane.f32.xlu1 %v2443_v29 }
 0x47f   :  { %2163 = vadd.xlane.f32.xlu0 %v2138_v48 }
 0x480   :  { %v2416_v0 = vpop.f32.mrf.mxu0 }
 0x481   :  { %v2111_v58 = vpop.f32.mrf.mxu3  ;;  %v5874_v47 = vadd.f32 %v2416_v0, %v1982_v52  ;;  %v2737_v5 = vpop.f32.mrf.mxu1  ;;  %v1923_v0 = vadd.f32 %v5632_v25, %v5691_v23 }
 0x482   :  { %v5876_v31 = vadd.f32 %v2111_v58, %v1917_v15  ;;  %v5878_v56 = vadd.f32 %v2737_v5, %v2047_v3  ;;  %v2053_v58 = vadd.f32 %v2052_v7, %v5694_v24  ;;  %v2055_v5 = vpop.f32.mrf.mxu2  ;;  %v1991_v7 = vadd.f32 %v5653_v21, %v5685_v28 }
 0x483   :  { %v2444_v53 = vmul.f32 %v5874_v47, %v5874_v47  ;;  %v1994_v21 = vadd.f32 %v5669_v62, %v5685_v28  ;;  %v1997_v62 = vadd.f32 %v5682_v54, %v5685_v28 }
 0x484   :  { %v2139_v33 = vmul.f32 %v5876_v31, %v5876_v31  ;;  %v2765_v61 = vmul.f32 %v5878_v56, %v5878_v56 }
 0x486   :  { %2470 = vadd.xlane.f32.xlu2 %v2444_v53  ;;  %2165 = vadd.xlane.f32.xlu1 %v2139_v33 }
 0x487   :  { %2791 = vadd.xlane.f32.xlu0 %v2765_v61 }
 0x488   :  { %v2419_v38 = vpop.f32.mrf.mxu0 }
 0x489   :  { %v2114_v29 = vpop.f32.mrf.mxu3  ;;  %v5891_v57 = vadd.f32 %v2419_v38, %v1985_v19  ;;  %v2740_v48 = vpop.f32.mrf.mxu1 }
 0x48a   :  { %v5893_v52 = vadd.f32 %v2114_v29, %v1920_v4  ;;  %v5895_v15 = vadd.f32 %v2740_v48, %v2050_v11  ;;  %v1926_v29 = vadd.f32 %v5648_v40, %v5691_v23  ;;  %v1929_v40 = vadd.f32 %v5664_v46, %v5691_v23 }
 0x48b   :  { %v2445_v3 = vmul.f32 %v5891_v57, %v5891_v57 }
 0x48c   :  { %v2140_v63 = vmul.f32 %v5893_v52, %v5893_v52  ;;  %v2766_v18 = vmul.f32 %v5895_v15, %v5895_v15 }
 0x48e   :  { %2167 = vadd.xlane.f32.xlu2 %v2140_v63  ;;  %2793 = vadd.xlane.f32.xlu1 %v2766_v18 }
 0x48f   :  { %2472 = vadd.xlane.f32.xlu0 %v2445_v3 }
 0x490   :  { %v2422_v53 = vpop.f32.mrf.mxu0 }
 0x491   :  { %v2117_v33 = vpop.f32.mrf.mxu3  ;;  %v5908_v61 = vadd.f32 %v2422_v53, %v1988_v6  ;;  %v2743_v19 = vpop.f32.mrf.mxu1 }
 0x492   :  { %v5910_v4 = vadd.f32 %v2117_v33, %v1923_v0  ;;  %v5912_v11 = vadd.f32 %v2743_v19, %v2053_v58  ;;  %v2058_v0 = vpop.f32.mrf.mxu2 }
 0x493   :  { %v2446_v38 = vmul.f32 %v5908_v61, %v5908_v61 }
 0x494   :  { %6934 = vst [vmem:[#allocation12_spill] sm:$0xff] %v5912_v11  ;;  %v2767_v39 = vmul.f32 %v5912_v11, %v5912_v11  ;;  %v2141_v25 = vmul.f32 %v5910_v4, %v5910_v4 }
 0x496   :  { %2795 = vadd.xlane.f32.xlu2 %v2767_v39  ;;  %2474 = vadd.xlane.f32.xlu1 %v2446_v38 }
 0x497   :  { %2169 = vadd.xlane.f32.xlu0 %v2141_v25 }
 0x498   :  { %v2425_v48 = vpop.f32.mrf.mxu0 }
 0x499   :  { %v2120_v3 = vpop.f32.mrf.mxu3  ;;  %v5924_v63 = vadd.f32 %v2425_v48, %v1991_v7  ;;  %v2746_v18 = vpop.f32.mrf.mxu1 }
 0x49a   :  { %v5926_v6 = vadd.f32 %v2120_v3, %v1926_v29  ;;  %v2061_v48 = vpop.f32.mrf.mxu2 }
 0x49b   :  { %6935 = vst [vmem:[#allocation5_spill] sm:$0xff] %v5924_v63  ;;  %v2447_v58 = vmul.f32 %v5924_v63, %v5924_v63  ;;  %v2062_v46 = vadd.f32 %v2061_v48, %v5694_v24 }
 0x49c   :  { %6936 = vst [vmem:[#allocation13_spill] sm:$0xff] %v5926_v6  ;;  %v2142_v53 = vmul.f32 %v5926_v6, %v5926_v6 }
 0x49e   :  { %2476 = vadd.xlane.f32.xlu2 %v2447_v58  ;;  %2171 = vadd.xlane.f32.xlu1 %v2142_v53  ;;  %v1932_v53 = vadd.f32 %v5680_v14, %v5691_v23 }
 0x4a0   :  { %v2428_v33 = vpop.f32.mrf.mxu0 }
 0x4a1   :  { %v2123_v19 = vpop.f32.mrf.mxu3  ;;  %v5936_v38 = vadd.f32 %v2428_v33, %v1994_v21  ;;  %v2749_v39 = vpop.f32.mrf.mxu1 }
 0x4a2   :  { %v5938_v25 = vadd.f32 %v2123_v19, %v1929_v40 }
 0x4a3   :  { %6937 = vst [vmem:[#allocation6_spill] sm:$0xff] %v5936_v38  ;;  %v2448_v7 = vmul.f32 %v5936_v38, %v5936_v38 }
 0x4a4   :  { %6938 = vst [vmem:[#allocation14_spill] sm:$0xff] %v5938_v25  ;;  %v2143_v29 = vmul.f32 %v5938_v25, %v5938_v25 }
 0x4a5   :  { %2478 = vadd.xlane.f32.xlu0 %v2448_v7 }
 0x4a6   :  { %2173 = vadd.xlane.f32.xlu2 %v2143_v29 }
 0x4a8   :  { %v2431_v3 = vpop.f32.mrf.mxu0  ;;  %v2451_v58 = vpop.xlane.xlu1 %2450 }
 0x4a9   :  { %v5949_v21 = vadd.f32 %v2431_v3, %v1997_v62  ;;  %v2752_v40 = vpop.f32.mrf.mxu1  ;;  %v2772_v33 = vpop.xlane.xlu2 %2771  ;;  %v2482_v19 = vmax.f32 %v2451_v58, 1e-24  ;;  %v2059_v62 = vadd.f32 %v2058_v0, %v5694_v24 }
 0x4aa   :  { %v5951_v38 = vadd.f32 %v2752_v40, %v2062_v46  ;;  %v5953_v25 = vmax.f32 %v2772_v33, 1e-24  ;;  %v2126_v7 = vpop.f32.mrf.mxu3  ;;  %v2146_v29 = vpop.xlane.xlu0 %2145  ;;  %v2056_v46 = vadd.f32 %v2055_v5, %v5694_v24 }
 0x4ab   :  { %6939 = vst [vmem:[#allocation15_spill] sm:$0xff] %v5949_v21  ;;  %3196 = vrsqrt.f32 %v2482_v19  ;;  %v5955_v54 = vadd.f32 %v2126_v7, %v1932_v53  ;;  %v5957_v28 = vmax.f32 %v2146_v29, 1e-24  ;;  %v2449_v23 = vmul.f32 %v5949_v21, %v5949_v21 }
 0x4ac   :  { %6940 = vst [vmem:[#allocation16_spill] sm:$0xff] %v5951_v38  ;;  %3198 = vrsqrt.f32 %v5953_v25  ;;  %v2770_v14 = vmul.f32 %v5951_v38, %v5951_v38  ;;  %v5969_v3 = vadd.f32 %v2749_v39, %v2059_v62  ;;  %v5971_v53 = vadd.f32 %v2746_v18, %v2056_v46 }
 0x4ad   :  { %6941 = vst [vmem:[#allocation17_spill] sm:$0xff] %v5955_v54  ;;  %3200 = vrsqrt.f32 %v5957_v28  ;;  %v2144_v48 = vmul.f32 %v5955_v54, %v5955_v54  ;;  %2480 = vadd.xlane.f32.xlu1 %v2449_v23  ;;  %vm2825_vm1 = vweird.f32 %v5953_v25  ;;  %vm2504_vm3 = vweird.f32 %v2482_v19 }
 0x4ae   :  { %2801 = vadd.xlane.f32.xlu2 %v2770_v14  ;;  %6942 = vst [vmem:[#allocation7_spill] sm:$0xff] %v5969_v3  ;;  %v2769_v18 = vmul.f32 %v5969_v3, %v5969_v3  ;;  %vm2199_vm5 = vweird.f32 %v5957_v28 }
 0x4af   :  { %2175 = vadd.xlane.f32.xlu0 %v2144_v48  ;;  %6943 = vst [vmem:[#allocation8_spill] sm:$0xff] %v5971_v53  ;;  %v2768_v48 = vmul.f32 %v5971_v53, %v5971_v53 }
 0x4b1   :  { %v3197_v58 = vpop.eup %3196  ;;  %v2453_v40 = vpop.xlane.xlu2 %2452 }
 0x4b2   :  { %v2148_v33 = vpop.xlane.xlu1 %2147  ;;  %v3199_v7 = vpop.eup %3198  ;;  %v2499_v29 = vmul.f32 %v3197_v58, %v2482_v19  ;;  %v5973_v38 = vmax.f32 %v2453_v40, 1e-24  ;;  %vm2505_vm9 = vweird.f32 %v3197_v58 }
 0x4b3   :  { %v5975_v21 = vmax.f32 %v2148_v33, 1e-24  ;;  %v2774_v54 = vpop.xlane.xlu0 %2773  ;;  %v3201_v0 = vpop.eup %3200  ;;  %v2820_v14 = vmul.f32 %v3199_v7, %v5953_v25  ;;  %vm2826_vm2 = vweird.f32 %v3199_v7  ;;  %vm2506_vm7 = vmor %vm2504_vm3, %vm2505_vm9 }
 0x4b4   :  { %v5978_v23 = vmax.f32 %v2774_v54, 1e-24  ;;  %v2500_v24 = vmul.f32 %v3197_v58, %v2499_v29  ;;  %v2194_v5 = vmul.f32 %v3201_v0, %v5957_v28  ;;  %3202 = vrsqrt.f32 %v5973_v38  ;;  %vm6004_vm4 = vmor %vm2825_vm1, %vm2826_vm2 }
 0x4b5   :  { %v2821_v39 = vmul.f32 %v3199_v7, %v2820_v14  ;;  %3204 = vrsqrt.f32 %v5975_v21  ;;  %2799 = vadd.xlane.f32.xlu1 %v2769_v18  ;;  %vm2200_vm6 = vweird.f32 %v3201_v0  ;;  %vm2514_vm10 = vweird.f32 %v5973_v38 }
 0x4b6   :  { %v2501_v62 = vmul.f32 0.5, %v2500_v24  ;;  %v2195_v46 = vmul.f32 %v3201_v0, %v2194_v5  ;;  %3206 = vrsqrt.f32 %v5978_v23  ;;  %vm2201_vm8 = vmor %vm2199_vm5, %vm2200_vm6  ;;  %vm2209_vm0 = vweird.f32 %v5975_v21 }
 0x4b7   :  { %v2822_v54 = vmul.f32 0.5, %v2821_v39  ;;  %2797 = vadd.xlane.f32.xlu0 %v2768_v48  ;;  %vm2835_vm15 = vweird.f32 %v5978_v23 }
 0x4b8   :  { %v2502_v40 = vsub.f32 1.5, %v2501_v62  ;;  %v2196_v33 = vmul.f32 0.5, %v2195_v46 }
 0x4b9   :  { %v2823_v29 = vsub.f32 1.5, %v2822_v54  ;;  %v2150_v14 = vpop.xlane.xlu2 %2149 }
 0x4ba   :  { %v2776_v3 = vpop.xlane.xlu1 %2775  ;;  %v5989_v6 = vpop.eup %3202  ;;  %v2503_v53 = vmul.f32 %v3197_v58, %v2502_v40  ;;  %v2197_v24 = vsub.f32 1.5, %v2196_v33  ;;  %v5995_v62 = vmax.f32 %v2150_v14, 1e-24 }
 0x4bb   :  { %v2455_v5 = vpop.xlane.xlu0 %2454  ;;  %v3205_v18 = vpop.eup %3204  ;;  %v2824_v39 = vmul.f32 %v3199_v7, %v2823_v29  ;;  %v2509_v48 = vmul.f32 %v5989_v6, %v5973_v38  ;;  %v5997_v19 = vmax.f32 %v2776_v3, 1e-24  ;;  %vm2515_vm11 = vweird.f32 %v5989_v6 }
 0x4bc   :  { %v5999_v46 = vpop.eup %3206  ;;  %v2507_v40 = vsel %vm2506_vm7, %v3197_v58, %v2503_v53  ;;  %v2198_v33 = vmul.f32 %v3201_v0, %v2197_v24  ;;  %v2204_v29 = vmul.f32 %v3205_v18, %v5975_v21  ;;  %v6009_v63 = vmax.f32 %v2455_v5, 1e-24  ;;  %vm2516_vm14 = vmor %vm2514_vm10, %vm2515_vm11 }
 0x4bd   :  { %v2828_v14 = vsel %vm6004_vm4, %v3199_v7, %v2824_v39  ;;  %v2658_v3 = vmul.f32 %v2507_v40, %v5704_v22  ;;  %v2510_v25 = vmul.f32 %v5989_v6, %v2509_v48  ;;  %v2830_v11 = vmul.f32 %v5999_v46, %v5978_v23 }
 0x4be   :  { %v2202_v58 = vsel %vm2201_vm8, %v3201_v0, %v2198_v33  ;;  %v2205_v53 = vmul.f32 %v3205_v18, %v2204_v29  ;;  %3208 = vrsqrt.f32 %v5995_v62  ;;  %v2979_v22 = vmul.f32 %v2828_v14, %v5708_v49 }
 0x4bf   :  { %v2353_v24 = vmul.f32 %v2202_v58, %v5706_v8  ;;  %v2511_v5 = vmul.f32 0.5, %v2510_v25  ;;  %v2831_v7 = vmul.f32 %v5999_v46, %v2830_v11  ;;  %3210 = vrsqrt.f32 %v5997_v19 }
 0x4c0   :  { %v2206_v28 = vmul.f32 0.5, %v2205_v53  ;;  %3212 = vrsqrt.f32 %v6009_v63  ;;  %vm2210_vm12 = vweird.f32 %v3205_v18  ;;  %vm2836_vm13 = vweird.f32 %v5999_v46 }
 0x4c1   :  { %v2674_v39 = vadd.f32 %v2658_v3, %v2353_v24  ;;  %v2512_v48 = vsub.f32 1.5, %v2511_v5  ;;  %v2832_v0 = vmul.f32 0.5, %v2831_v7  ;;  %v2778_v54 = vpop.xlane.xlu2 %2777  ;;  %vm2211_vm9 = vmor %vm2209_vm0, %vm2210_vm12  ;;  %vm2219_vm2 = vweird.f32 %v5995_v62 }
 0x4c2   :  { %v2457_v40 = vpop.xlane.xlu1 %2456  ;;  %v2207_v8 = vsub.f32 1.5, %v2206_v28  ;;  %v6028_v33 = vmax.f32 %v2778_v54, 1e-24  ;;  %vm2837_vm1 = vmor %vm2835_vm15, %vm2836_vm13  ;;  %vm2845_vm3 = vweird.f32 %v5997_v19  ;;  %vm2524_vm5 = vweird.f32 %v6009_v63 }
 0x4c3   :  { %v6030_v11 = vmax.f32 %v2457_v40, 1e-24  ;;  %v2152_v29 = vpop.xlane.xlu0 %2151  ;;  %v2995_v49 = vadd.f32 %v2979_v22, %v2674_v39  ;;  %v2513_v14 = vmul.f32 %v5989_v6, %v2512_v48  ;;  %v2833_v25 = vsub.f32 1.5, %v2832_v0 }
 0x4c4   :  { %v2208_v3 = vmul.f32 %v3205_v18, %v2207_v8  ;;  %3214 = vrsqrt.f32 %v6028_v33  ;;  %v6041_v58 = vpop.eup %3208  ;;  %v6050_v24 = vmax.f32 %v2152_v29, 1e-24  ;;  %vm2855_vm10 = vweird.f32 %v6028_v33 }
 0x4c5   :  { %3011 = vst [vmem:[%s6804_s4] sm:$0xff] %v2995_v49  ;;  %v2517_v53 = vsel %vm2516_vm14, %v5989_v6, %v2513_v14  ;;  %v2834_v38 = vmul.f32 %v5999_v46, %v2833_v25  ;;  %3216 = vrsqrt.f32 %v6030_v11  ;;  %v6052_v21 = vpop.eup %3210  ;;  %v2214_v7 = vmul.f32 %v6041_v58, %v5995_v62 }
 0x4c6   :  { %v2659_v23 = vmul.f32 %v2517_v53, %v5721_v51  ;;  %v2212_v5 = vsel %vm2211_vm9, %v3205_v18, %v2208_v3  ;;  %v6059_v6 = vpop.eup %3212  ;;  %v2840_v39 = vmul.f32 %v6052_v21, %v5997_v19  ;;  %3218 = vrsqrt.f32 %v6050_v24 }
 0x4c7   :  { %v2354_v22 = vmul.f32 %v2212_v5, %v5723_v55  ;;  %v2838_v28 = vsel %vm2837_vm1, %v5999_v46, %v2834_v38  ;;  %v2215_v51 = vmul.f32 %v6041_v58, %v2214_v7  ;;  %v2519_v18 = vmul.f32 %v6059_v6, %v6009_v63 }
 0x4c8   :  { %v2980_v0 = vmul.f32 %v2838_v28, %v5725_v36  ;;  %v2841_v55 = vmul.f32 %v6052_v21, %v2840_v39  ;;  %vm2220_vm6 = vweird.f32 %v6041_v58  ;;  %vm2846_vm7 = vweird.f32 %v6052_v21 }
 0x4c9   :  { %v2675_v48 = vadd.f32 %v2659_v23, %v2354_v22  ;;  %v2459_v46 = vpop.xlane.xlu2 %2458  ;;  %v2216_v8 = vmul.f32 0.5, %v2215_v51  ;;  %v2520_v29 = vmul.f32 %v6059_v6, %v2519_v18  ;;  %vm2525_vm4 = vweird.f32 %v6059_v6  ;;  %vm2221_vm8 = vmor %vm2219_vm2, %vm2220_vm6 }
 0x4ca   :  { %v2154_v54 = vpop.xlane.xlu1 %2153  ;;  %v6074_v40 = vpop.eup %3214  ;;  %v6077_v49 = vmax.f32 %v2459_v46, 1e-24  ;;  %v2842_v36 = vmul.f32 0.5, %v2841_v55  ;;  %vm6113_vm11 = vmor %vm2845_vm3, %vm2846_vm7  ;;  %vm2534_vm13 = vweird.f32 %v6030_v11  ;;  %vm2229_vm15 = vweird.f32 %v6050_v24 }
 0x4cb   :  { %v6079_v14 = vmax.f32 %v2154_v54, 1e-24  ;;  %v2780_v25 = vpop.xlane.xlu0 %2779  ;;  %v6081_v3 = vpop.eup %3216  ;;  %v2996_v53 = vadd.f32 %v2980_v0, %v2675_v48  ;;  %v2850_v38 = vmul.f32 %v6074_v40, %v6028_v33  ;;  %v2217_v23 = vsub.f32 1.5, %v2216_v8  ;;  %vm2526_vm12 = vmor %vm2524_vm5, %vm2525_vm4 }
 0x4cc   :  { %v2521_v5 = vmul.f32 0.5, %v2520_v29  ;;  %v2529_v7 = vmul.f32 %v6081_v3, %v6030_v11  ;;  %v2843_v22 = vsub.f32 1.5, %v2842_v36  ;;  %3220 = vrsqrt.f32 %v6077_v49  ;;  %v6098_v48 = vpop.eup %3218 }
 0x4cd   :  { %3012 = vst [vmem:[%s6804_s4 + $0x8] sm:$0xff] %v2996_v53  ;;  %v2851_v28 = vmul.f32 %v6074_v40, %v2850_v38  ;;  %v2218_v39 = vmul.f32 %v6041_v58, %v2217_v23  ;;  %3222 = vrsqrt.f32 %v6079_v14  ;;  %v6106_v46 = vmax.f32 %v2780_v25, 1e-24 }
 0x4ce   :  { %v2522_v51 = vsub.f32 1.5, %v2521_v5  ;;  %v2530_v18 = vmul.f32 %v6081_v3, %v2529_v7  ;;  %v2844_v0 = vmul.f32 %v6052_v21, %v2843_v22  ;;  %v2224_v53 = vmul.f32 %v6098_v48, %v6050_v24 }
 0x4cf   :  { %v2852_v55 = vmul.f32 0.5, %v2851_v28  ;;  %v2222_v54 = vsel %vm2221_vm8, %v6041_v58, %v2218_v39  ;;  %vm2535_vm14 = vweird.f32 %v6081_v3  ;;  %vm2856_vm0 = vweird.f32 %v6074_v40 }
 0x4d0   :  { %v2523_v62 = vmul.f32 %v6059_v6, %v2522_v51  ;;  %v2531_v29 = vmul.f32 0.5, %v2530_v18  ;;  %v2355_v36 = vmul.f32 %v2222_v54, %v5740_v30  ;;  %v2848_v38 = vsel %vm6113_vm11, %v6052_v21, %v2844_v0  ;;  %vm6145_vm1 = vmor %vm2534_vm13, %vm2535_vm14 }
 0x4d1   :  { %v2853_v58 = vsub.f32 1.5, %v2852_v55  ;;  %v2156_v19 = vpop.xlane.xlu2 %2155  ;;  %v2225_v30 = vmul.f32 %v6098_v48, %v2224_v53  ;;  %3224 = vrsqrt.f32 %v6106_v46  ;;  %vm2544_vm9 = vweird.f32 %v6077_v49  ;;  %vm6161_vm5 = vmor %vm2855_vm10, %vm2856_vm0 }
 0x4d2   :  { %v2782_v25 = vpop.xlane.xlu1 %2781  ;;  %v2527_v23 = vsel %vm2526_vm12, %v6059_v6, %v2523_v62  ;;  %v2532_v5 = vsub.f32 1.5, %v2531_v29  ;;  %v3221_v22 = vpop.eup %3220  ;;  %v2981_v6 = vmul.f32 %v2848_v38, %v5742_v9  ;;  %vm2230_vm2 = vweird.f32 %v6098_v48 }
 0x4d3   :  { %v2461_v7 = vpop.xlane.xlu0 %2460  ;;  %v2660_v63 = vmul.f32 %v2527_v23, %v5738_v43  ;;  %v3223_v28 = vpop.eup %3222  ;;  %v2226_v51 = vmul.f32 0.5, %v2225_v30  ;;  %v2539_v21 = vmul.f32 %v3221_v22, %v6077_v49  ;;  %v2854_v0 = vmul.f32 %v6074_v40, %v2853_v58  ;;  %vm2231_vm6 = vmor %vm2229_vm15, %vm2230_vm2 }
 0x4d4   :  { %v2533_v39 = vmul.f32 %v6081_v3, %v2532_v5  ;;  %v2234_v55 = vmul.f32 %v3223_v28, %v6079_v14  ;;  %vm2239_vm3 = vweird.f32 %v6079_v14  ;;  %v6155_v53 = vmax.f32 %v2156_v19, 1e-24 }
 0x4d5   :  { %v2676_v18 = vadd.f32 %v2660_v63, %v2355_v36  ;;  %v2227_v8 = vsub.f32 1.5, %v2226_v51  ;;  %v2540_v9 = vmul.f32 %v3221_v22, %v2539_v21  ;;  %v6166_v58 = vmax.f32 %v2782_v25, 1e-24 }
 0x4d6   :  { %v2537_v54 = vsel %vm6145_vm1, %v6081_v3, %v2533_v39  ;;  %v2235_v29 = vmul.f32 %v3223_v28, %v2234_v55  ;;  %v6168_v38 = vmax.f32 %v2461_v7, 1e-24  ;;  %v2858_v33 = vsel %vm6161_vm5, %v6074_v40, %v2854_v0 }
 0x4d7   :  { %v2997_v62 = vadd.f32 %v2981_v6, %v2676_v18  ;;  %v2228_v3 = vmul.f32 %v6098_v48, %v2227_v8  ;;  %v2541_v36 = vmul.f32 0.5, %v2540_v9  ;;  %v6170_v23 = vpop.eup %3224  ;;  %v2661_v19 = vmul.f32 %v2537_v54, %v5755_v13 }
 0x4d8   :  { %v2236_v25 = vmul.f32 0.5, %v2235_v29  ;;  %3226 = vrsqrt.f32 %v6155_v53  ;;  %vm2545_vm7 = vweird.f32 %v3221_v22  ;;  %v2860_v39 = vmul.f32 %v6170_v23, %v6106_v46 }
 0x4d9   :  { %3013 = vst [vmem:[%s6804_s4 + $0x10] sm:$0xff] %v2997_v62  ;;  %v2784_v5 = vpop.xlane.xlu2 %2783  ;;  %v2232_v7 = vsel %vm2231_vm6, %v6098_v48, %v2228_v3  ;;  %v2542_v63 = vsub.f32 1.5, %v2541_v36  ;;  %vm2240_vm4 = vweird.f32 %v3223_v28  ;;  %3228 = vrsqrt.f32 %v6166_v58  ;;  %vm2546_vm8 = vmor %vm2544_vm9, %vm2545_vm7 }
 0x4da   :  { %v2463_v30 = vpop.xlane.xlu1 %2462  ;;  %v2356_v13 = vmul.f32 %v2232_v7, %v5757_v59  ;;  %v2237_v51 = vsub.f32 1.5, %v2236_v25  ;;  %v2982_v24 = vmul.f32 %v2858_v33, %v5759_v26  ;;  %v2861_v6 = vmul.f32 %v6170_v23, %v2860_v39  ;;  %vm2241_vm10 = vmor %vm2239_vm3, %vm2240_vm4 }
 0x4db   :  { %v2158_v40 = vpop.xlane.xlu0 %2157  ;;  %v2543_v21 = vmul.f32 %v3221_v22, %v2542_v63  ;;  %3230 = vrsqrt.f32 %v6168_v38  ;;  %v6194_v0 = vmax.f32 %v2784_v5, 1e-24  ;;  %v6196_v43 = vmax.f32 %v2463_v30, 1e-24 }
 0x4dc   :  { %v2677_v48 = vadd.f32 %v2661_v19, %v2356_v13  ;;  %v2238_v18 = vmul.f32 %v3223_v28, %v2237_v51  ;;  %v2862_v55 = vmul.f32 0.5, %v2861_v6  ;;  %v6200_v26 = vmax.f32 %v2158_v40, 1e-24 }
 0x4dd   :  { %v2547_v59 = vsel %vm2546_vm8, %v3221_v22, %v2543_v21  ;;  %3232 = vrsqrt.f32 %v6194_v0  ;;  %vm2866_vm11 = vweird.f32 %v6170_v23  ;;  %vm2865_vm12 = vweird.f32 %v6106_v46 }
 0x4de   :  { %v6202_v54 = vpop.eup %3226  ;;  %v2998_v8 = vadd.f32 %v2982_v24, %v2677_v48  ;;  %v2662_v9 = vmul.f32 %v2547_v59, %v5772_v50  ;;  %v2242_v62 = vsel %vm2241_vm10, %v3223_v28, %v2238_v18  ;;  %v2863_v29 = vsub.f32 1.5, %v2862_v55  ;;  %vm2867_vm0 = vmor %vm2865_vm12, %vm2866_vm11 }
 0x4df   :  { %v2357_v49 = vmul.f32 %v2242_v62, %v5774_v10  ;;  %v2244_v14 = vmul.f32 %v6202_v54, %v6155_v53  ;;  %v6210_v22 = vpop.eup %3228  ;;  %vm2249_vm13 = vweird.f32 %v6155_v53  ;;  %3234 = vrsqrt.f32 %v6196_v43 }
 0x4e0   :  { %3014 = vst [vmem:[%s6804_s4 + $0x18] sm:$0xff] %v2998_v8  ;;  %v2864_v11 = vmul.f32 %v6170_v23, %v2863_v29  ;;  %v2870_v36 = vmul.f32 %v6210_v22, %v6166_v58  ;;  %vm2875_vm14 = vweird.f32 %v6166_v58  ;;  %vm2554_vm15 = vweird.f32 %v6168_v38 }
 0x4e1   :  { %v2465_v50 = vpop.xlane.xlu2 %2464  ;;  %v6218_v28 = vpop.eup %3230  ;;  %v2245_v3 = vmul.f32 %v6202_v54, %v2244_v14  ;;  %v2678_v19 = vadd.f32 %v2662_v9, %v2357_v49  ;;  %3236 = vrsqrt.f32 %v6200_v26  ;;  %vm2250_vm9 = vweird.f32 %v6202_v54 }
 0x4e2   :  { %v2160_v10 = vpop.xlane.xlu1 %2159  ;;  %v2549_v46 = vmul.f32 %v6218_v28, %v6168_v38  ;;  %v2868_v25 = vsel %vm2867_vm0, %v6170_v23, %v2864_v11  ;;  %v2871_v30 = vmul.f32 %v6210_v22, %v2870_v36  ;;  %v6233_v7 = vmax.f32 %v2465_v50, 1e-24  ;;  %vm2251_vm3 = vmor %vm2249_vm13, %vm2250_vm9 }
 0x4e3   :  { %v2786_v33 = vpop.xlane.xlu0 %2785  ;;  %v2246_v5 = vmul.f32 0.5, %v2245_v3  ;;  %v6235_v63 = vpop.eup %3232  ;;  %v2983_v39 = vmul.f32 %v2868_v25, %v5776_v37  ;;  %v6240_v13 = vmax.f32 %v2160_v10, 1e-24  ;;  %vm2876_vm1 = vweird.f32 %v6210_v22 }
 0x4e4   :  { %v2550_v40 = vmul.f32 %v6218_v28, %v2549_v46  ;;  %v2872_v24 = vmul.f32 0.5, %v2871_v30  ;;  %v2880_v23 = vmul.f32 %v6235_v63, %v6194_v0  ;;  %vm2885_vm2 = vweird.f32 %v6194_v0  ;;  %vm6275_vm7 = vmor %vm2875_vm14, %vm2876_vm1 }
 0x4e5   :  { %v2247_v51 = vsub.f32 1.5, %v2246_v5  ;;  %v6245_v21 = vpop.eup %3234  ;;  %v2999_v6 = vadd.f32 %v2983_v39, %v2678_v19  ;;  %3238 = vrsqrt.f32 %v6233_v7  ;;  %v6249_v37 = vmax.f32 %v2786_v33, 1e-24 }
 0x4e6   :  { %v2551_v48 = vmul.f32 0.5, %v2550_v40  ;;  %v2873_v59 = vsub.f32 1.5, %v2872_v24  ;;  %v2881_v55 = vmul.f32 %v6235_v63, %v2880_v23  ;;  %v2559_v8 = vmul.f32 %v6245_v21, %v6196_v43 }
 0x4e7   :  { %v2248_v18 = vmul.f32 %v6202_v54, %v2247_v51  ;;  %v6255_v9 = vpop.eup %3236  ;;  %3015 = vst [vmem:[%s6804_s4 + $0x20] sm:$0xff] %v2999_v6  ;;  %vm2555_vm5 = vweird.f32 %v6218_v28  ;;  %vm2564_vm6 = vweird.f32 %v6196_v43  ;;  %3240 = vrsqrt.f32 %v6240_v13 }
 0x4e8   :  { %v2552_v62 = vsub.f32 1.5, %v2551_v48  ;;  %v2874_v50 = vmul.f32 %v6210_v22, %v2873_v59  ;;  %v2882_v10 = vmul.f32 0.5, %v2881_v55  ;;  %v2560_v11 = vmul.f32 %v6245_v21, %v2559_v8  ;;  %vm2556_vm8 = vmor %vm2554_vm15, %vm2555_vm5 }
 0x4e9   :  { %v2162_v49 = vpop.xlane.xlu2 %2161  ;;  %v2252_v14 = vsel %vm2251_vm3, %v6202_v54, %v2248_v18  ;;  %v2254_v54 = vmul.f32 %v6255_v9, %v6200_v26  ;;  %vm2259_vm4 = vweird.f32 %v6200_v26  ;;  %3242 = vrsqrt.f32 %v6249_v37 }
 0x4ea   :  { %v2788_v29 = vpop.xlane.xlu1 %2787  ;;  %v2358_v53 = vmul.f32 %v2252_v14, %v5791_v20  ;;  %v2553_v33 = vmul.f32 %v6218_v28, %v2552_v62  ;;  %v2878_v19 = vsel %vm6275_vm7, %v6210_v22, %v2874_v50  ;;  %v2883_v20 = vsub.f32 1.5, %v2882_v10 }
 0x4eb   :  { %v2467_v3 = vpop.xlane.xlu0 %2466  ;;  %v2561_v58 = vmul.f32 0.5, %v2560_v11  ;;  %v6291_v46 = vpop.eup %3238  ;;  %vm2886_vm10 = vweird.f32 %v6235_v63  ;;  %vm2565_vm11 = vweird.f32 %v6245_v21  ;;  %v2255_v5 = vmul.f32 %v6255_v9, %v2254_v54 }
 0x4ec   :  { %v2557_v25 = vsel %vm2556_vm8, %v6218_v28, %v2553_v33  ;;  %v2884_v30 = vmul.f32 %v6235_v63, %v2883_v20  ;;  %v2569_v39 = vmul.f32 %v6291_v46, %v6233_v7  ;;  %v2984_v51 = vmul.f32 %v2878_v19, %v5793_v44  ;;  %vm6309_vm13 = vmor %vm2885_vm2, %vm2886_vm10 }
 0x4ed   :  { %v2663_v22 = vmul.f32 %v2557_v25, %v5789_v27  ;;  %v2562_v38 = vsub.f32 1.5, %v2561_v58  ;;  %v6301_v40 = vpop.eup %3240  ;;  %v2256_v24 = vmul.f32 0.5, %v2255_v5  ;;  %vm2574_vm12 = vweird.f32 %v6233_v7  ;;  %vm6324_vm14 = vmor %vm2564_vm6, %vm2565_vm11 }
 0x4ee   :  { %v6305_v28 = vmax.f32 %v2162_v49, 1e-24  ;;  %v2570_v48 = vmul.f32 %v6291_v46, %v2569_v39  ;;  %v6315_v18 = vmax.f32 %v2788_v29, 1e-24  ;;  %v2888_v44 = vsel %vm6309_vm13, %v6235_v63, %v2884_v30 }
 0x4ef   :  { %v2679_v23 = vadd.f32 %v2663_v22, %v2358_v53  ;;  %v2563_v6 = vmul.f32 %v6245_v21, %v2562_v38  ;;  %v2257_v59 = vsub.f32 1.5, %v2256_v24  ;;  %vm2260_vm0 = vweird.f32 %v6255_v9  ;;  %v6331_v49 = vpop.eup %3242 }
 0x4f0   :  { %v2264_v55 = vmul.f32 %v6301_v40, %v6240_v13  ;;  %v2571_v43 = vmul.f32 0.5, %v2570_v48  ;;  %3244 = vrsqrt.f32 %v6305_v28  ;;  %vm2269_vm15 = vweird.f32 %v6240_v13  ;;  %vm2261_vm9 = vmor %vm2259_vm4, %vm2260_vm0 }
 0x4f1   :  { %v2790_v8 = vpop.xlane.xlu2 %2789  ;;  %v3000_v29 = vadd.f32 %v2984_v51, %v2679_v23  ;;  %v2567_v63 = vsel %vm6324_vm14, %v6245_v21, %v2563_v6  ;;  %v2258_v14 = vmul.f32 %v6255_v9, %v2257_v59  ;;  %v2890_v10 = vmul.f32 %v6331_v49, %v6249_v37 }
 0x4f2   :  { %v2469_v62 = vpop.xlane.xlu1 %2468  ;;  %v2265_v50 = vmul.f32 %v6301_v40, %v2264_v55  ;;  %v2664_v53 = vmul.f32 %v2567_v63, %v5806_v34  ;;  %v2572_v21 = vsub.f32 1.5, %v2571_v43  ;;  %vm2575_vm1 = vweird.f32 %v6291_v46 }
 0x4f3   :  { %v2164_v11 = vpop.xlane.xlu0 %2163  ;;  %3016 = vst [vmem:[%s6804_s4 + $0x28] sm:$0xff] %v3000_v29  ;;  %3246 = vrsqrt.f32 %v6315_v18  ;;  %v2985_v36 = vmul.f32 %v2888_v44, %v5810_v17  ;;  %v2262_v33 = vsel %vm2261_vm9, %v6255_v9, %v2258_v14  ;;  %v2891_v19 = vmul.f32 %v6331_v49, %v2890_v10  ;;  %vm6363_vm2 = vmor %vm2574_vm12, %vm2575_vm1 }
 0x4f4   :  { %v2266_v54 = vmul.f32 0.5, %v2265_v50  ;;  %v2359_v20 = vmul.f32 %v2262_v33, %v5808_v16  ;;  %v2573_v34 = vmul.f32 %v6291_v46, %v2572_v21  ;;  %v6357_v58 = vmax.f32 %v2467_v3, 1e-24 }
 0x4f5   :  { %v6359_v26 = vmax.f32 %v2790_v8, 1e-24  ;;  %vm2270_vm3 = vweird.f32 %v6301_v40  ;;  %v2892_v9 = vmul.f32 0.5, %v2891_v19  ;;  %vm2896_vm5 = vweird.f32 %v6331_v49 }
 0x4f6   :  { %v2267_v17 = vsub.f32 1.5, %v2266_v54  ;;  %v6369_v5 = vpop.eup %3244  ;;  %v2680_v16 = vadd.f32 %v2664_v53, %v2359_v20  ;;  %v2577_v3 = vsel %vm6363_vm2, %v6291_v46, %v2573_v34  ;;  %3248 = vrsqrt.f32 %v6357_v58  ;;  %vm2271_vm6 = vmor %vm2269_vm15, %vm2270_vm3 }
 0x4f7   :  { %v6375_v7 = vmax.f32 %v2469_v62, 1e-24  ;;  %v2893_v30 = vsub.f32 1.5, %v2892_v9  ;;  %v2274_v38 = vmul.f32 %v6369_v5, %v6305_v28  ;;  %v6380_v39 = vmax.f32 %v2164_v11, 1e-24 }
 0x4f8   :  { %v2268_v22 = vmul.f32 %v6301_v40, %v2267_v17  ;;  %v3001_v27 = vadd.f32 %v2985_v36, %v2680_v16  ;;  %v2665_v6 = vmul.f32 %v2577_v3, %v5823_v45  ;;  %vm2895_vm7 = vweird.f32 %v6249_v37 }
 0x4f9   :  { %v2471_v51 = vpop.xlane.xlu2 %2470  ;;  %v6382_v23 = vpop.eup %3246  ;;  %3250 = vrsqrt.f32 %v6359_v26  ;;  %v2894_v48 = vmul.f32 %v6331_v49, %v2893_v30  ;;  %v2275_v44 = vmul.f32 %v6369_v5, %v2274_v38  ;;  %vm2897_vm4 = vmor %vm2895_vm7, %vm2896_vm5  ;;  %vm2279_vm8 = vweird.f32 %v6305_v28 }
 0x4fa   :  { %v2166_v24 = vpop.xlane.xlu1 %2165  ;;  %v2272_v46 = vsel %vm2271_vm6, %v6301_v40, %v2268_v22  ;;  %v2900_v0 = vmul.f32 %v6382_v23, %v6315_v18  ;;  %3017 = vst [vmem:[%s6804_s4 + $0x30] sm:$0xff] %v3001_v27  ;;  %3252 = vrsqrt.f32 %v6375_v7  ;;  %vm2905_vm10 = vweird.f32 %v6315_v18 }
 0x4fb   :  { %v2360_v45 = vmul.f32 %v2272_v46, %v5825_v35  ;;  %v2898_v13 = vsel %vm2897_vm4, %v6331_v49, %v2894_v48  ;;  %v2276_v37 = vmul.f32 0.5, %v2275_v44  ;;  %3254 = vrsqrt.f32 %v6380_v39  ;;  %v2792_v59 = vpop.xlane.xlu0 %2791 }
 0x4fc   :  { %v2901_v40 = vmul.f32 %v6382_v23, %v2900_v0  ;;  %v6407_v55 = vpop.eup %3248  ;;  %v2986_v35 = vmul.f32 %v2898_v13, %v5827_v41  ;;  %v6411_v62 = vmax.f32 %v2471_v51, 1e-24  ;;  %vm2280_vm11 = vweird.f32 %v6369_v5 }
 0x4fd   :  { %v2681_v8 = vadd.f32 %v2665_v6, %v2360_v45  ;;  %v2277_v29 = vsub.f32 1.5, %v2276_v37  ;;  %v2579_v49 = vmul.f32 %v6407_v55, %v6357_v58  ;;  %vm2584_vm12 = vweird.f32 %v6357_v58  ;;  %vm6437_vm13 = vmor %vm2279_vm8, %vm2280_vm11 }
 0x4fe   :  { %v2902_v63 = vmul.f32 0.5, %v2901_v40  ;;  %3256 = vrsqrt.f32 %v6411_v62  ;;  %v6420_v50 = vmax.f32 %v2166_v24, 1e-24  ;;  %vm2906_vm14 = vweird.f32 %v6382_v23 }
 0x4ff   :  { %v6416_v43 = vpop.eup %3250  ;;  %v3002_v14 = vadd.f32 %v2986_v35, %v2681_v8  ;;  %v2278_v41 = vmul.f32 %v6369_v5, %v2277_v29  ;;  %v2580_v11 = vmul.f32 %v6407_v55, %v2579_v49  ;;  %vm2915_vm0 = vweird.f32 %v6359_v26  ;;  %vm6471_vm3 = vmor %vm2905_vm10, %vm2906_vm14 }
 0x500   :  { %v2903_v10 = vsub.f32 1.5, %v2902_v63  ;;  %v2910_v53 = vmul.f32 %v6416_v43, %v6359_v26  ;;  %v6428_v33 = vpop.eup %3252  ;;  %3258 = vrsqrt.f32 %v6420_v50  ;;  %v6444_v19 = vmax.f32 %v2792_v59, 1e-24 }
 0x501   :  { %v2168_v21 = vpop.xlane.xlu2 %2167  ;;  %3018 = vst [vmem:[%s6804_s4 + $0x38] sm:$0xff] %v3002_v14  ;;  %v6446_v20 = vpop.eup %3254  ;;  %v2282_v34 = vsel %vm6437_vm13, %v6369_v5, %v2278_v41  ;;  %v2581_v25 = vmul.f32 0.5, %v2580_v11  ;;  %vm2594_vm15 = vweird.f32 %v6375_v7  ;;  %v2589_v9 = vmul.f32 %v6428_v33, %v6375_v7 }
 0x502   :  { %v6426_v36 = vpop.xlane.xlu1 %2793  ;;  %v2911_v28 = vmul.f32 %v6416_v43, %v2910_v53  ;;  %v2904_v17 = vmul.f32 %v6382_v23, %v2903_v10  ;;  %v2284_v16 = vmul.f32 %v6446_v20, %v6380_v39  ;;  %vm2289_vm9 = vweird.f32 %v6380_v39 }
 0x503   :  { %v2582_v3 = vsub.f32 1.5, %v2581_v25  ;;  %vm2585_vm1 = vweird.f32 %v6407_v55  ;;  %vm2916_vm2 = vweird.f32 %v6416_v43  ;;  %v2361_v30 = vmul.f32 %v2282_v34, %v5842_v1  ;;  %v2473_v46 = vpop.xlane.xlu0 %2472 }
 0x504   :  { %v2912_v22 = vmul.f32 0.5, %v2911_v28  ;;  %v6461_v5 = vpop.eup %3256  ;;  %v2590_v38 = vmul.f32 %v6428_v33, %v2589_v9  ;;  %v2285_v51 = vmul.f32 %v6446_v20, %v2284_v16  ;;  %3260 = vrsqrt.f32 %v6444_v19  ;;  %vm2586_vm7 = vmor %vm2584_vm12, %vm2585_vm1 }
 0x505   :  { %v2583_v27 = vmul.f32 %v6407_v55, %v2582_v3  ;;  %vm2595_vm5 = vweird.f32 %v6428_v33  ;;  %v2599_v1 = vmul.f32 %v6461_v5, %v6411_v62  ;;  %vm2604_vm6 = vweird.f32 %v6411_v62  ;;  %vm6504_vm10 = vmor %vm2915_vm0, %vm2916_vm2 }
 0x506   :  { %v2913_v6 = vsub.f32 1.5, %v2912_v22  ;;  %v6480_v48 = vpop.eup %3258  ;;  %v2908_v18 = vsel %vm6471_vm3, %v6382_v23, %v2904_v17  ;;  %v2591_v44 = vmul.f32 0.5, %v2590_v38  ;;  %v2286_v0 = vmul.f32 0.5, %v2285_v51  ;;  %vm2596_vm11 = vmor %vm2594_vm15, %vm2595_vm5 }
 0x507   :  { %v6489_v45 = vmax.f32 %v2168_v21, 1e-24  ;;  %v2587_v13 = vsel %vm2586_vm7, %v6407_v55, %v2583_v27  ;;  %v2600_v40 = vmul.f32 %v6461_v5, %v2599_v1  ;;  %v2294_v59 = vmul.f32 %v6480_v48, %v6420_v50 }
 0x508   :  { %v2914_v37 = vmul.f32 %v6416_v43, %v2913_v6  ;;  %vm2299_vm4 = vweird.f32 %v6420_v50  ;;  %v2666_v8 = vmul.f32 %v2587_v13, %v5840_v12  ;;  %v2592_v58 = vsub.f32 1.5, %v2591_v44 }
 0x509   :  { %v2796_v23 = vpop.xlane.xlu2 %2795  ;;  %v2287_v35 = vsub.f32 1.5, %v2286_v0  ;;  %vm2290_vm8 = vweird.f32 %v6446_v20  ;;  %v2987_v63 = vmul.f32 %v2908_v18, %v5844_v60  ;;  %v2601_v49 = vmul.f32 0.5, %v2600_v40 }
 0x50a   :  { %v2475_v29 = vpop.xlane.xlu1 %2474  ;;  %v2295_v14 = vmul.f32 %v6480_v48, %v2294_v59  ;;  %3262 = vrsqrt.f32 %v6489_v45  ;;  %v3261_v12 = vpop.eup %3260  ;;  %v2682_v41 = vadd.f32 %v2666_v8, %v2361_v30  ;;  %v2593_v10 = vmul.f32 %v6428_v33, %v2592_v58  ;;  %vm2291_vm13 = vmor %vm2289_vm9, %vm2290_vm8 }
 0x50b   :  { %v2288_v60 = vmul.f32 %v6446_v20, %v2287_v35  ;;  %vm2605_vm12 = vweird.f32 %v6461_v5  ;;  %v2918_v26 = vsel %vm6504_vm10, %v6416_v43, %v2914_v37  ;;  %v2602_v11 = vsub.f32 1.5, %v2601_v49  ;;  %v2170_v22 = vpop.xlane.xlu0 %2169 }
 0x50c   :  { %v2296_v53 = vmul.f32 0.5, %v2295_v14  ;;  %v2920_v21 = vmul.f32 %v3261_v12, %v6444_v19  ;;  %v3003_v54 = vadd.f32 %v2987_v63, %v2682_v41  ;;  %v2597_v34 = vsel %vm2596_vm11, %v6428_v33, %v2593_v10  ;;  %vm6537_vm0 = vmor %vm2604_vm6, %vm2605_vm12 }
 0x50d   :  { %v2292_v7 = vsel %vm2291_vm13, %v6446_v20, %v2288_v60  ;;  %vm2300_vm14 = vweird.f32 %v6480_v48  ;;  %v2667_v25 = vmul.f32 %v2597_v34, %v5857_v42  ;;  %v2603_v43 = vmul.f32 %v6461_v5, %v2602_v11 }
 0x50e   :  { %v2362_v28 = vmul.f32 %v2292_v7, %v5859_v32  ;;  %v2297_v17 = vsub.f32 1.5, %v2296_v53  ;;  %3019 = vst [vmem:[%s6804_s4 + $0x40] sm:$0xff] %v3003_v54  ;;  %v2988_v39 = vmul.f32 %v2918_v26, %v5861_v2  ;;  %v2921_v42 = vmul.f32 %v3261_v12, %v2920_v21  ;;  %vm2301_vm15 = vmor %vm2299_vm4, %vm2300_vm14 }
 0x50f   :  { %v6542_v32 = vmax.f32 %v6426_v36, 1e-24  ;;  %v6544_v20 = vmax.f32 %v2473_v46, 1e-24  ;;  %v2607_v2 = vsel %vm6537_vm0, %v6461_v5, %v2603_v43  ;;  %v6552_v62 = vmax.f32 %v2796_v23, 1e-24 }
 0x510   :  { %v6546_v9 = vpop.eup %3262  ;;  %v2683_v16 = vadd.f32 %v2667_v25, %v2362_v28  ;;  %v2298_v3 = vmul.f32 %v6480_v48, %v2297_v17  ;;  %v2922_v36 = vmul.f32 0.5, %v2921_v42  ;;  %vm2926_vm9 = vweird.f32 %v3261_v12 }
 0x511   :  { %v2477_v30 = vpop.xlane.xlu2 %2476  ;;  %v2304_v38 = vmul.f32 %v6546_v9, %v6489_v45  ;;  %v2668_v24 = vmul.f32 %v2607_v2, %v5874_v47  ;;  %3264 = vrsqrt.f32 %v6542_v32  ;;  %v6570_v46 = vmax.f32 %v2475_v29, 1e-24 }
 0x512   :  { %v3004_v51 = vadd.f32 %v2988_v39, %v2683_v16  ;;  %v2302_v5 = vsel %vm2301_vm15, %v6480_v48, %v2298_v3  ;;  %v2923_v6 = vsub.f32 1.5, %v2922_v36  ;;  %3266 = vrsqrt.f32 %v6544_v20  ;;  %v2172_v50 = vpop.xlane.xlu1 %2171 }
 0x513   :  { %v2363_v27 = vmul.f32 %v2302_v5, %v5876_v31  ;;  %v2305_v1 = vmul.f32 %v6546_v9, %v2304_v38  ;;  %3268 = vrsqrt.f32 %v6552_v62  ;;  %vm2925_vm1 = vweird.f32 %v6444_v19 }
 0x514   :  { %3020 = vst [vmem:[%s6804_s4 + $0x48] sm:$0xff] %v3004_v51  ;;  %v2924_v47 = vmul.f32 %v3261_v12, %v2923_v6  ;;  %v6573_v18 = vmax.f32 %v2170_v22, 1e-24  ;;  %vm2927_vm2 = vmor %vm2925_vm1, %vm2926_vm9  ;;  %3270 = vrsqrt.f32 %v6570_v46  ;;  %v6577_v44 = vmax.f32 %v2477_v30, 1e-24 }
 0x515   :  { %v2306_v48 = vmul.f32 0.5, %v2305_v1  ;;  %v2684_v31 = vadd.f32 %v2668_v24, %v2363_v27  ;;  %v6579_v0 = vmax.f32 %v2172_v50, 1e-24  ;;  %vm2310_vm3 = vweird.f32 %v6546_v9 }
 0x516   :  { %v2928_v13 = vsel %vm2927_vm2, %v3261_v12, %v2924_v47  ;;  %3272 = vrsqrt.f32 %v6573_v18  ;;  %vm2309_vm5 = vweird.f32 %v6489_v45  ;;  %vm2935_vm6 = vweird.f32 %v6542_v32 }
 0x517   :  { %v2307_v37 = vsub.f32 1.5, %v2306_v48  ;;  %v6582_v40 = vpop.eup %3264  ;;  %v2989_v19 = vmul.f32 %v2928_v13, %v5878_v56  ;;  %3274 = vrsqrt.f32 %v6577_v44  ;;  %vm2614_vm4 = vweird.f32 %v6544_v20  ;;  %vm6613_vm10 = vmor %vm2309_vm5, %vm2310_vm3 }
 0x518   :  { %v6586_v23 = vpop.xlane.xlu0 %2478  ;;  %v3267_v8 = vpop.eup %3266  ;;  %v2930_v58 = vmul.f32 %v6582_v40, %v6542_v32  ;;  %3276 = vrsqrt.f32 %v6579_v0  ;;  %vm2936_vm7 = vweird.f32 %v6582_v40  ;;  %vm2945_vm8 = vweird.f32 %v6552_v62 }
 0x519   :  { %v2174_v59 = vpop.xlane.xlu2 %2173  ;;  %v6592_v35 = vpop.eup %3268  ;;  %v3005_v29 = vadd.f32 %v2989_v19, %v2684_v31  ;;  %v2308_v63 = vmul.f32 %v6546_v9, %v2307_v37  ;;  %v2609_v56 = vmul.f32 %v3267_v8, %v6544_v20  ;;  %vm2615_vm11 = vweird.f32 %v3267_v8  ;;  %vm6642_vm13 = vmor %vm2935_vm6, %vm2936_vm7 }
 0x51a   :  { %v6596_v55 = vmax.f32 %v2174_v59, 1e-24  ;;  %v2931_v49 = vmul.f32 %v6582_v40, %v2930_v58  ;;  %v2940_v14 = vmul.f32 %v6592_v35, %v6552_v62  ;;  %v6603_v12 = vpop.eup %3270  ;;  %vm2946_vm12 = vweird.f32 %v6592_v35  ;;  %vm2616_vm14 = vmor %vm2614_vm4, %vm2615_vm11 }
 0x51b   :  { %3021 = vst [vmem:[%s6804_s4 + $0x50] sm:$0xff] %v3005_v29  ;;  %v2610_v41 = vmul.f32 %v3267_v8, %v2609_v56  ;;  %v2619_v11 = vmul.f32 %v6603_v12, %v6570_v46  ;;  %v2312_v21 = vsel %vm6613_vm10, %v6546_v9, %v2308_v63  ;;  %vm2625_vm0 = vweird.f32 %v6603_v12  ;;  %vm6662_vm9 = vmor %vm2945_vm8, %vm2946_vm12 }
 0x51c   :  { %v3273_v45 = vpop.eup %3272  ;;  %v2932_v60 = vmul.f32 0.5, %v2931_v49  ;;  %v2941_v26 = vmul.f32 %v6592_v35, %v2940_v14  ;;  %3278 = vrsqrt.f32 %v6596_v55  ;;  %v2364_v30 = vmul.f32 %v2312_v21, %v5893_v52  ;;  %v6974_v14 = vld [vmem:[#allocation12_spill] sm:$0xff] }
 0x51d   :  { %v6621_v53 = vpop.eup %3274  ;;  %v2611_v54 = vmul.f32 0.5, %v2610_v41  ;;  %v2314_v34 = vmul.f32 %v3273_v45, %v6573_v18  ;;  %v2620_v43 = vmul.f32 %v6603_v12, %v2619_v11  ;;  %vm2320_vm15 = vweird.f32 %v3273_v45 }
 0x51e   :  { %v6627_v7 = vpop.eup %3276  ;;  %v2933_v25 = vsub.f32 1.5, %v2932_v60  ;;  %v2942_v28 = vmul.f32 0.5, %v2941_v26  ;;  %v2629_v17 = vmul.f32 %v6621_v53, %v6577_v44  ;;  %vm2624_vm1 = vweird.f32 %v6570_v46 }
 0x51f   :  { %v2612_v39 = vsub.f32 1.5, %v2611_v54  ;;  %v2315_v33 = vmul.f32 %v3273_v45, %v2314_v34  ;;  %v2324_v42 = vmul.f32 %v6627_v7, %v6579_v0  ;;  %v2621_v3 = vmul.f32 0.5, %v2620_v43  ;;  %vm2626_vm2 = vmor %vm2624_vm1, %vm2625_vm0 }
 0x520   :  { %v2481_v9 = vpop.xlane.xlu1 %2480  ;;  %v2934_v16 = vmul.f32 %v6582_v40, %v2933_v25  ;;  %v2943_v2 = vsub.f32 1.5, %v2942_v28  ;;  %v2630_v22 = vmul.f32 %v6621_v53, %v2629_v17  ;;  %v6669_v13 = vmax.f32 %v6586_v23, 1e-24 }
 0x521   :  { %v2613_v38 = vmul.f32 %v3267_v8, %v2612_v39  ;;  %v2316_v51 = vmul.f32 0.5, %v2315_v33  ;;  %v2325_v24 = vmul.f32 %v6627_v7, %v2324_v42  ;;  %v2622_v52 = vsub.f32 1.5, %v2621_v3  ;;  %v6975_v33 = vld [vmem:[#allocation5_spill] sm:$0xff] }
 0x522   :  { %v2176_v5 = vpop.xlane.xlu0 %2175  ;;  %v6647_v27 = vpop.eup %3278  ;;  %v2938_v6 = vsel %vm6642_vm13, %v6582_v40, %v2934_v16  ;;  %v2944_v1 = vmul.f32 %v6592_v35, %v2943_v2  ;;  %v2631_v47 = vmul.f32 0.5, %v2630_v22  ;;  %vm2319_vm3 = vweird.f32 %v6573_v18  ;;  %v6976_v2 = vld [vmem:[#allocation13_spill] sm:$0xff] }
 0x523   :  { %v2617_v32 = vsel %vm2616_vm14, %v3267_v8, %v2613_v38  ;;  %v2317_v50 = vsub.f32 1.5, %v2316_v51  ;;  %v2623_v20 = vmul.f32 %v6603_v12, %v2622_v52  ;;  %v2334_v40 = vmul.f32 %v6647_v27, %v6596_v55  ;;  %vm2321_vm5 = vmor %vm2319_vm3, %vm2320_vm15  ;;  %v2802_v18 = vpop.xlane.xlu2 %2801 }
 0x524   :  { %v2669_v48 = vmul.f32 %v2617_v32, %v5891_v57  ;;  %v2326_v57 = vmul.f32 0.5, %v2325_v24  ;;  %v2990_v62 = vmul.f32 %v2938_v6, %v5895_v15  ;;  %v2948_v46 = vsel %vm6662_vm9, %v6592_v35, %v2944_v1 }
 0x525   :  { %v2318_v37 = vmul.f32 %v3273_v45, %v2317_v50  ;;  %v2627_v59 = vsel %vm2626_vm2, %v6603_v12, %v2623_v20  ;;  %v2632_v58 = vsub.f32 1.5, %v2631_v47  ;;  %v2335_v56 = vmul.f32 %v6647_v27, %v2334_v40 }
 0x526   :  { %v2685_v19 = vadd.f32 %v2669_v48, %v2364_v30  ;;  %v2670_v23 = vmul.f32 %v2627_v59, %v5908_v61  ;;  %3280 = vrsqrt.f32 %v6669_v13  ;;  %v2327_v49 = vsub.f32 1.5, %v2326_v57 }
 0x527   :  { %v2322_v8 = vsel %vm2321_vm5, %v3273_v45, %v2318_v37  ;;  %v2991_v35 = vmul.f32 %v2948_v46, %v6974_v14  ;;  %v6688_v61 = vmax.f32 %v2802_v18, 1e-24  ;;  %v6690_v41 = vmax.f32 %v2481_v9, 1e-24 }
 0x528   :  { %v3006_v29 = vadd.f32 %v2990_v62, %v2685_v19  ;;  %v2365_v63 = vmul.f32 %v2322_v8, %v5910_v4  ;;  %v2800_v15 = vpop.xlane.xlu1 %2799  ;;  %vm2635_vm6 = vweird.f32 %v6621_v53  ;;  %v6693_v4 = vmax.f32 %v2176_v5, 1e-24 }
 0x529   :  { %v6695_v45 = vmax.f32 %v2800_v15, 1e-24  ;;  %v2633_v26 = vmul.f32 %v6621_v53, %v2632_v58  ;;  %v2336_v11 = vmul.f32 0.5, %v2335_v56  ;;  %3282 = vrsqrt.f32 %v6688_v61 }
 0x52a   :  { %3022 = vst [vmem:[%s6804_s4 + $0x58] sm:$0xff] %v3006_v29  ;;  %v2686_v12 = vadd.f32 %v2670_v23, %v2365_v63  ;;  %v2798_v10 = vpop.xlane.xlu0 %2797  ;;  %v2328_v21 = vmul.f32 %v6627_v7, %v2327_v49  ;;  %vm2330_vm7 = vweird.f32 %v6627_v7  ;;  %3284 = vrsqrt.f32 %v6690_v41  ;;  %v6981_v23 = vld [vmem:[#allocation14_spill] sm:$0xff] }
 0x52b   :  { %vm2634_vm4 = vweird.f32 %v6577_v44  ;;  %3286 = vrsqrt.f32 %v6693_v4  ;;  %v6709_v34 = vmax.f32 %v2798_v10, 1e-24  ;;  %vm2329_vm10 = vweird.f32 %v6579_v0  ;;  %v6984_v63 = vld [vmem:[#allocation6_spill] sm:$0xff] }
 0x52c   :  { %v3007_v60 = vadd.f32 %v2991_v35, %v2686_v12  ;;  %v6702_v54 = vpop.eup %3280  ;;  %vm2636_vm8 = vmor %vm2634_vm4, %vm2635_vm6  ;;  %3288 = vrsqrt.f32 %v6695_v45  ;;  %v2337_v43 = vsub.f32 1.5, %v2336_v11  ;;  %vm2339_vm12 = vweird.f32 %v6596_v55 }
 0x52d   :  { %v2639_v25 = vmul.f32 %v6702_v54, %v6669_v13  ;;  %v2637_v28 = vsel %vm2636_vm8, %v6621_v53, %v2633_v26  ;;  %vm2331_vm11 = vmor %vm2329_vm10, %vm2330_vm7  ;;  %3290 = vrsqrt.f32 %v6709_v34  ;;  %vm2340_vm13 = vweird.f32 %v6647_v27  ;;  %v6986_v26 = vld [vmem:[#allocation17_spill] sm:$0xff] }
 0x52e   :  { %3023 = vst [vmem:[%s6804_s4 + $0x60] sm:$0xff] %v3007_v60  ;;  %v2332_v44 = vsel %vm2331_vm11, %v6627_v7, %v2328_v21  ;;  %v6725_v42 = vmul.f32 %v2637_v28, %v6975_v33  ;;  %v2338_v7 = vmul.f32 %v6647_v27, %v2337_v43  ;;  %vm2644_vm14 = vweird.f32 %v6669_v13  ;;  %vm6746_vm1 = vmor %vm2339_vm12, %vm2340_vm13 }
 0x52f   :  { %v2640_v17 = vmul.f32 %v6702_v54, %v2639_v25  ;;  %v6721_v39 = vpop.eup %3282  ;;  %v6731_v3 = vmul.f32 %v2332_v44, %v6976_v2  ;;  %vm2975_vm0 = vweird.f32 %v6688_v61  ;;  %vm2645_vm15 = vweird.f32 %v6702_v54 }
 0x530   :  { %v3285_v0 = vpop.eup %3284  ;;  %v2970_v53 = vmul.f32 %v6721_v39, %v6688_v61  ;;  %vm2654_vm9 = vweird.f32 %v6690_v41  ;;  %v2342_v48 = vsel %vm6746_vm1, %v6647_v27, %v2338_v7  ;;  %vm2349_vm2 = vweird.f32 %v6693_v4  ;;  %vm6758_vm3 = vmor %vm2644_vm14, %vm2645_vm15  ;;  %v6985_v61 = vld [vmem:[#allocation15_spill] sm:$0xff] }
 0x531   :  { %v2641_v9 = vmul.f32 0.5, %v2640_v17  ;;  %v3287_v16 = vpop.eup %3286  ;;  %v2649_v22 = vmul.f32 %v3285_v0, %v6690_v41  ;;  %vm2976_vm5 = vweird.f32 %v6721_v39  ;;  %vm2655_vm6 = vweird.f32 %v3285_v0  ;;  %v6989_v17 = vld [vmem:[#allocation8_spill] sm:$0xff] }
 0x532   :  { %v3289_v30 = vpop.eup %3288  ;;  %v2971_v38 = vmul.f32 %v6721_v39, %v2970_v53  ;;  %v2344_v51 = vmul.f32 %v3287_v16, %v6693_v4  ;;  %vm2350_vm7 = vweird.f32 %v3287_v16  ;;  %v2367_v8 = vmul.f32 %v2342_v48, %v6981_v23  ;;  %vm6770_vm4 = vmor %vm2975_vm0, %vm2976_vm5 }
 0x533   :  { %v2642_v36 = vsub.f32 1.5, %v2641_v9  ;;  %v3291_v24 = vpop.eup %3290  ;;  %v2650_v5 = vmul.f32 %v3285_v0, %v2649_v22  ;;  %v2960_v6 = vmul.f32 %v3289_v30, %v6695_v45  ;;  %vm2966_vm8 = vweird.f32 %v3289_v30  ;;  %vm2656_vm10 = vmor %vm2654_vm9, %vm2655_vm6 }
 0x534   :  { %v2972_v1 = vmul.f32 0.5, %v2971_v38  ;;  %v2345_v50 = vmul.f32 %v3287_v16, %v2344_v51  ;;  %v2950_v47 = vmul.f32 %v3291_v24, %v6709_v34  ;;  %vm2956_vm11 = vweird.f32 %v3291_v24  ;;  %vm2351_vm12 = vmor %vm2349_vm2, %vm2350_vm7 }
 0x535   :  { %v2643_v32 = vmul.f32 %v6702_v54, %v2642_v36  ;;  %v2651_v31 = vmul.f32 0.5, %v2650_v5  ;;  %v2961_v20 = vmul.f32 %v3289_v30, %v2960_v6  ;;  %vm2965_vm13 = vweird.f32 %v6695_v45 }
 0x536   :  { %v2973_v37 = vsub.f32 1.5, %v2972_v1  ;;  %v2346_v57 = vmul.f32 0.5, %v2345_v50  ;;  %v2951_v40 = vmul.f32 %v3291_v24, %v2950_v47  ;;  %vm2955_vm14 = vweird.f32 %v6709_v34  ;;  %vm2967_vm0 = vmor %vm2965_vm13, %vm2966_vm8  ;;  %v6988_v34 = vld [vmem:[#allocation16_spill] sm:$0xff] }
 0x537   :  { %v2647_v62 = vsel %vm6758_vm3, %v6702_v54, %v2643_v32  ;;  %v2652_v27 = vsub.f32 1.5, %v2651_v31  ;;  %v2962_v19 = vmul.f32 0.5, %v2961_v20  ;;  %vm2957_vm15 = vmor %vm2955_vm14, %vm2956_vm11  ;;  %v6987_v54 = vld [vmem:[#allocation7_spill] sm:$0xff]  ;;  %v2687_v45 = vadd.f32 %v6725_v42, %v6731_v3 }
 0x538   :  { %v2974_v59 = vmul.f32 %v6721_v39, %v2973_v37  ;;  %v2347_v46 = vsub.f32 1.5, %v2346_v57  ;;  %v2952_v13 = vmul.f32 0.5, %v2951_v40  ;;  %v2672_v56 = vmul.f32 %v2647_v62, %v6984_v63 }
 0x539   :  { %v2653_v18 = vmul.f32 %v3285_v0, %v2652_v27  ;;  %v2963_v29 = vsub.f32 1.5, %v2962_v19 }
 0x53a   :  { %v2348_v15 = vmul.f32 %v3287_v16, %v2347_v46  ;;  %v2953_v49 = vsub.f32 1.5, %v2952_v13  ;;  %v2978_v12 = vsel %vm6770_vm4, %v6721_v39, %v2974_v59  ;;  %v2688_v4 = vadd.f32 %v2672_v56, %v2367_v8 }
 0x53b   :  { %v2657_v14 = vsel %vm2656_vm10, %v3285_v0, %v2653_v18  ;;  %v2964_v35 = vmul.f32 %v3289_v30, %v2963_v29  ;;  %v2994_v43 = vmul.f32 %v2978_v12, %v6988_v34 }
 0x53c   :  { %v2673_v10 = vmul.f32 %v2657_v14, %v6985_v61  ;;  %v2352_v41 = vsel %vm2351_vm12, %v3287_v16, %v2348_v15  ;;  %v2954_v60 = vmul.f32 %v3291_v24, %v2953_v49 }
 0x53d   :  { %v2368_v11 = vmul.f32 %v2352_v41, %v6986_v26  ;;  %v2968_v21 = vsel %vm2967_vm0, %v3289_v30, %v2964_v35 }
 0x53e   :  { %v2993_v25 = vmul.f32 %v2968_v21, %v6987_v54  ;;  %v2958_v28 = vsel %vm2957_vm15, %v3291_v24, %v2954_v60 }
 0x53f   :  { %v2689_v44 = vadd.f32 %v2673_v10, %v2368_v11  ;;  %v2992_v39 = vmul.f32 %v2958_v28, %v6989_v17 }
 0x540   :  { %v3009_v0 = vadd.f32 %v2993_v25, %v2688_v4 }
 0x541   :  { %v3010_v33 = vadd.f32 %v2994_v43, %v2689_v44  ;;  %v3008_v9 = vadd.f32 %v2992_v39, %v2687_v45 }
 0x542   :  { %3025 = vst [vmem:[%s6804_s4 + $0x70] sm:$0xff] %v3009_v0 }
 0x543   :  { %3026 = vst [vmem:[%s6804_s4 + $0x78] sm:$0xff] %v3010_v33 }
 0x544   :  { %3024 = vst [vmem:[%s6804_s4 + $0x68] sm:$0xff] %v3008_v9 }
 0x545   :  { %3031 = vsyncpa [#allocation3], 1 }

</bundles_post_ra>
